<compile_context>
chip_gen: v5e
topology: v5e:2x2
jax: 0.10.0
libtpu: 0.0.40
codegen_flags: <defaults>
</compile_context>

<pallas_src>
import functools

import jax
import jax.numpy as jnp
from jax import lax
from jax.experimental import pallas as pl
from jax.experimental.pallas import tpu as pltpu


def _round_up(x, m):
    return ((x + m - 1) // m) * m


def _pad_to(w, rows, cols):
    return jnp.pad(w, ((0, rows - w.shape[0]), (0, cols - w.shape[1])))


# Order of packed-weight arguments fed to the kernel.
_W_KEYS = ("wih_f", "wih_b", "bih_f", "bih_b",
           "whh_f", "whh_b", "wout_f", "wout_b", "bout")


def pack_params(params, num_labels, compute_dtype=jnp.float32):
    """One-time weight packing/padding (hoisted out of the per-call jitted path).

    Gate order is i, f, g, o. Each gate block is lane-padded from H to Hp=128*k with
    ZEROS, rows are padded with ZEROS, and the initial state is zero. Under that
    invariant the padded hidden lanes stay exactly 0 forever (sigmoid(0)=0.5 is
    multiplied by c=0 / tanh(0)=0), so they never leak into real lanes via h @ W_hh.
    Do NOT change the padding fill or the zero initial state without revisiting this.
    """
    emb = params["emb"]
    D = emb.shape[1]
    H = params["whh_f"].shape[0]
    Dp = _round_up(D, 128)
    Hp = _round_up(H, 128)
    Lp = _round_up(num_labels, 128)

    def gate_pad(w, rows):
        # (in, 4H) packed gates -> (rows, 4*Hp): per-gate lane pad + row pad, zeros.
        parts = [jnp.pad(w[:, k * H:(k + 1) * H],
                         ((0, rows - w.shape[0]), (0, Hp - H))) for k in range(4)]
        return jnp.concatenate(parts, axis=1)

    packed = {
        # Column-padded embedding table: the per-call gather emits lane-aligned rows.
        "emb": jnp.pad(emb, ((0, 0), (0, Dp - D))).astype(compute_dtype),
        "wih_f": gate_pad(params["wih_f"], Dp).astype(compute_dtype),   # (Dp, 4Hp)
        "wih_b": gate_pad(params["wih_b"], Dp).astype(compute_dtype),
        "bih_f": gate_pad(params["b_f"], 1).astype(jnp.float32),        # (1, 4Hp)
        "bih_b": gate_pad(params["b_b"], 1).astype(jnp.float32),
        "whh_f": gate_pad(params["whh_f"], Hp).astype(compute_dtype),   # (Hp, 4Hp)
        "whh_b": gate_pad(params["whh_b"], Hp).astype(compute_dtype),
        # hidden2tag split so the kernel needs no lane-axis concat of h_fwd/h_bwd.
        "wout_f": _pad_to(params["w_out"][:H], Hp, Lp).astype(compute_dtype),
        "wout_b": _pad_to(params["w_out"][H:], Hp, Lp).astype(compute_dtype),
        "bout": _pad_to(params["b_out"], 1, Lp).astype(jnp.float32),    # (1, Lp)
    }
    return packed


def bilstm_kernel(lens_ref, xf_ref, xb_ref,
                  wih_f_ref, wih_b_ref, bih_f_ref, bih_b_ref,
                  whh_f_ref, whh_b_ref, wout_f_ref, wout_b_ref, bout_ref,
                  out_ref,
                  hf_ref, cf_ref, hb_ref, cb_ref, gxf_ref, gxb_ref,
                  *, chunk_T, Bp):
    Hp = whh_f_ref.shape[0]
    cdt = whh_f_ref.dtype                       # matmul-input dtype (f32 or bf16)
    g = pl.program_id(0)
    nc = pl.num_programs(0)

    # --- Carried-state init (grid step 0 only) ---
    @pl.when(g == 0)
    def _():
        z = jnp.zeros((Bp, Hp), jnp.float32)
        hf_ref[...] = z
        cf_ref[...] = z
        hb_ref[...] = z
        cb_ref[...] = z

    # --- Per-chunk input projection, written directly into scratch (no xp temp) ---
    gxf_ref[...] = (jnp.dot(xf_ref[...], wih_f_ref[...],
                            preferred_element_type=jnp.float32) + bih_f_ref[...])
    gxb_ref[...] = (jnp.dot(xb_ref[...], wih_b_ref[...],
                            preferred_element_type=jnp.float32) + bih_b_ref[...])

    # Lengths broadcast once per grid step (hoisted out of the recurrence loop).
    lens_b = jnp.broadcast_to(lens_ref[...], (Bp, Hp))          # int32

    # First global (padded) timestep covered by this grid step's fwd / bwd chunk.
    t0_f = g * chunk_T
    t0_b = (nc - 1 - g) * chunk_T

    def sig(x):
        # One EUP push per gate (tanh) instead of a possible exp+reciprocal pair.
        return 0.5 * (jnp.tanh(0.5 * x) + 1.0)

    def cell(gates, h, c, valid):
        i = sig(gates[:, 0 * Hp:1 * Hp])        # 128-lane-aligned gate slices
        f = sig(gates[:, 1 * Hp:2 * Hp])
        gg = jnp.tanh(gates[:, 2 * Hp:3 * Hp])
        o = sig(gates[:, 3 * Hp:4 * Hp])
        c_new = f * c + i * gg
        h_new = o * jnp.tanh(c_new)
        # pack_padded_sequence semantics: freeze state where t >= length[b].
        # jnp.where is bit-exact (no 1-ulp blend drift) and one vsel per update.
        # NOTE: bwd equivalence to PyTorch relies on the ZERO initial state (freezing
        # at zero until t < len == starting the bwd chain at t = len-1).
        h = jnp.where(valid, h_new, h)
        c = jnp.where(valid, c_new, c)
        return h, c

    def step(s, carry):
        h_f, c_f, h_b, c_b = carry
        rf = pl.multiple_of(s * Bp, Bp)                   # fwd: local time s
        rb = pl.multiple_of((chunk_T - 1 - s) * Bp, Bp)   # bwd: local time chunk_T-1-s

        g_f = gxf_ref[pl.ds(rf, Bp), :] + jnp.dot(
            h_f.astype(cdt), whh_f_ref[...], preferred_element_type=jnp.float32)
        g_b = gxb_ref[pl.ds(rb, Bp), :] + jnp.dot(
            h_b.astype(cdt), whh_b_ref[...], preferred_element_type=jnp.float32)

        h_f, c_f = cell(g_f, h_f, c_f, (t0_f + s) < lens_b)
        h_b, c_b = cell(g_b, h_b, c_b, (t0_b + (chunk_T - 1 - s)) < lens_b)
        return h_f, c_f, h_b, c_b

    # Fused fwd/bwd recurrence over this chunk. chunk_T is small & static, so a full
    # unroll is the "partial unroll" the review asks for at production T (the T-grid
    # bounds program size; independent fwd/bwd chains interleave on MXU/EUP).
    h_f, c_f, h_b, c_b = lax.fori_loop(
        0, chunk_T, step,
        (hf_ref[...], cf_ref[...], hb_ref[...], cb_ref[...]),
        unroll=True)

    hf_ref[...] = h_f
    cf_ref[...] = c_f
    hb_ref[...] = h_b
    cb_ref[...] = c_b

    # --- Epilogue: hidden2tag on the final hidden states (last grid step) ---
    @pl.when(g == nc - 1)
    def _():
        out_ref[...] = (
            jnp.dot(h_f.astype(cdt), wout_f_ref[...],
                    preferred_element_type=jnp.float32)
            + jnp.dot(h_b.astype(cdt), wout_b_ref[...],
                      preferred_element_type=jnp.float32)
            + bout_ref[...]
        )


@functools.partial(jax.jit, static_argnames=("num_labels", "chunk_T"))
def bilstm_forward(tokens, lengths, packed, num_labels, chunk_T=4):
    emb = packed["emb"]
    Dp = emb.shape[1]
    Hp = packed["whh_f"].shape[0]
    Lp = packed["wout_f"].shape[1]
    B, T = tokens.shape

    Bp = _round_up(B, 8)                 # batch -> sublane multiple
    chunk_T = min(chunk_T, T)
    Tp = _round_up(T, chunk_T)           # pad T; padded steps are masked off (len=0..)
    NC = Tp // chunk_T
    rows = chunk_T * Bp

    # Embedding lookup (glue). Dropout = identity (eval mode).
    # TODO(synk): training-mode dropout is stochastic; modeled as identity.
    x = emb[tokens]                                       # (B, T, Dp), lane-padded cols
    x = jnp.transpose(x, (1, 0, 2))                       # (T, B, Dp) time-major
    x = jnp.pad(x, ((0, Tp - T), (0, Bp - B), (0, 0)))    # (Tp, Bp, Dp)
    x2d = x.reshape(Tp * Bp, Dp)                          # row = t*Bp + b

    # Per-batch lengths; padded batch rows get length 0 -> frozen at zero state.
    lens = jnp.pad(lengths.astype(jnp.int32), (0, Bp - B)).reshape(Bp, 1)

    weights = [packed[k] for k in _W_KEYS]

    def full_spec(a):
        # Whole-array block with a constant index map: fetched once, stays resident.
        return pl.BlockSpec(a.shape, lambda t: (0,) * a.ndim)

    in_specs = (
        [pl.BlockSpec((Bp, 1), lambda t: (0, 0)),             # lengths
         pl.BlockSpec((rows, Dp), lambda t: (t, 0)),           # fwd chunk of x
         pl.BlockSpec((rows, Dp), lambda t: (NC - 1 - t, 0))]  # matching bwd chunk
        + [full_spec(w) for w in weights]
    )

    # Scoped-VMEM budget from actual per-chunk bytes (double-buffer + headroom).
    x_item = jnp.dtype(emb.dtype).itemsize
    need = (
        2 * 2 * rows * Dp * x_item                               # x chunks, 2 dirs, 2 bufs
        + sum(int(w.size) * jnp.dtype(w.dtype).itemsize for w in weights)
        + Bp * 4                                                 # lengths
        + (4 * Bp * Hp + 2 * rows * 4 * Hp) * 4                  # h/c + gx scratch
        + Bp * Lp * 4                                            # output block
    )
    vmem_limit = int(max(32 * 2 ** 20, min(64 * 2 ** 20, 2 * need + 4 * 2 ** 20)))

    kernel = functools.partial(bilstm_kernel, chunk_T=chunk_T, Bp=Bp)
    out = pl.pallas_call(
        kernel,
        grid=(NC,),
        out_shape=jax.ShapeDtypeStruct((Bp, Lp), jnp.float32),
        in_specs=in_specs,
        out_specs=pl.BlockSpec((Bp, Lp), lambda t: (0, 0)),
        scratch_shapes=[
            pltpu.VMEM((Bp, Hp), jnp.float32),       # h_fwd (carried across grid)
            pltpu.VMEM((Bp, Hp), jnp.float32),       # c_fwd
            pltpu.VMEM((Bp, Hp), jnp.float32),       # h_bwd
            pltpu.VMEM((Bp, Hp), jnp.float32),       # c_bwd
            pltpu.VMEM((rows, 4 * Hp), jnp.float32),  # per-chunk x @ W_ih (fwd)
            pltpu.VMEM((rows, 4 * Hp), jnp.float32),  # per-chunk x @ W_ih (bwd)
        ],
        compiler_params=pltpu.CompilerParams(
            dimension_semantics=("arbitrary",),       # carried-state axis
            vmem_limit_bytes=vmem_limit),
    )(lens, x2d, x2d, *weights)

    return out[:B, :num_labels]


def reference_forward(tokens, lengths, params, num_labels):
    """Pure-JAX mirror of the PyTorch forward pass (for verification)."""
    emb = params["emb"]
    x = emb[tokens]  # (B, T, D)
    B, T, _ = x.shape
    H = params["whh_f"].shape[0]

    def run_dir(w_ih, w_hh, b, reverse):
        h = jnp.zeros((B, H), jnp.float32)
        c = jnp.zeros((B, H), jnp.float32)
        order = range(T - 1, -1, -1) if reverse else range(T)
        for t in order:
            gates = x[:, t, :] @ w_ih + h @ w_hh + b
            i = jax.nn.sigmoid(gates[:, 0 * H:1 * H])
            f = jax.nn.sigmoid(gates[:, 1 * H:2 * H])
            g = jnp.tanh(gates[:, 2 * H:3 * H])
            o = jax.nn.sigmoid(gates[:, 3 * H:4 * H])
            c_new = f * c + i * g
            h_new = o * jnp.tanh(c_new)
            mask = (lengths > t).reshape(B, 1)
            h = jnp.where(mask, h_new, h)
            c = jnp.where(mask, c_new, c)
        return h

    h_fwd = run_dir(params["wih_f"], params["whh_f"], params["b_f"][0], reverse=False)
    h_bwd = run_dir(params["wih_b"], params["whh_b"], params["b_b"][0], reverse=True)
    h_n = jnp.concatenate([h_fwd, h_bwd], axis=-1)
    return h_n @ params["w_out"] + params["b_out"][0]


def init_params(key, word_size, word_dim, word_hidden_dim, num_labels, zeros=True):
    H = word_hidden_dim // 2  # per-direction hidden (bidirectional)
    ks = jax.random.split(key, 12)
    scale_emb = jnp.sqrt(3.0 / word_dim)
    emb = jax.random.uniform(ks[0], (word_size, word_dim), jnp.float32,
                             -scale_emb, scale_emb)
    if zeros:
        # Embs.set_zeros([0,1,2,3])
        emb = emb.at[jnp.array([0, 1, 2, 3])].set(0.0)

    s = 1.0 / jnp.sqrt(H)

    def u(k, shape):
        return jax.random.uniform(k, shape, jnp.float32, -s, s)

    params = {
        "emb": emb,
        # LSTM weights pre-transposed to (in, 4H); biases = b_ih + b_hh combined, kept 2D.
        "wih_f": u(ks[1], (word_dim, 4 * H)),
        "whh_f": u(ks[2], (H, 4 * H)),
        "b_f": u(ks[3], (1, 4 * H)) + u(ks[4], (1, 4 * H)),
        "wih_b": u(ks[5], (word_dim, 4 * H)),
        "whh_b": u(ks[6], (H, 4 * H)),
        "b_b": u(ks[7], (1, 4 * H)) + u(ks[8], (1, 4 * H)),
        # hidden2tag Linear(word_hidden_dim, num_labels), stored transposed (2H, L).
        "w_out": u(ks[9], (word_hidden_dim, num_labels)),
        "b_out": u(ks[10], (1, num_labels)),
    }
    return params


if __name__ == "__main__":
    # word_HPs = [size, dim, None, hidden, drop, layers, bidirect, zeros]
    word_size = 50
    word_dim = 16
    word_hidden_dim = 32   # -> 16 per direction
    num_labels = 3
    B, T = 2, 8

    key = jax.random.PRNGKey(0)
    k_par, k_tok = jax.random.split(key)
    params = init_params(k_par, word_size, word_dim, word_hidden_dim, num_labels,
                         zeros=True)

    tokens = jax.random.randint(k_tok, (B, T), 0, word_size, dtype=jnp.int32)
    lengths = jnp.array([8, 5], dtype=jnp.int32)  # sorted descending (pack_padded_sequence)

    ref = reference_forward(tokens, lengths, params, num_labels)

    # f32 matmul-input path: matches the f32 PyTorch module closely.
    packed_f32 = pack_params(params, num_labels, compute_dtype=jnp.float32)
    out = jax.block_until_ready(bilstm_forward(tokens, lengths, packed_f32, num_labels))
    assert out.shape == (B, num_labels)
    assert jnp.allclose(out, ref, atol=1e-4, rtol=1e-4), (out, ref)

    # bf16 matmul-input path (production dtype): f32 accumulation, f32 gate/state math.
    packed_bf16 = pack_params(params, num_labels, compute_dtype=jnp.bfloat16)
    out_bf16 = jax.block_until_ready(
        bilstm_forward(tokens, lengths, packed_bf16, num_labels))
    assert out_bf16.shape == (B, num_labels)
    assert bool(jnp.all(jnp.isfinite(out_bf16)))
    assert jnp.allclose(out_bf16, ref, atol=1e-1, rtol=1e-1), (out_bf16, ref)

    print("KERNEL_OK")
</pallas_src>

<mosaic_0001>
module attributes {stable_mosaic.version = 11 : i64} {
  func.func @bilstm_kernel(%arg0: i32, %arg1: memref<8x1xi32, #tpu.memory_space<vmem>>, %arg2: memref<32x128xf32, #tpu.memory_space<vmem>>, %arg3: memref<32x128xf32, #tpu.memory_space<vmem>>, %arg4: memref<128x512xf32, #tpu.memory_space<vmem>>, %arg5: memref<128x512xf32, #tpu.memory_space<vmem>>, %arg6: memref<1x512xf32, #tpu.memory_space<vmem>>, %arg7: memref<1x512xf32, #tpu.memory_space<vmem>>, %arg8: memref<128x512xf32, #tpu.memory_space<vmem>>, %arg9: memref<128x512xf32, #tpu.memory_space<vmem>>, %arg10: memref<128x128xf32, #tpu.memory_space<vmem>>, %arg11: memref<128x128xf32, #tpu.memory_space<vmem>>, %arg12: memref<1x128xf32, #tpu.memory_space<vmem>>, %arg13: memref<8x128xf32, #tpu.memory_space<vmem>>, %arg14: memref<8x128xf32, #tpu.memory_space<vmem>>, %arg15: memref<8x128xf32, #tpu.memory_space<vmem>>, %arg16: memref<8x128xf32, #tpu.memory_space<vmem>>, %arg17: memref<8x128xf32, #tpu.memory_space<vmem>>, %arg18: memref<32x512xf32, #tpu.memory_space<vmem>>, %arg19: memref<32x512xf32, #tpu.memory_space<vmem>>) attributes {dimension_semantics = [#tpu.dimension_semantics<arbitrary>], iteration_bounds = array<i64: 2>, scalar_prefetch = 0 : i64, scratch_operands = 6 : i64, tpu.core_type = #tpu.core_type<tc>, window_params = [{pipeline_mode = #tpu.pipeline_mode<synchronous>, transform_indices = @transform_0, window_bounds = array<i64: 8, 1>}, {transform_indices = @transform_1, window_bounds = array<i64: 32, 128>}, {transform_indices = @transform_2, window_bounds = array<i64: 32, 128>}, {pipeline_mode = #tpu.pipeline_mode<synchronous>, transform_indices = @transform_3, window_bounds = array<i64: 128, 512>}, {pipeline_mode = #tpu.pipeline_mode<synchronous>, transform_indices = @transform_4, window_bounds = array<i64: 128, 512>}, {pipeline_mode = #tpu.pipeline_mode<synchronous>, transform_indices = @transform_5, window_bounds = array<i64: 1, 512>}, {pipeline_mode = #tpu.pipeline_mode<synchronous>, transform_indices = @transform_6, window_bounds = array<i64: 1, 512>}, {pipeline_mode = #tpu.pipeline_mode<synchronous>, transform_indices = @transform_7, window_bounds = array<i64: 128, 512>}, {pipeline_mode = #tpu.pipeline_mode<synchronous>, transform_indices = @transform_8, window_bounds = array<i64: 128, 512>}, {pipeline_mode = #tpu.pipeline_mode<synchronous>, transform_indices = @transform_9, window_bounds = array<i64: 128, 128>}, {pipeline_mode = #tpu.pipeline_mode<synchronous>, transform_indices = @transform_10, window_bounds = array<i64: 128, 128>}, {pipeline_mode = #tpu.pipeline_mode<synchronous>, transform_indices = @transform_11, window_bounds = array<i64: 1, 128>}, {pipeline_mode = #tpu.pipeline_mode<synchronous>, transform_indices = @transform_12, window_bounds = array<i64: 8, 128>}]} {
    %c0_i32 = arith.constant 0 : i32
    %0 = arith.cmpi eq, %arg0, %c0_i32 : i32
    %1 = arith.extui %0 : i1 to i32
    %c0_i32_0 = arith.constant 0 : i32
    %2 = arith.cmpi ne, %1, %c0_i32_0 : i32
    scf.if %2 {
      %cst_160 = arith.constant 0.000000e+00 : f32
      %386 = vector.broadcast %cst_160 : f32 to vector<8x128xf32>
      %c0_161 = arith.constant 0 : index
      %c0_162 = arith.constant 0 : index
      %387 = vector.load %arg14[%c0_161, %c0_162] : memref<8x128xf32, #tpu.memory_space<vmem>>, vector<8x128xf32>
      tpu.vector_store %arg14[%c0_161, %c0_162], %386 {strides = array<i32>} : memref<8x128xf32, #tpu.memory_space<vmem>>, vector<8x128xf32>,
      %c0_163 = arith.constant 0 : index
      %c0_164 = arith.constant 0 : index
      %388 = vector.load %arg15[%c0_163, %c0_164] : memref<8x128xf32, #tpu.memory_space<vmem>>, vector<8x128xf32>
      tpu.vector_store %arg15[%c0_163, %c0_164], %386 {strides = array<i32>} : memref<8x128xf32, #tpu.memory_space<vmem>>, vector<8x128xf32>,
      %c0_165 = arith.constant 0 : index
      %c0_166 = arith.constant 0 : index
      %389 = vector.load %arg16[%c0_165, %c0_166] : memref<8x128xf32, #tpu.memory_space<vmem>>, vector<8x128xf32>
      tpu.vector_store %arg16[%c0_165, %c0_166], %386 {strides = array<i32>} : memref<8x128xf32, #tpu.memory_space<vmem>>, vector<8x128xf32>,
      %c0_167 = arith.constant 0 : index
      %c0_168 = arith.constant 0 : index
      %390 = vector.load %arg17[%c0_167, %c0_168] : memref<8x128xf32, #tpu.memory_space<vmem>>, vector<8x128xf32>
      tpu.vector_store %arg17[%c0_167, %c0_168], %386 {strides = array<i32>} : memref<8x128xf32, #tpu.memory_space<vmem>>, vector<8x128xf32>,
    } else {
    }
    %c0 = arith.constant 0 : index
    %c0_1 = arith.constant 0 : index
    %3 = vector.load %arg2[%c0, %c0_1] : memref<32x128xf32, #tpu.memory_space<vmem>>, vector<32x128xf32>
    %c0_2 = arith.constant 0 : index
    %c0_3 = arith.constant 0 : index
    %4 = vector.load %arg4[%c0_2, %c0_3] : memref<128x512xf32, #tpu.memory_space<vmem>>, vector<128x512xf32>
    %cst = arith.constant dense<0.000000e+00> : vector<32x512xf32>
    %5 = tpu.matmul %3, %4, %cst {dimension_numbers = #tpu.dot_dimension_numbers<[1], [0], [0], [1], [0, 0, 1, 1], [], []>} : vector<32x128xf32>, vector<128x512xf32>, vector<32x512xf32> -> vector<32x512xf32>
    %c0_4 = arith.constant 0 : index
    %c0_5 = arith.constant 0 : index
    %6 = vector.load %arg6[%c0_4, %c0_5] : memref<1x512xf32, #tpu.memory_space<vmem>>, vector<1x512xf32>
    %7 = vector.broadcast %6 : vector<1x512xf32> to vector<32x512xf32>
    %8 = arith.addf %5, %7 : vector<32x512xf32>
    %c0_6 = arith.constant 0 : index
    %c0_7 = arith.constant 0 : index
    %9 = vector.load %arg18[%c0_6, %c0_7] : memref<32x512xf32, #tpu.memory_space<vmem>>, vector<32x512xf32>
    tpu.vector_store %arg18[%c0_6, %c0_7], %8 {strides = array<i32>} : memref<32x512xf32, #tpu.memory_space<vmem>>, vector<32x512xf32>,
    %c0_8 = arith.constant 0 : index
    %c0_9 = arith.constant 0 : index
    %10 = vector.load %arg3[%c0_8, %c0_9] : memref<32x128xf32, #tpu.memory_space<vmem>>, vector<32x128xf32>
    %c0_10 = arith.constant 0 : index
    %c0_11 = arith.constant 0 : index
    %11 = vector.load %arg5[%c0_10, %c0_11] : memref<128x512xf32, #tpu.memory_space<vmem>>, vector<128x512xf32>
    %cst_12 = arith.constant dense<0.000000e+00> : vector<32x512xf32>
    %12 = tpu.matmul %10, %11, %cst_12 {dimension_numbers = #tpu.dot_dimension_numbers<[1], [0], [0], [1], [0, 0, 1, 1], [], []>} : vector<32x128xf32>, vector<128x512xf32>, vector<32x512xf32> -> vector<32x512xf32>
    %c0_13 = arith.constant 0 : index
    %c0_14 = arith.constant 0 : index
    %13 = vector.load %arg7[%c0_13, %c0_14] : memref<1x512xf32, #tpu.memory_space<vmem>>, vector<1x512xf32>
    %14 = vector.broadcast %13 : vector<1x512xf32> to vector<32x512xf32>
    %15 = arith.addf %12, %14 : vector<32x512xf32>
    %c0_15 = arith.constant 0 : index
    %c0_16 = arith.constant 0 : index
    %16 = vector.load %arg19[%c0_15, %c0_16] : memref<32x512xf32, #tpu.memory_space<vmem>>, vector<32x512xf32>
    tpu.vector_store %arg19[%c0_15, %c0_16], %15 {strides = array<i32>} : memref<32x512xf32, #tpu.memory_space<vmem>>, vector<32x512xf32>,
    %c0_17 = arith.constant 0 : index
    %c0_18 = arith.constant 0 : index
    %17 = vector.load %arg1[%c0_17, %c0_18] : memref<8x1xi32, #tpu.memory_space<vmem>>, vector<8x1xi32>
    %18 = vector.shape_cast %17 : vector<8x1xi32> to vector<8x1xi32>
    %19 = vector.broadcast %18 : vector<8x1xi32> to vector<8x128xi32>
    %c4_i32 = arith.constant 4 : i32
    %20 = arith.muli %arg0, %c4_i32 : i32
    %c1_i32 = arith.constant 1 : i32
    %21 = arith.subi %c1_i32, %arg0 : i32
    %c4_i32_19 = arith.constant 4 : i32
    %22 = arith.muli %21, %c4_i32_19 : i32
    %c0_20 = arith.constant 0 : index
    %c0_21 = arith.constant 0 : index
    %23 = vector.load %arg14[%c0_20, %c0_21] : memref<8x128xf32, #tpu.memory_space<vmem>>, vector<8x128xf32>
    %c0_22 = arith.constant 0 : index
    %c0_23 = arith.constant 0 : index
    %24 = vector.load %arg15[%c0_22, %c0_23] : memref<8x128xf32, #tpu.memory_space<vmem>>, vector<8x128xf32>
    %c0_24 = arith.constant 0 : index
    %c0_25 = arith.constant 0 : index
    %25 = vector.load %arg16[%c0_24, %c0_25] : memref<8x128xf32, #tpu.memory_space<vmem>>, vector<8x128xf32>
    %c0_26 = arith.constant 0 : index
    %c0_27 = arith.constant 0 : index
    %26 = vector.load %arg17[%c0_26, %c0_27] : memref<8x128xf32, #tpu.memory_space<vmem>>, vector<8x128xf32>
    %c0_i32_28 = arith.constant 0 : i32
    %c8_i32 = arith.constant 8 : i32
    %27 = arith.muli %c0_i32_28, %c8_i32 : i32
    %28 = tpu.assume_multiple %27, 8 : i32
    %c3_i32 = arith.constant 3 : i32
    %29 = arith.subi %c3_i32, %c0_i32_28 : i32
    %c8_i32_29 = arith.constant 8 : i32
    %30 = arith.muli %29, %c8_i32_29 : i32
    %31 = tpu.assume_multiple %30, 8 : i32
    %32 = arith.index_cast %28 : i32 to index
    %c0_30 = arith.constant 0 : index
    %33 = vector.load %arg18[%32, %c0_30] : memref<32x512xf32, #tpu.memory_space<vmem>>, vector<8x512xf32>
    %c0_31 = arith.constant 0 : index
    %c0_32 = arith.constant 0 : index
    %34 = vector.load %arg8[%c0_31, %c0_32] : memref<128x512xf32, #tpu.memory_space<vmem>>, vector<128x512xf32>
    %cst_33 = arith.constant dense<0.000000e+00> : vector<8x512xf32>
    %35 = tpu.matmul %23, %34, %cst_33 {dimension_numbers = #tpu.dot_dimension_numbers<[1], [0], [0], [1], [0, 0, 1, 1], [], []>} : vector<8x128xf32>, vector<128x512xf32>, vector<8x512xf32> -> vector<8x512xf32>
    %36 = arith.addf %33, %35 : vector<8x512xf32>
    %37 = arith.index_cast %31 : i32 to index
    %c0_34 = arith.constant 0 : index
    %38 = vector.load %arg19[%37, %c0_34] : memref<32x512xf32, #tpu.memory_space<vmem>>, vector<8x512xf32>
    %c0_35 = arith.constant 0 : index
    %c0_36 = arith.constant 0 : index
    %39 = vector.load %arg9[%c0_35, %c0_36] : memref<128x512xf32, #tpu.memory_space<vmem>>, vector<128x512xf32>
    %cst_37 = arith.constant dense<0.000000e+00> : vector<8x512xf32>
    %40 = tpu.matmul %25, %39, %cst_37 {dimension_numbers = #tpu.dot_dimension_numbers<[1], [0], [0], [1], [0, 0, 1, 1], [], []>} : vector<8x128xf32>, vector<128x512xf32>, vector<8x512xf32> -> vector<8x512xf32>
    %41 = arith.addf %38, %40 : vector<8x512xf32>
    %42 = arith.addi %20, %c0_i32_28 : i32
    %43 = vector.broadcast %42 : i32 to vector<8x128xi32>
    %44 = arith.cmpi slt, %43, %19 : vector<8x128xi32>
    %45 = vector.extract_strided_slice %36 {offsets = [0, 0], sizes = [8, 128], strides = [1, 1]} : vector<8x512xf32> to vector<8x128xf32>
    %cst_38 = arith.constant 5.000000e-01 : f32
    %46 = vector.broadcast %cst_38 : f32 to vector<8x128xf32>
    %47 = arith.mulf %46, %45 : vector<8x128xf32>
    %48 = math.tanh %47 : vector<8x128xf32>
    %cst_39 = arith.constant 1.000000e+00 : f32
    %49 = vector.broadcast %cst_39 : f32 to vector<8x128xf32>
    %50 = arith.addf %48, %49 : vector<8x128xf32>
    %cst_40 = arith.constant 5.000000e-01 : f32
    %51 = vector.broadcast %cst_40 : f32 to vector<8x128xf32>
    %52 = arith.mulf %51, %50 : vector<8x128xf32>
    %53 = vector.extract_strided_slice %36 {offsets = [0, 128], sizes = [8, 128], strides = [1, 1]} : vector<8x512xf32> to vector<8x128xf32>
    %cst_41 = arith.constant 5.000000e-01 : f32
    %54 = vector.broadcast %cst_41 : f32 to vector<8x128xf32>
    %55 = arith.mulf %54, %53 : vector<8x128xf32>
    %56 = math.tanh %55 : vector<8x128xf32>
    %cst_42 = arith.constant 1.000000e+00 : f32
    %57 = vector.broadcast %cst_42 : f32 to vector<8x128xf32>
    %58 = arith.addf %56, %57 : vector<8x128xf32>
    %cst_43 = arith.constant 5.000000e-01 : f32
    %59 = vector.broadcast %cst_43 : f32 to vector<8x128xf32>
    %60 = arith.mulf %59, %58 : vector<8x128xf32>
    %61 = vector.extract_strided_slice %36 {offsets = [0, 256], sizes = [8, 128], strides = [1, 1]} : vector<8x512xf32> to vector<8x128xf32>
    %62 = math.tanh %61 : vector<8x128xf32>
    %63 = vector.extract_strided_slice %36 {offsets = [0, 384], sizes = [8, 128], strides = [1, 1]} : vector<8x512xf32> to vector<8x128xf32>
    %cst_44 = arith.constant 5.000000e-01 : f32
    %64 = vector.broadcast %cst_44 : f32 to vector<8x128xf32>
    %65 = arith.mulf %64, %63 : vector<8x128xf32>
    %66 = math.tanh %65 : vector<8x128xf32>
    %cst_45 = arith.constant 1.000000e+00 : f32
    %67 = vector.broadcast %cst_45 : f32 to vector<8x128xf32>
    %68 = arith.addf %66, %67 : vector<8x128xf32>
    %cst_46 = arith.constant 5.000000e-01 : f32
    %69 = vector.broadcast %cst_46 : f32 to vector<8x128xf32>
    %70 = arith.mulf %69, %68 : vector<8x128xf32>
    %71 = arith.mulf %60, %24 : vector<8x128xf32>
    %72 = arith.mulf %52, %62 : vector<8x128xf32>
    %73 = arith.addf %71, %72 : vector<8x128xf32>
    %74 = math.tanh %73 : vector<8x128xf32>
    %75 = arith.mulf %70, %74 : vector<8x128xf32>
    %76 = arith.select %44, %75, %23 : vector<8x128xi1>, vector<8x128xf32>
    %77 = arith.select %44, %73, %24 : vector<8x128xi1>, vector<8x128xf32>
    %c3_i32_47 = arith.constant 3 : i32
    %78 = arith.subi %c3_i32_47, %c0_i32_28 : i32
    %79 = arith.addi %22, %78 : i32
    %80 = vector.broadcast %79 : i32 to vector<8x128xi32>
    %81 = arith.cmpi slt, %80, %19 : vector<8x128xi32>
    %82 = vector.extract_strided_slice %41 {offsets = [0, 0], sizes = [8, 128], strides = [1, 1]} : vector<8x512xf32> to vector<8x128xf32>
    %cst_48 = arith.constant 5.000000e-01 : f32
    %83 = vector.broadcast %cst_48 : f32 to vector<8x128xf32>
    %84 = arith.mulf %83, %82 : vector<8x128xf32>
    %85 = math.tanh %84 : vector<8x128xf32>
    %cst_49 = arith.constant 1.000000e+00 : f32
    %86 = vector.broadcast %cst_49 : f32 to vector<8x128xf32>
    %87 = arith.addf %85, %86 : vector<8x128xf32>
    %cst_50 = arith.constant 5.000000e-01 : f32
    %88 = vector.broadcast %cst_50 : f32 to vector<8x128xf32>
    %89 = arith.mulf %88, %87 : vector<8x128xf32>
    %90 = vector.extract_strided_slice %41 {offsets = [0, 128], sizes = [8, 128], strides = [1, 1]} : vector<8x512xf32> to vector<8x128xf32>
    %cst_51 = arith.constant 5.000000e-01 : f32
    %91 = vector.broadcast %cst_51 : f32 to vector<8x128xf32>
    %92 = arith.mulf %91, %90 : vector<8x128xf32>
    %93 = math.tanh %92 : vector<8x128xf32>
    %cst_52 = arith.constant 1.000000e+00 : f32
    %94 = vector.broadcast %cst_52 : f32 to vector<8x128xf32>
    %95 = arith.addf %93, %94 : vector<8x128xf32>
    %cst_53 = arith.constant 5.000000e-01 : f32
    %96 = vector.broadcast %cst_53 : f32 to vector<8x128xf32>
    %97 = arith.mulf %96, %95 : vector<8x128xf32>
    %98 = vector.extract_strided_slice %41 {offsets = [0, 256], sizes = [8, 128], strides = [1, 1]} : vector<8x512xf32> to vector<8x128xf32>
    %99 = math.tanh %98 : vector<8x128xf32>
    %100 = vector.extract_strided_slice %41 {offsets = [0, 384], sizes = [8, 128], strides = [1, 1]} : vector<8x512xf32> to vector<8x128xf32>
    %cst_54 = arith.constant 5.000000e-01 : f32
    %101 = vector.broadcast %cst_54 : f32 to vector<8x128xf32>
    %102 = arith.mulf %101, %100 : vector<8x128xf32>
    %103 = math.tanh %102 : vector<8x128xf32>
    %cst_55 = arith.constant 1.000000e+00 : f32
    %104 = vector.broadcast %cst_55 : f32 to vector<8x128xf32>
    %105 = arith.addf %103, %104 : vector<8x128xf32>
    %cst_56 = arith.constant 5.000000e-01 : f32
    %106 = vector.broadcast %cst_56 : f32 to vector<8x128xf32>
    %107 = arith.mulf %106, %105 : vector<8x128xf32>
    %108 = arith.mulf %97, %26 : vector<8x128xf32>
    %109 = arith.mulf %89, %99 : vector<8x128xf32>
    %110 = arith.addf %108, %109 : vector<8x128xf32>
    %111 = math.tanh %110 : vector<8x128xf32>
    %112 = arith.mulf %107, %111 : vector<8x128xf32>
    %113 = arith.select %81, %112, %25 : vector<8x128xi1>, vector<8x128xf32>
    %114 = arith.select %81, %110, %26 : vector<8x128xi1>, vector<8x128xf32>
    %c1_i32_57 = arith.constant 1 : i32
    %c8_i32_58 = arith.constant 8 : i32
    %115 = arith.muli %c1_i32_57, %c8_i32_58 : i32
    %116 = tpu.assume_multiple %115, 8 : i32
    %c3_i32_59 = arith.constant 3 : i32
    %117 = arith.subi %c3_i32_59, %c1_i32_57 : i32
    %c8_i32_60 = arith.constant 8 : i32
    %118 = arith.muli %117, %c8_i32_60 : i32
    %119 = tpu.assume_multiple %118, 8 : i32
    %120 = arith.index_cast %116 : i32 to index
    %c0_61 = arith.constant 0 : index
    %121 = vector.load %arg18[%120, %c0_61] : memref<32x512xf32, #tpu.memory_space<vmem>>, vector<8x512xf32>
    %c0_62 = arith.constant 0 : index
    %c0_63 = arith.constant 0 : index
    %122 = vector.load %arg8[%c0_62, %c0_63] : memref<128x512xf32, #tpu.memory_space<vmem>>, vector<128x512xf32>
    %cst_64 = arith.constant dense<0.000000e+00> : vector<8x512xf32>
    %123 = tpu.matmul %76, %122, %cst_64 {dimension_numbers = #tpu.dot_dimension_numbers<[1], [0], [0], [1], [0, 0, 1, 1], [], []>} : vector<8x128xf32>, vector<128x512xf32>, vector<8x512xf32> -> vector<8x512xf32>
    %124 = arith.addf %121, %123 : vector<8x512xf32>
    %125 = arith.index_cast %119 : i32 to index
    %c0_65 = arith.constant 0 : index
    %126 = vector.load %arg19[%125, %c0_65] : memref<32x512xf32, #tpu.memory_space<vmem>>, vector<8x512xf32>
    %c0_66 = arith.constant 0 : index
    %c0_67 = arith.constant 0 : index
    %127 = vector.load %arg9[%c0_66, %c0_67] : memref<128x512xf32, #tpu.memory_space<vmem>>, vector<128x512xf32>
    %cst_68 = arith.constant dense<0.000000e+00> : vector<8x512xf32>
    %128 = tpu.matmul %113, %127, %cst_68 {dimension_numbers = #tpu.dot_dimension_numbers<[1], [0], [0], [1], [0, 0, 1, 1], [], []>} : vector<8x128xf32>, vector<128x512xf32>, vector<8x512xf32> -> vector<8x512xf32>
    %129 = arith.addf %126, %128 : vector<8x512xf32>
    %130 = arith.addi %20, %c1_i32_57 : i32
    %131 = vector.broadcast %130 : i32 to vector<8x128xi32>
    %132 = arith.cmpi slt, %131, %19 : vector<8x128xi32>
    %133 = vector.extract_strided_slice %124 {offsets = [0, 0], sizes = [8, 128], strides = [1, 1]} : vector<8x512xf32> to vector<8x128xf32>
    %cst_69 = arith.constant 5.000000e-01 : f32
    %134 = vector.broadcast %cst_69 : f32 to vector<8x128xf32>
    %135 = arith.mulf %134, %133 : vector<8x128xf32>
    %136 = math.tanh %135 : vector<8x128xf32>
    %cst_70 = arith.constant 1.000000e+00 : f32
    %137 = vector.broadcast %cst_70 : f32 to vector<8x128xf32>
    %138 = arith.addf %136, %137 : vector<8x128xf32>
    %cst_71 = arith.constant 5.000000e-01 : f32
    %139 = vector.broadcast %cst_71 : f32 to vector<8x128xf32>
    %140 = arith.mulf %139, %138 : vector<8x128xf32>
    %141 = vector.extract_strided_slice %124 {offsets = [0, 128], sizes = [8, 128], strides = [1, 1]} : vector<8x512xf32> to vector<8x128xf32>
    %cst_72 = arith.constant 5.000000e-01 : f32
    %142 = vector.broadcast %cst_72 : f32 to vector<8x128xf32>
    %143 = arith.mulf %142, %141 : vector<8x128xf32>
    %144 = math.tanh %143 : vector<8x128xf32>
    %cst_73 = arith.constant 1.000000e+00 : f32
    %145 = vector.broadcast %cst_73 : f32 to vector<8x128xf32>
    %146 = arith.addf %144, %145 : vector<8x128xf32>
    %cst_74 = arith.constant 5.000000e-01 : f32
    %147 = vector.broadcast %cst_74 : f32 to vector<8x128xf32>
    %148 = arith.mulf %147, %146 : vector<8x128xf32>
    %149 = vector.extract_strided_slice %124 {offsets = [0, 256], sizes = [8, 128], strides = [1, 1]} : vector<8x512xf32> to vector<8x128xf32>
    %150 = math.tanh %149 : vector<8x128xf32>
    %151 = vector.extract_strided_slice %124 {offsets = [0, 384], sizes = [8, 128], strides = [1, 1]} : vector<8x512xf32> to vector<8x128xf32>
    %cst_75 = arith.constant 5.000000e-01 : f32
    %152 = vector.broadcast %cst_75 : f32 to vector<8x128xf32>
    %153 = arith.mulf %152, %151 : vector<8x128xf32>
    %154 = math.tanh %153 : vector<8x128xf32>
    %cst_76 = arith.constant 1.000000e+00 : f32
    %155 = vector.broadcast %cst_76 : f32 to vector<8x128xf32>
    %156 = arith.addf %154, %155 : vector<8x128xf32>
    %cst_77 = arith.constant 5.000000e-01 : f32
    %157 = vector.broadcast %cst_77 : f32 to vector<8x128xf32>
    %158 = arith.mulf %157, %156 : vector<8x128xf32>
    %159 = arith.mulf %148, %77 : vector<8x128xf32>
    %160 = arith.mulf %140, %150 : vector<8x128xf32>
    %161 = arith.addf %159, %160 : vector<8x128xf32>
    %162 = math.tanh %161 : vector<8x128xf32>
    %163 = arith.mulf %158, %162 : vector<8x128xf32>
    %164 = arith.select %132, %163, %76 : vector<8x128xi1>, vector<8x128xf32>
    %165 = arith.select %132, %161, %77 : vector<8x128xi1>, vector<8x128xf32>
    %c3_i32_78 = arith.constant 3 : i32
    %166 = arith.subi %c3_i32_78, %c1_i32_57 : i32
    %167 = arith.addi %22, %166 : i32
    %168 = vector.broadcast %167 : i32 to vector<8x128xi32>
    %169 = arith.cmpi slt, %168, %19 : vector<8x128xi32>
    %170 = vector.extract_strided_slice %129 {offsets = [0, 0], sizes = [8, 128], strides = [1, 1]} : vector<8x512xf32> to vector<8x128xf32>
    %cst_79 = arith.constant 5.000000e-01 : f32
    %171 = vector.broadcast %cst_79 : f32 to vector<8x128xf32>
    %172 = arith.mulf %171, %170 : vector<8x128xf32>
    %173 = math.tanh %172 : vector<8x128xf32>
    %cst_80 = arith.constant 1.000000e+00 : f32
    %174 = vector.broadcast %cst_80 : f32 to vector<8x128xf32>
    %175 = arith.addf %173, %174 : vector<8x128xf32>
    %cst_81 = arith.constant 5.000000e-01 : f32
    %176 = vector.broadcast %cst_81 : f32 to vector<8x128xf32>
    %177 = arith.mulf %176, %175 : vector<8x128xf32>
    %178 = vector.extract_strided_slice %129 {offsets = [0, 128], sizes = [8, 128], strides = [1, 1]} : vector<8x512xf32> to vector<8x128xf32>
    %cst_82 = arith.constant 5.000000e-01 : f32
    %179 = vector.broadcast %cst_82 : f32 to vector<8x128xf32>
    %180 = arith.mulf %179, %178 : vector<8x128xf32>
    %181 = math.tanh %180 : vector<8x128xf32>
    %cst_83 = arith.constant 1.000000e+00 : f32
    %182 = vector.broadcast %cst_83 : f32 to vector<8x128xf32>
    %183 = arith.addf %181, %182 : vector<8x128xf32>
    %cst_84 = arith.constant 5.000000e-01 : f32
    %184 = vector.broadcast %cst_84 : f32 to vector<8x128xf32>
    %185 = arith.mulf %184, %183 : vector<8x128xf32>
    %186 = vector.extract_strided_slice %129 {offsets = [0, 256], sizes = [8, 128], strides = [1, 1]} : vector<8x512xf32> to vector<8x128xf32>
    %187 = math.tanh %186 : vector<8x128xf32>
    %188 = vector.extract_strided_slice %129 {offsets = [0, 384], sizes = [8, 128], strides = [1, 1]} : vector<8x512xf32> to vector<8x128xf32>
    %cst_85 = arith.constant 5.000000e-01 : f32
    %189 = vector.broadcast %cst_85 : f32 to vector<8x128xf32>
    %190 = arith.mulf %189, %188 : vector<8x128xf32>
    %191 = math.tanh %190 : vector<8x128xf32>
    %cst_86 = arith.constant 1.000000e+00 : f32
    %192 = vector.broadcast %cst_86 : f32 to vector<8x128xf32>
    %193 = arith.addf %191, %192 : vector<8x128xf32>
    %cst_87 = arith.constant 5.000000e-01 : f32
    %194 = vector.broadcast %cst_87 : f32 to vector<8x128xf32>
    %195 = arith.mulf %194, %193 : vector<8x128xf32>
    %196 = arith.mulf %185, %114 : vector<8x128xf32>
    %197 = arith.mulf %177, %187 : vector<8x128xf32>
    %198 = arith.addf %196, %197 : vector<8x128xf32>
    %199 = math.tanh %198 : vector<8x128xf32>
    %200 = arith.mulf %195, %199 : vector<8x128xf32>
    %201 = arith.select %169, %200, %113 : vector<8x128xi1>, vector<8x128xf32>
    %202 = arith.select %169, %198, %114 : vector<8x128xi1>, vector<8x128xf32>
    %c2_i32 = arith.constant 2 : i32
    %c8_i32_88 = arith.constant 8 : i32
    %203 = arith.muli %c2_i32, %c8_i32_88 : i32
    %204 = tpu.assume_multiple %203, 8 : i32
    %c3_i32_89 = arith.constant 3 : i32
    %205 = arith.subi %c3_i32_89, %c2_i32 : i32
    %c8_i32_90 = arith.constant 8 : i32
    %206 = arith.muli %205, %c8_i32_90 : i32
    %207 = tpu.assume_multiple %206, 8 : i32
    %208 = arith.index_cast %204 : i32 to index
    %c0_91 = arith.constant 0 : index
    %209 = vector.load %arg18[%208, %c0_91] : memref<32x512xf32, #tpu.memory_space<vmem>>, vector<8x512xf32>
    %c0_92 = arith.constant 0 : index
    %c0_93 = arith.constant 0 : index
    %210 = vector.load %arg8[%c0_92, %c0_93] : memref<128x512xf32, #tpu.memory_space<vmem>>, vector<128x512xf32>
    %cst_94 = arith.constant dense<0.000000e+00> : vector<8x512xf32>
    %211 = tpu.matmul %164, %210, %cst_94 {dimension_numbers = #tpu.dot_dimension_numbers<[1], [0], [0], [1], [0, 0, 1, 1], [], []>} : vector<8x128xf32>, vector<128x512xf32>, vector<8x512xf32> -> vector<8x512xf32>
    %212 = arith.addf %209, %211 : vector<8x512xf32>
    %213 = arith.index_cast %207 : i32 to index
    %c0_95 = arith.constant 0 : index
    %214 = vector.load %arg19[%213, %c0_95] : memref<32x512xf32, #tpu.memory_space<vmem>>, vector<8x512xf32>
    %c0_96 = arith.constant 0 : index
    %c0_97 = arith.constant 0 : index
    %215 = vector.load %arg9[%c0_96, %c0_97] : memref<128x512xf32, #tpu.memory_space<vmem>>, vector<128x512xf32>
    %cst_98 = arith.constant dense<0.000000e+00> : vector<8x512xf32>
    %216 = tpu.matmul %201, %215, %cst_98 {dimension_numbers = #tpu.dot_dimension_numbers<[1], [0], [0], [1], [0, 0, 1, 1], [], []>} : vector<8x128xf32>, vector<128x512xf32>, vector<8x512xf32> -> vector<8x512xf32>
    %217 = arith.addf %214, %216 : vector<8x512xf32>
    %218 = arith.addi %20, %c2_i32 : i32
    %219 = vector.broadcast %218 : i32 to vector<8x128xi32>
    %220 = arith.cmpi slt, %219, %19 : vector<8x128xi32>
    %221 = vector.extract_strided_slice %212 {offsets = [0, 0], sizes = [8, 128], strides = [1, 1]} : vector<8x512xf32> to vector<8x128xf32>
    %cst_99 = arith.constant 5.000000e-01 : f32
    %222 = vector.broadcast %cst_99 : f32 to vector<8x128xf32>
    %223 = arith.mulf %222, %221 : vector<8x128xf32>
    %224 = math.tanh %223 : vector<8x128xf32>
    %cst_100 = arith.constant 1.000000e+00 : f32
    %225 = vector.broadcast %cst_100 : f32 to vector<8x128xf32>
    %226 = arith.addf %224, %225 : vector<8x128xf32>
    %cst_101 = arith.constant 5.000000e-01 : f32
    %227 = vector.broadcast %cst_101 : f32 to vector<8x128xf32>
    %228 = arith.mulf %227, %226 : vector<8x128xf32>
    %229 = vector.extract_strided_slice %212 {offsets = [0, 128], sizes = [8, 128], strides = [1, 1]} : vector<8x512xf32> to vector<8x128xf32>
    %cst_102 = arith.constant 5.000000e-01 : f32
    %230 = vector.broadcast %cst_102 : f32 to vector<8x128xf32>
    %231 = arith.mulf %230, %229 : vector<8x128xf32>
    %232 = math.tanh %231 : vector<8x128xf32>
    %cst_103 = arith.constant 1.000000e+00 : f32
    %233 = vector.broadcast %cst_103 : f32 to vector<8x128xf32>
    %234 = arith.addf %232, %233 : vector<8x128xf32>
    %cst_104 = arith.constant 5.000000e-01 : f32
    %235 = vector.broadcast %cst_104 : f32 to vector<8x128xf32>
    %236 = arith.mulf %235, %234 : vector<8x128xf32>
    %237 = vector.extract_strided_slice %212 {offsets = [0, 256], sizes = [8, 128], strides = [1, 1]} : vector<8x512xf32> to vector<8x128xf32>
    %238 = math.tanh %237 : vector<8x128xf32>
    %239 = vector.extract_strided_slice %212 {offsets = [0, 384], sizes = [8, 128], strides = [1, 1]} : vector<8x512xf32> to vector<8x128xf32>
    %cst_105 = arith.constant 5.000000e-01 : f32
    %240 = vector.broadcast %cst_105 : f32 to vector<8x128xf32>
    %241 = arith.mulf %240, %239 : vector<8x128xf32>
    %242 = math.tanh %241 : vector<8x128xf32>
    %cst_106 = arith.constant 1.000000e+00 : f32
    %243 = vector.broadcast %cst_106 : f32 to vector<8x128xf32>
    %244 = arith.addf %242, %243 : vector<8x128xf32>
    %cst_107 = arith.constant 5.000000e-01 : f32
    %245 = vector.broadcast %cst_107 : f32 to vector<8x128xf32>
    %246 = arith.mulf %245, %244 : vector<8x128xf32>
    %247 = arith.mulf %236, %165 : vector<8x128xf32>
    %248 = arith.mulf %228, %238 : vector<8x128xf32>
    %249 = arith.addf %247, %248 : vector<8x128xf32>
    %250 = math.tanh %249 : vector<8x128xf32>
    %251 = arith.mulf %246, %250 : vector<8x128xf32>
    %252 = arith.select %220, %251, %164 : vector<8x128xi1>, vector<8x128xf32>
    %253 = arith.select %220, %249, %165 : vector<8x128xi1>, vector<8x128xf32>
    %c3_i32_108 = arith.constant 3 : i32
    %254 = arith.subi %c3_i32_108, %c2_i32 : i32
    %255 = arith.addi %22, %254 : i32
    %256 = vector.broadcast %255 : i32 to vector<8x128xi32>
    %257 = arith.cmpi slt, %256, %19 : vector<8x128xi32>
    %258 = vector.extract_strided_slice %217 {offsets = [0, 0], sizes = [8, 128], strides = [1, 1]} : vector<8x512xf32> to vector<8x128xf32>
    %cst_109 = arith.constant 5.000000e-01 : f32
    %259 = vector.broadcast %cst_109 : f32 to vector<8x128xf32>
    %260 = arith.mulf %259, %258 : vector<8x128xf32>
    %261 = math.tanh %260 : vector<8x128xf32>
    %cst_110 = arith.constant 1.000000e+00 : f32
    %262 = vector.broadcast %cst_110 : f32 to vector<8x128xf32>
    %263 = arith.addf %261, %262 : vector<8x128xf32>
    %cst_111 = arith.constant 5.000000e-01 : f32
    %264 = vector.broadcast %cst_111 : f32 to vector<8x128xf32>
    %265 = arith.mulf %264, %263 : vector<8x128xf32>
    %266 = vector.extract_strided_slice %217 {offsets = [0, 128], sizes = [8, 128], strides = [1, 1]} : vector<8x512xf32> to vector<8x128xf32>
    %cst_112 = arith.constant 5.000000e-01 : f32
    %267 = vector.broadcast %cst_112 : f32 to vector<8x128xf32>
    %268 = arith.mulf %267, %266 : vector<8x128xf32>
    %269 = math.tanh %268 : vector<8x128xf32>
    %cst_113 = arith.constant 1.000000e+00 : f32
    %270 = vector.broadcast %cst_113 : f32 to vector<8x128xf32>
    %271 = arith.addf %269, %270 : vector<8x128xf32>
    %cst_114 = arith.constant 5.000000e-01 : f32
    %272 = vector.broadcast %cst_114 : f32 to vector<8x128xf32>
    %273 = arith.mulf %272, %271 : vector<8x128xf32>
    %274 = vector.extract_strided_slice %217 {offsets = [0, 256], sizes = [8, 128], strides = [1, 1]} : vector<8x512xf32> to vector<8x128xf32>
    %275 = math.tanh %274 : vector<8x128xf32>
    %276 = vector.extract_strided_slice %217 {offsets = [0, 384], sizes = [8, 128], strides = [1, 1]} : vector<8x512xf32> to vector<8x128xf32>
    %cst_115 = arith.constant 5.000000e-01 : f32
    %277 = vector.broadcast %cst_115 : f32 to vector<8x128xf32>
    %278 = arith.mulf %277, %276 : vector<8x128xf32>
    %279 = math.tanh %278 : vector<8x128xf32>
    %cst_116 = arith.constant 1.000000e+00 : f32
    %280 = vector.broadcast %cst_116 : f32 to vector<8x128xf32>
    %281 = arith.addf %279, %280 : vector<8x128xf32>
    %cst_117 = arith.constant 5.000000e-01 : f32
    %282 = vector.broadcast %cst_117 : f32 to vector<8x128xf32>
    %283 = arith.mulf %282, %281 : vector<8x128xf32>
    %284 = arith.mulf %273, %202 : vector<8x128xf32>
    %285 = arith.mulf %265, %275 : vector<8x128xf32>
    %286 = arith.addf %284, %285 : vector<8x128xf32>
    %287 = math.tanh %286 : vector<8x128xf32>
    %288 = arith.mulf %283, %287 : vector<8x128xf32>
    %289 = arith.select %257, %288, %201 : vector<8x128xi1>, vector<8x128xf32>
    %290 = arith.select %257, %286, %202 : vector<8x128xi1>, vector<8x128xf32>
    %c3_i32_118 = arith.constant 3 : i32
    %c8_i32_119 = arith.constant 8 : i32
    %291 = arith.muli %c3_i32_118, %c8_i32_119 : i32
    %292 = tpu.assume_multiple %291, 8 : i32
    %c3_i32_120 = arith.constant 3 : i32
    %293 = arith.subi %c3_i32_120, %c3_i32_118 : i32
    %c8_i32_121 = arith.constant 8 : i32
    %294 = arith.muli %293, %c8_i32_121 : i32
    %295 = tpu.assume_multiple %294, 8 : i32
    %296 = arith.index_cast %292 : i32 to index
    %c0_122 = arith.constant 0 : index
    %297 = vector.load %arg18[%296, %c0_122] : memref<32x512xf32, #tpu.memory_space<vmem>>, vector<8x512xf32>
    %c0_123 = arith.constant 0 : index
    %c0_124 = arith.constant 0 : index
    %298 = vector.load %arg8[%c0_123, %c0_124] : memref<128x512xf32, #tpu.memory_space<vmem>>, vector<128x512xf32>
    %cst_125 = arith.constant dense<0.000000e+00> : vector<8x512xf32>
    %299 = tpu.matmul %252, %298, %cst_125 {dimension_numbers = #tpu.dot_dimension_numbers<[1], [0], [0], [1], [0, 0, 1, 1], [], []>} : vector<8x128xf32>, vector<128x512xf32>, vector<8x512xf32> -> vector<8x512xf32>
    %300 = arith.addf %297, %299 : vector<8x512xf32>
    %301 = arith.index_cast %295 : i32 to index
    %c0_126 = arith.constant 0 : index
    %302 = vector.load %arg19[%301, %c0_126] : memref<32x512xf32, #tpu.memory_space<vmem>>, vector<8x512xf32>
    %c0_127 = arith.constant 0 : index
    %c0_128 = arith.constant 0 : index
    %303 = vector.load %arg9[%c0_127, %c0_128] : memref<128x512xf32, #tpu.memory_space<vmem>>, vector<128x512xf32>
    %cst_129 = arith.constant dense<0.000000e+00> : vector<8x512xf32>
    %304 = tpu.matmul %289, %303, %cst_129 {dimension_numbers = #tpu.dot_dimension_numbers<[1], [0], [0], [1], [0, 0, 1, 1], [], []>} : vector<8x128xf32>, vector<128x512xf32>, vector<8x512xf32> -> vector<8x512xf32>
    %305 = arith.addf %302, %304 : vector<8x512xf32>
    %306 = arith.addi %20, %c3_i32_118 : i32
    %307 = vector.broadcast %306 : i32 to vector<8x128xi32>
    %308 = arith.cmpi slt, %307, %19 : vector<8x128xi32>
    %309 = vector.extract_strided_slice %300 {offsets = [0, 0], sizes = [8, 128], strides = [1, 1]} : vector<8x512xf32> to vector<8x128xf32>
    %cst_130 = arith.constant 5.000000e-01 : f32
    %310 = vector.broadcast %cst_130 : f32 to vector<8x128xf32>
    %311 = arith.mulf %310, %309 : vector<8x128xf32>
    %312 = math.tanh %311 : vector<8x128xf32>
    %cst_131 = arith.constant 1.000000e+00 : f32
    %313 = vector.broadcast %cst_131 : f32 to vector<8x128xf32>
    %314 = arith.addf %312, %313 : vector<8x128xf32>
    %cst_132 = arith.constant 5.000000e-01 : f32
    %315 = vector.broadcast %cst_132 : f32 to vector<8x128xf32>
    %316 = arith.mulf %315, %314 : vector<8x128xf32>
    %317 = vector.extract_strided_slice %300 {offsets = [0, 128], sizes = [8, 128], strides = [1, 1]} : vector<8x512xf32> to vector<8x128xf32>
    %cst_133 = arith.constant 5.000000e-01 : f32
    %318 = vector.broadcast %cst_133 : f32 to vector<8x128xf32>
    %319 = arith.mulf %318, %317 : vector<8x128xf32>
    %320 = math.tanh %319 : vector<8x128xf32>
    %cst_134 = arith.constant 1.000000e+00 : f32
    %321 = vector.broadcast %cst_134 : f32 to vector<8x128xf32>
    %322 = arith.addf %320, %321 : vector<8x128xf32>
    %cst_135 = arith.constant 5.000000e-01 : f32
    %323 = vector.broadcast %cst_135 : f32 to vector<8x128xf32>
    %324 = arith.mulf %323, %322 : vector<8x128xf32>
    %325 = vector.extract_strided_slice %300 {offsets = [0, 256], sizes = [8, 128], strides = [1, 1]} : vector<8x512xf32> to vector<8x128xf32>
    %326 = math.tanh %325 : vector<8x128xf32>
    %327 = vector.extract_strided_slice %300 {offsets = [0, 384], sizes = [8, 128], strides = [1, 1]} : vector<8x512xf32> to vector<8x128xf32>
    %cst_136 = arith.constant 5.000000e-01 : f32
    %328 = vector.broadcast %cst_136 : f32 to vector<8x128xf32>
    %329 = arith.mulf %328, %327 : vector<8x128xf32>
    %330 = math.tanh %329 : vector<8x128xf32>
    %cst_137 = arith.constant 1.000000e+00 : f32
    %331 = vector.broadcast %cst_137 : f32 to vector<8x128xf32>
    %332 = arith.addf %330, %331 : vector<8x128xf32>
    %cst_138 = arith.constant 5.000000e-01 : f32
    %333 = vector.broadcast %cst_138 : f32 to vector<8x128xf32>
    %334 = arith.mulf %333, %332 : vector<8x128xf32>
    %335 = arith.mulf %324, %253 : vector<8x128xf32>
    %336 = arith.mulf %316, %326 : vector<8x128xf32>
    %337 = arith.addf %335, %336 : vector<8x128xf32>
    %338 = math.tanh %337 : vector<8x128xf32>
    %339 = arith.mulf %334, %338 : vector<8x128xf32>
    %340 = arith.select %308, %339, %252 : vector<8x128xi1>, vector<8x128xf32>
    %341 = arith.select %308, %337, %253 : vector<8x128xi1>, vector<8x128xf32>
    %c3_i32_139 = arith.constant 3 : i32
    %342 = arith.subi %c3_i32_139, %c3_i32_118 : i32
    %343 = arith.addi %22, %342 : i32
    %344 = vector.broadcast %343 : i32 to vector<8x128xi32>
    %345 = arith.cmpi slt, %344, %19 : vector<8x128xi32>
    %346 = vector.extract_strided_slice %305 {offsets = [0, 0], sizes = [8, 128], strides = [1, 1]} : vector<8x512xf32> to vector<8x128xf32>
    %cst_140 = arith.constant 5.000000e-01 : f32
    %347 = vector.broadcast %cst_140 : f32 to vector<8x128xf32>
    %348 = arith.mulf %347, %346 : vector<8x128xf32>
    %349 = math.tanh %348 : vector<8x128xf32>
    %cst_141 = arith.constant 1.000000e+00 : f32
    %350 = vector.broadcast %cst_141 : f32 to vector<8x128xf32>
    %351 = arith.addf %349, %350 : vector<8x128xf32>
    %cst_142 = arith.constant 5.000000e-01 : f32
    %352 = vector.broadcast %cst_142 : f32 to vector<8x128xf32>
    %353 = arith.mulf %352, %351 : vector<8x128xf32>
    %354 = vector.extract_strided_slice %305 {offsets = [0, 128], sizes = [8, 128], strides = [1, 1]} : vector<8x512xf32> to vector<8x128xf32>
    %cst_143 = arith.constant 5.000000e-01 : f32
    %355 = vector.broadcast %cst_143 : f32 to vector<8x128xf32>
    %356 = arith.mulf %355, %354 : vector<8x128xf32>
    %357 = math.tanh %356 : vector<8x128xf32>
    %cst_144 = arith.constant 1.000000e+00 : f32
    %358 = vector.broadcast %cst_144 : f32 to vector<8x128xf32>
    %359 = arith.addf %357, %358 : vector<8x128xf32>
    %cst_145 = arith.constant 5.000000e-01 : f32
    %360 = vector.broadcast %cst_145 : f32 to vector<8x128xf32>
    %361 = arith.mulf %360, %359 : vector<8x128xf32>
    %362 = vector.extract_strided_slice %305 {offsets = [0, 256], sizes = [8, 128], strides = [1, 1]} : vector<8x512xf32> to vector<8x128xf32>
    %363 = math.tanh %362 : vector<8x128xf32>
    %364 = vector.extract_strided_slice %305 {offsets = [0, 384], sizes = [8, 128], strides = [1, 1]} : vector<8x512xf32> to vector<8x128xf32>
    %cst_146 = arith.constant 5.000000e-01 : f32
    %365 = vector.broadcast %cst_146 : f32 to vector<8x128xf32>
    %366 = arith.mulf %365, %364 : vector<8x128xf32>
    %367 = math.tanh %366 : vector<8x128xf32>
    %cst_147 = arith.constant 1.000000e+00 : f32
    %368 = vector.broadcast %cst_147 : f32 to vector<8x128xf32>
    %369 = arith.addf %367, %368 : vector<8x128xf32>
    %cst_148 = arith.constant 5.000000e-01 : f32
    %370 = vector.broadcast %cst_148 : f32 to vector<8x128xf32>
    %371 = arith.mulf %370, %369 : vector<8x128xf32>
    %372 = arith.mulf %361, %290 : vector<8x128xf32>
    %373 = arith.mulf %353, %363 : vector<8x128xf32>
    %374 = arith.addf %372, %373 : vector<8x128xf32>
    %375 = math.tanh %374 : vector<8x128xf32>
    %376 = arith.mulf %371, %375 : vector<8x128xf32>
    %377 = arith.select %345, %376, %289 : vector<8x128xi1>, vector<8x128xf32>
    %378 = arith.select %345, %374, %290 : vector<8x128xi1>, vector<8x128xf32>
    %c4_i32_149 = arith.constant 4 : i32
    %c0_150 = arith.constant 0 : index
    %c0_151 = arith.constant 0 : index
    %379 = vector.load %arg14[%c0_150, %c0_151] : memref<8x128xf32, #tpu.memory_space<vmem>>, vector<8x128xf32>
    tpu.vector_store %arg14[%c0_150, %c0_151], %340 {strides = array<i32>} : memref<8x128xf32, #tpu.memory_space<vmem>>, vector<8x128xf32>,
    %c0_152 = arith.constant 0 : index
    %c0_153 = arith.constant 0 : index
    %380 = vector.load %arg15[%c0_152, %c0_153] : memref<8x128xf32, #tpu.memory_space<vmem>>, vector<8x128xf32>
    tpu.vector_store %arg15[%c0_152, %c0_153], %341 {strides = array<i32>} : memref<8x128xf32, #tpu.memory_space<vmem>>, vector<8x128xf32>,
    %c0_154 = arith.constant 0 : index
    %c0_155 = arith.constant 0 : index
    %381 = vector.load %arg16[%c0_154, %c0_155] : memref<8x128xf32, #tpu.memory_space<vmem>>, vector<8x128xf32>
    tpu.vector_store %arg16[%c0_154, %c0_155], %377 {strides = array<i32>} : memref<8x128xf32, #tpu.memory_space<vmem>>, vector<8x128xf32>,
    %c0_156 = arith.constant 0 : index
    %c0_157 = arith.constant 0 : index
    %382 = vector.load %arg17[%c0_156, %c0_157] : memref<8x128xf32, #tpu.memory_space<vmem>>, vector<8x128xf32>
    tpu.vector_store %arg17[%c0_156, %c0_157], %378 {strides = array<i32>} : memref<8x128xf32, #tpu.memory_space<vmem>>, vector<8x128xf32>,
    %c1_i32_158 = arith.constant 1 : i32
    %383 = arith.cmpi eq, %arg0, %c1_i32_158 : i32
    %384 = arith.extui %383 : i1 to i32
    %c0_i32_159 = arith.constant 0 : i32
    %385 = arith.cmpi ne, %384, %c0_i32_159 : i32
    scf.if %385 {
      %c0_160 = arith.constant 0 : index
      %c0_161 = arith.constant 0 : index
      %386 = vector.load %arg10[%c0_160, %c0_161] : memref<128x128xf32, #tpu.memory_space<vmem>>, vector<128x128xf32>
      %cst_162 = arith.constant dense<0.000000e+00> : vector<8x128xf32>
      %387 = tpu.matmul %340, %386, %cst_162 {dimension_numbers = #tpu.dot_dimension_numbers<[1], [0], [0], [1], [0, 0, 1, 1], [], []>} : vector<8x128xf32>, vector<128x128xf32>, vector<8x128xf32> -> vector<8x128xf32>
      %c0_163 = arith.constant 0 : index
      %c0_164 = arith.constant 0 : index
      %388 = vector.load %arg11[%c0_163, %c0_164] : memref<128x128xf32, #tpu.memory_space<vmem>>, vector<128x128xf32>
      %cst_165 = arith.constant dense<0.000000e+00> : vector<8x128xf32>
      %389 = tpu.matmul %377, %388, %cst_165 {dimension_numbers = #tpu.dot_dimension_numbers<[1], [0], [0], [1], [0, 0, 1, 1], [], []>} : vector<8x128xf32>, vector<128x128xf32>, vector<8x128xf32> -> vector<8x128xf32>
      %390 = arith.addf %387, %389 : vector<8x128xf32>
      %c0_166 = arith.constant 0 : index
      %c0_167 = arith.constant 0 : index
      %391 = vector.load %arg12[%c0_166, %c0_167] : memref<1x128xf32, #tpu.memory_space<vmem>>, vector<1x128xf32>
      %392 = vector.broadcast %391 : vector<1x128xf32> to vector<8x128xf32>
      %393 = arith.addf %390, %392 : vector<8x128xf32>
      %c0_168 = arith.constant 0 : index
      %c0_169 = arith.constant 0 : index
      %394 = vector.load %arg13[%c0_168, %c0_169] : memref<8x128xf32, #tpu.memory_space<vmem>>, vector<8x128xf32>
      tpu.vector_store %arg13[%c0_168, %c0_169], %393 {strides = array<i32>} : memref<8x128xf32, #tpu.memory_space<vmem>>, vector<8x128xf32>,
    } else {
    }
    return
  }
  func.func @transform_0(%arg0: i32) -> (i32, i32) {
    %c0_i32 = arith.constant 0 : i32
    %c0_i32_0 = arith.constant 0 : i32
    %c0_i32_1 = arith.constant 0 : i32
    return %c0_i32, %c0_i32_0 : i32, i32
  }
  func.func @transform_1(%arg0: i32) -> (i32, i32) {
    %c0_i32 = arith.constant 0 : i32
    %c0_i32_0 = arith.constant 0 : i32
    return %arg0, %c0_i32 : i32, i32
  }
  func.func @transform_2(%arg0: i32) -> (i32, i32) {
    %c1_i32 = arith.constant 1 : i32
    %0 = arith.subi %c1_i32, %arg0 : i32
    %c0_i32 = arith.constant 0 : i32
    %c0_i32_0 = arith.constant 0 : i32
    return %0, %c0_i32 : i32, i32
  }
  func.func @transform_3(%arg0: i32) -> (i32, i32) {
    %c0_i32 = arith.constant 0 : i32
    %c0_i32_0 = arith.constant 0 : i32
    %c0_i32_1 = arith.constant 0 : i32
    return %c0_i32, %c0_i32_0 : i32, i32
  }
  func.func @transform_4(%arg0: i32) -> (i32, i32) {
    %c0_i32 = arith.constant 0 : i32
    %c0_i32_0 = arith.constant 0 : i32
    %c0_i32_1 = arith.constant 0 : i32
    return %c0_i32, %c0_i32_0 : i32, i32
  }
  func.func @transform_5(%arg0: i32) -> (i32, i32) {
    %c0_i32 = arith.constant 0 : i32
    %c0_i32_0 = arith.constant 0 : i32
    %c0_i32_1 = arith.constant 0 : i32
    return %c0_i32, %c0_i32_0 : i32, i32
  }
  func.func @transform_6(%arg0: i32) -> (i32, i32) {
    %c0_i32 = arith.constant 0 : i32
    %c0_i32_0 = arith.constant 0 : i32
    %c0_i32_1 = arith.constant 0 : i32
    return %c0_i32, %c0_i32_0 : i32, i32
  }
  func.func @transform_7(%arg0: i32) -> (i32, i32) {
    %c0_i32 = arith.constant 0 : i32
    %c0_i32_0 = arith.constant 0 : i32
    %c0_i32_1 = arith.constant 0 : i32
    return %c0_i32, %c0_i32_0 : i32, i32
  }
  func.func @transform_8(%arg0: i32) -> (i32, i32) {
    %c0_i32 = arith.constant 0 : i32
    %c0_i32_0 = arith.constant 0 : i32
    %c0_i32_1 = arith.constant 0 : i32
    return %c0_i32, %c0_i32_0 : i32, i32
  }
  func.func @transform_9(%arg0: i32) -> (i32, i32) {
    %c0_i32 = arith.constant 0 : i32
    %c0_i32_0 = arith.constant 0 : i32
    %c0_i32_1 = arith.constant 0 : i32
    return %c0_i32, %c0_i32_0 : i32, i32
  }
  func.func @transform_10(%arg0: i32) -> (i32, i32) {
    %c0_i32 = arith.constant 0 : i32
    %c0_i32_0 = arith.constant 0 : i32
    %c0_i32_1 = arith.constant 0 : i32
    return %c0_i32, %c0_i32_0 : i32, i32
  }
  func.func @transform_11(%arg0: i32) -> (i32, i32) {
    %c0_i32 = arith.constant 0 : i32
    %c0_i32_0 = arith.constant 0 : i32
    %c0_i32_1 = arith.constant 0 : i32
    return %c0_i32, %c0_i32_0 : i32, i32
  }
  func.func @transform_12(%arg0: i32) -> (i32, i32) {
    %c0_i32 = arith.constant 0 : i32
    %c0_i32_0 = arith.constant 0 : i32
    %c0_i32_1 = arith.constant 0 : i32
    return %c0_i32, %c0_i32_0 : i32, i32
  }
}

</mosaic_0001>

<bundles_post_ra>
// kernel: bilstm_forward.1
= control target key start
LH: loop header
LB: loop body
LE: loop exit
PB: predicated region body
PF: predicated region fallthrough
CT: control target
= control target key end

     0   :  { %s3862_s0 = inlined_call_operand.vmem [shape: s32[8,1], index: 0, kind: input, shape index: {}]   ;;  %s3863_s1 = inlined_call_operand.vmem [shape: f32[64,128], index: 1, kind: input, shape index: {}, may-alias: {1,2}]   ;;  %s3864_s2 = inlined_call_operand.vmem [shape: f32[64,128], index: 2, kind: input, shape index: {}, may-alias: {1,2}]   ;;  %s3865_s3 = inlined_call_operand.hbm [shape: f32[128,512], index: 3, kind: input, shape index: {}]   ;;  %s3866_s4 = inlined_call_operand.hbm [shape: f32[128,512], index: 4, kind: input, shape index: {}]   ;;  %s3867_s5 = inlined_call_operand.vmem [shape: f32[1,512], index: 5, kind: input, shape index: {}]   ;;  %s3868_s6 = inlined_call_operand.vmem [shape: f32[1,512], index: 6, kind: input, shape index: {}]   ;;  %s3869_s7 = inlined_call_operand.hbm [shape: f32[128,512], index: 7, kind: input, shape index: {}]   ;;  %s3870_s8 = inlined_call_operand.hbm [shape: f32[128,512], index: 8, kind: input, shape index: {}]   ;;  %s3871_s9 = inlined_call_operand.vmem [shape: f32[128,128], index: 9, kind: input, shape index: {}]   ;;  %s3872_s10 = inlined_call_operand.vmem [shape: f32[128,128], index: 10, kind: input, shape index: {}]   ;;  %s3873_s11 = inlined_call_operand.vmem [shape: f32[1,128], index: 11, kind: input, shape index: {}]   ;;  %s3874_s12 = inlined_call_operand.vmem [shape: f32[8,128], index: 12, kind: output, shape index: {}]  }
   0x1   :  { %4040 = sst [smem:[#allocation116_spill]] %s3865_s3 }
   0x2   :  { %17 = vsyncpa [#allocation9], 0 }
   0x3   :  { %18 = vsyncpa [#allocation11], 0 }
   0x4   :  { %19 = vsyncpa [#allocation14], 0  ;;  %s2641_s21 = smov 0  }
   0x5 LB: > { %s2647_s22 = sadd.s32 4294967295, %s2566_s21   ;;  %p2144_p0 = scmp.ge.s32.totalorder %s2566_s21, 1  ;;  %s2566_s21 = sphi %s2641_s21, %s25_s21  }
   0x6   : > { %p315_p1 = scmp.lt.s32.totalorder %s2566_s21, 3  ;;  %p2145_p2 = scmp.ne.s32.totalorder %s2647_s22, 0 }
   0x7   : > { %p2194_p3 = scmp.eq.s32.totalorder %s2647_s22, 0  ;;  %s343_s25 = sshll.u32 %s3866_s4, 4  ;;  %s344_s25 = int_to_ptr.hbm [resolvable:$true] %s343_s25 }
   0x8   : > { %p2656_p4 = pnand %p2144_p0, %p315_p1  ;;  %s4042_s3 = sld [smem:[#allocation116_spill]] }
   0x9   : > { %s2568_s30 = smov [#allocation10]   ;;  %s2569_s15 = smov [#allocation8]  }
   0xa   : > { %p2181_p5 = pneg %p2656_p4  ;;  %s345_s13 = sshll.u32 %s2568_s30, 4  ;;  %s346_s13 = int_to_ptr.vmem [resolvable:$true] %s345_s13 }
   0xb   : > { %s331_s16 = sshll.u32 %s2569_s15, 4  ;;  %s363_s19 = sshll.u32 %s3869_s7, 4  ;;  %s332_s16 = int_to_ptr.vmem [resolvable:$true] %s331_s16  ;;  %s364_s19 = int_to_ptr.hbm [resolvable:$true] %s363_s19 }
   0xc   : > { %p2667_p6 = pnand %p2194_p3, %p2181_p5  ;;  %s2570_s20 = smov 512  }
   0xd   : > { %s2571_s23 = smov 32   ;;  %s2572_s24 = smov [#allocation12]  }
   0xe   : > { %s329_s29 = sshll.u32 %s4042_s3, 4  ;;  %s365_s27 = sshll.u32 %s2572_s24, 4  ;;  %s330_s29 = int_to_ptr.hbm [resolvable:$true] %s329_s29  ;;  %s366_s27 = int_to_ptr.vmem [resolvable:$true] %s365_s27 }
   0xf   : > { %2187 = dma.hbm_to_vmem [thread:$0]  (!%p2667_p6), %s344_s25, 8192, %s346_s13, [#allocation11], %s2570_s20, %s2570_s20, %s2571_s23  }
  0x10   : > { %2184 = dma.hbm_to_vmem [thread:$0]  (!%p2667_p6), %s330_s29, 8192, %s332_s16, [#allocation9], %s2570_s20, %s2570_s20, %s2571_s23  }
  0x11   : > { %s377_s3 = sshll.u32 %s3870_s8, 4  ;;  %s2573_s15 = smov [#allocation13]   ;;  %s378_s3 = int_to_ptr.hbm [resolvable:$true] %s377_s3 }
  0x12   : > { %2190 = dma.hbm_to_vmem [thread:$0]  (!%p2667_p6), %s364_s19, 8192, %s366_s27, [#allocation11], %s2570_s20, %s2570_s20, %s2571_s23  }
  0x13   : > { %s379_s17 = sshll.u32 %s2573_s15, 4  ;;  %424 = sbr.rel (%p2656_p4) target bundleno = 1002 (0x3ea), region = 68  ;;  %s380_s17 = int_to_ptr.vmem [resolvable:$true] %s379_s17 }
  0x14   : > { %2193 = dma.hbm_to_vmem [thread:$0]  (!%p2667_p6), %s378_s3, 8192, %s380_s17, [#allocation14], %s2570_s20, %s2570_s20, %s2571_s23  }
  0x18   : > { %2553 = dma.done.wait (%p2194_p3), [#allocation9], 8192  }
  0x19   : > { %2555 = vsyncadd (%p2194_p3), [#allocation9], 4294959104 }
  0x1a   : > { %2557 = dma.done.wait (%p2194_p3), [#allocation11], 16384  }
  0x1b   : > { %2559 = vsyncadd (%p2194_p3), [#allocation11], 4294950912 }
  0x1c   : > { %2561 = dma.done.wait (%p2194_p3), [#allocation14], 8192  }
  0x1d   : > { %2563 = vsyncadd (%p2194_p3), [#allocation14], 4294959104  ;;  %s2700_s3 = sshll.u32 %s2647_s22, 2  ;;  %s489_s25 = ssub.s32 1, %s2647_s22 }
  0x1e   : > { %p484_p7 = scmp.lt.s32.totalorder %s2700_s3, 7  ;;  %s2704_s26 = sshll.u32 %s489_s25, 2 }
  0x1f   : > { %p491_p8 = scmp.lt.s32.totalorder %s2704_s26, 7 }
  0x20   : > { %s485_s29 = scalar_select %p484_p7, %s2700_s3, 7 }
  0x21   : > { %s492_s13 = scalar_select %p491_p8, %s2704_s26, 7 }
  0x22   : > { %s2156_s14 = sshll.u32 %s485_s29, 3  ;;  %500 = sbr.rel (%p2145_p2) target bundleno = 44 (0x2c), region = 88 }
  0x23   : > { %s2712_s19 = scalar_lea.vmem %s3863_s1, %s2156_s14  ;;  %s2158_s20 = sshll.u32 %s492_s13, 3 }
  0x24   : > { %s2717_s27 = scalar_lea.vmem %s3864_s2, %s2158_s20 }
  0x27   : > { %v2574_v0 = vmov 0.0  }
  0x28   : > { %501 = vst [vmem:[#allocation2] sm:$0xff] %v2574_v0 }
  0x29   : > { %502 = vst [vmem:[#allocation3] sm:$0xff] %v2574_v0 }
  0x2a   : > { %503 = vst [vmem:[#allocation4] sm:$0xff] %v2574_v0 }
  0x2b   : > { %504 = vst [vmem:[#allocation5] sm:$0xff] %v2574_v0 }
  0x2c PF: > { %v569_v1 = vld [vmem:[#allocation8 + $0x1e0] sm:$0xff]  ;;  %v570_v2 = vld [vmem:[#allocation8 + $0x1e8] sm:$0xff]  ;;  %v571_v3 = vld [vmem:[#allocation8 + $0x1f0] sm:$0xff]  ;;  %s1268_s13 = sadd.s32 3, %s2704_s26  ;;  %s1473_s14 = sadd.s32 1, %s2700_s3 }
  0x2d   : > { %583 = vmatpush.msra.mxu0 %v569_v1  ;;  %612 = vmatpush.msra.mxu1 %v570_v2  ;;  %v572_v4 = vld [vmem:[#allocation8 + $0x1f8] sm:$0xff]  ;;  %v565_v5 = vld [vmem:[#allocation8 + $0x1c0] sm:$0xff]  ;;  %v566_v6 = vld [vmem:[#allocation8 + $0x1c8] sm:$0xff]  ;;  %s1496_s16 = sadd.s32 2, %s2704_s26  ;;  %s1699_s18 = sadd.s32 2, %s2700_s3 }
  0x2e   : > { %641 = vmatpush.msra.mxu2 %v571_v3  ;;  %670 = vmatpush.msra.mxu3 %v572_v4  ;;  %v567_v7 = vld [vmem:[#allocation8 + $0x1d0] sm:$0xff]  ;;  %v568_v8 = vld [vmem:[#allocation8 + $0x1d8] sm:$0xff]  ;;  %v561_v9 = vld [vmem:[#allocation8 + $0x1a0] sm:$0xff]  ;;  %s1925_s20 = sadd.s32 3, %s2700_s3  ;;  %p2162_p9 = scmp.ne.s32.totalorder %s2647_s22, 1 }
  0x2f   : > { %584 = vmatpush.msra.mxu0 %v565_v5  ;;  %613 = vmatpush.msra.mxu1 %v566_v6  ;;  %v562_v10 = vld [vmem:[#allocation8 + $0x1a8] sm:$0xff]  ;;  %v563_v11 = vld [vmem:[#allocation8 + $0x1b0] sm:$0xff]  ;;  %v564_v12 = vld [vmem:[#allocation8 + $0x1b8] sm:$0xff] }
  0x30   : > { %642 = vmatpush.msra.mxu2 %v567_v7  ;;  %671 = vmatpush.msra.mxu3 %v568_v8  ;;  %v557_v13 = vld [vmem:[#allocation8 + $0x180] sm:$0xff]  ;;  %v558_v14 = vld [vmem:[#allocation8 + $0x188] sm:$0xff]  ;;  %v559_v15 = vld [vmem:[#allocation8 + $0x190] sm:$0xff] }
  0x31   : > { %585 = vmatpush.msra.mxu0 %v561_v9  ;;  %614 = vmatpush.msra.mxu1 %v562_v10  ;;  %v560_v16 = vld [vmem:[#allocation8 + $0x198] sm:$0xff]  ;;  %v553_v17 = vld [vmem:[#allocation8 + $0x160] sm:$0xff]  ;;  %v554_v18 = vld [vmem:[#allocation8 + $0x168] sm:$0xff] }
  0x32   : > { %643 = vmatpush.msra.mxu2 %v563_v11  ;;  %672 = vmatpush.msra.mxu3 %v564_v12  ;;  %v555_v19 = vld [vmem:[#allocation8 + $0x170] sm:$0xff]  ;;  %v556_v20 = vld [vmem:[#allocation8 + $0x178] sm:$0xff]  ;;  %v549_v21 = vld [vmem:[#allocation8 + $0x140] sm:$0xff] }
  0x33   : > { %586 = vmatpush.msra.mxu0 %v557_v13  ;;  %615 = vmatpush.msra.mxu1 %v558_v14  ;;  %v550_v22 = vld [vmem:[#allocation8 + $0x148] sm:$0xff]  ;;  %v551_v23 = vld [vmem:[#allocation8 + $0x150] sm:$0xff]  ;;  %v552_v24 = vld [vmem:[#allocation8 + $0x158] sm:$0xff] }
  0x34   : > { %644 = vmatpush.msra.mxu2 %v559_v15  ;;  %673 = vmatpush.msra.mxu3 %v560_v16  ;;  %v545_v25 = vld [vmem:[#allocation8 + $0x120] sm:$0xff]  ;;  %v546_v26 = vld [vmem:[#allocation8 + $0x128] sm:$0xff]  ;;  %v547_v27 = vld [vmem:[#allocation8 + $0x130] sm:$0xff] }
  0x35   : > { %587 = vmatpush.msra.mxu0 %v553_v17  ;;  %616 = vmatpush.msra.mxu1 %v554_v18  ;;  %v548_v28 = vld [vmem:[#allocation8 + $0x138] sm:$0xff]  ;;  %v541_v29 = vld [vmem:[#allocation8 + $0x100] sm:$0xff]  ;;  %v542_v30 = vld [vmem:[#allocation8 + $0x108] sm:$0xff] }
  0x36   : > { %645 = vmatpush.msra.mxu2 %v555_v19  ;;  %674 = vmatpush.msra.mxu3 %v556_v20  ;;  %v543_v31 = vld [vmem:[#allocation8 + $0x110] sm:$0xff]  ;;  %v544_v32 = vld [vmem:[#allocation8 + $0x118] sm:$0xff]  ;;  %v537_v33 = vld [vmem:[#allocation8 + $0xe0] sm:$0xff] }
  0x37   : > { %588 = vmatpush.msra.mxu0 %v549_v21  ;;  %617 = vmatpush.msra.mxu1 %v550_v22  ;;  %v538_v34 = vld [vmem:[#allocation8 + $0xe8] sm:$0xff]  ;;  %v539_v35 = vld [vmem:[#allocation8 + $0xf0] sm:$0xff]  ;;  %v540_v36 = vld [vmem:[#allocation8 + $0xf8] sm:$0xff] }
  0x38   : > { %646 = vmatpush.msra.mxu2 %v551_v23  ;;  %675 = vmatpush.msra.mxu3 %v552_v24  ;;  %v533_v37 = vld [vmem:[#allocation8 + $0xc0] sm:$0xff]  ;;  %v534_v38 = vld [vmem:[#allocation8 + $0xc8] sm:$0xff]  ;;  %v535_v39 = vld [vmem:[#allocation8 + $0xd0] sm:$0xff] }
  0x39   : > { %589 = vmatpush.msra.mxu0 %v545_v25  ;;  %618 = vmatpush.msra.mxu1 %v546_v26  ;;  %v536_v40 = vld [vmem:[#allocation8 + $0xd8] sm:$0xff]  ;;  %v529_v41 = vld [vmem:[#allocation8 + $0xa0] sm:$0xff]  ;;  %v530_v42 = vld [vmem:[#allocation8 + $0xa8] sm:$0xff] }
  0x3a   : > { %647 = vmatpush.msra.mxu2 %v547_v27  ;;  %676 = vmatpush.msra.mxu3 %v548_v28  ;;  %v531_v43 = vld [vmem:[#allocation8 + $0xb0] sm:$0xff]  ;;  %v532_v44 = vld [vmem:[#allocation8 + $0xb8] sm:$0xff]  ;;  %v525_v45 = vld [vmem:[#allocation8 + $0x80] sm:$0xff] }
  0x3b   : > { %590 = vmatpush.msra.mxu0 %v541_v29  ;;  %619 = vmatpush.msra.mxu1 %v542_v30  ;;  %v526_v46 = vld [vmem:[#allocation8 + $0x88] sm:$0xff]  ;;  %v527_v47 = vld [vmem:[#allocation8 + $0x90] sm:$0xff]  ;;  %v528_v48 = vld [vmem:[#allocation8 + $0x98] sm:$0xff] }
  0x3c   : > { %648 = vmatpush.msra.mxu2 %v543_v31  ;;  %677 = vmatpush.msra.mxu3 %v544_v32  ;;  %v521_v49 = vld [vmem:[#allocation8 + $0x60] sm:$0xff]  ;;  %v522_v50 = vld [vmem:[#allocation8 + $0x68] sm:$0xff]  ;;  %v523_v51 = vld [vmem:[#allocation8 + $0x70] sm:$0xff] }
  0x3d   : > { %591 = vmatpush.msra.mxu0 %v537_v33  ;;  %620 = vmatpush.msra.mxu1 %v538_v34  ;;  %v524_v52 = vld [vmem:[#allocation8 + $0x78] sm:$0xff]  ;;  %v517_v53 = vld [vmem:[#allocation8 + $0x40] sm:$0xff]  ;;  %v518_v54 = vld [vmem:[#allocation8 + $0x48] sm:$0xff] }
  0x3e   : > { %649 = vmatpush.msra.mxu2 %v539_v35  ;;  %678 = vmatpush.msra.mxu3 %v540_v36  ;;  %v519_v55 = vld [vmem:[#allocation8 + $0x50] sm:$0xff]  ;;  %v520_v56 = vld [vmem:[#allocation8 + $0x58] sm:$0xff]  ;;  %v513_v57 = vld [vmem:[#allocation8 + $0x20] sm:$0xff] }
  0x3f   : > { %592 = vmatpush.msra.mxu0 %v533_v37  ;;  %621 = vmatpush.msra.mxu1 %v534_v38  ;;  %v514_v58 = vld [vmem:[#allocation8 + $0x28] sm:$0xff]  ;;  %v515_v59 = vld [vmem:[#allocation8 + $0x30] sm:$0xff]  ;;  %v516_v60 = vld [vmem:[#allocation8 + $0x38] sm:$0xff] }
  0x40   : > { %650 = vmatpush.msra.mxu2 %v535_v39  ;;  %679 = vmatpush.msra.mxu3 %v536_v40  ;;  %v509_v61 = vld [vmem:[#allocation8] sm:$0xff]  ;;  %v510_v62 = vld [vmem:[#allocation8 + $0x8] sm:$0xff]  ;;  %v511_v63 = vld [vmem:[#allocation8 + $0x10] sm:$0xff] }
  0x41   : > { %593 = vmatpush.msra.mxu0 %v529_v41  ;;  %622 = vmatpush.msra.mxu1 %v530_v42  ;;  %v512_v0 = vld [vmem:[#allocation8 + $0x18] sm:$0xff]  ;;  %v505_v1 = vld [vmem:[%s2712_s19] sm:$0xff]  ;;  %v780_v3 = vld [vmem:[#allocation10 + $0x1e8] sm:$0xff] }
  0x42   : > { %651 = vmatpush.msra.mxu2 %v531_v43  ;;  %680 = vmatpush.msra.mxu3 %v532_v44  ;;  %v779_v2 = vld [vmem:[#allocation10 + $0x1e0] sm:$0xff]  ;;  %v781_v4 = vld [vmem:[#allocation10 + $0x1f0] sm:$0xff]  ;;  %v782_v5 = vld [vmem:[#allocation10 + $0x1f8] sm:$0xff] }
  0x43   : > { %594 = vmatpush.msra.mxu0 %v525_v45  ;;  %623 = vmatpush.msra.mxu1 %v526_v46  ;;  %v775_v6 = vld [vmem:[#allocation10 + $0x1c0] sm:$0xff]  ;;  %v776_v7 = vld [vmem:[#allocation10 + $0x1c8] sm:$0xff]  ;;  %v777_v8 = vld [vmem:[#allocation10 + $0x1d0] sm:$0xff] }
  0x44   : > { %652 = vmatpush.msra.mxu2 %v527_v47  ;;  %681 = vmatpush.msra.mxu3 %v528_v48  ;;  %v778_v9 = vld [vmem:[#allocation10 + $0x1d8] sm:$0xff]  ;;  %v771_v10 = vld [vmem:[#allocation10 + $0x1a0] sm:$0xff]  ;;  %v772_v11 = vld [vmem:[#allocation10 + $0x1a8] sm:$0xff] }
  0x45   : > { %595 = vmatpush.msra.mxu0 %v521_v49  ;;  %624 = vmatpush.msra.mxu1 %v522_v50  ;;  %v773_v12 = vld [vmem:[#allocation10 + $0x1b0] sm:$0xff]  ;;  %v774_v13 = vld [vmem:[#allocation10 + $0x1b8] sm:$0xff]  ;;  %v767_v14 = vld [vmem:[#allocation10 + $0x180] sm:$0xff] }
  0x46   : > { %653 = vmatpush.msra.mxu2 %v523_v51  ;;  %682 = vmatpush.msra.mxu3 %v524_v52  ;;  %v768_v15 = vld [vmem:[#allocation10 + $0x188] sm:$0xff]  ;;  %v769_v16 = vld [vmem:[#allocation10 + $0x190] sm:$0xff]  ;;  %v770_v17 = vld [vmem:[#allocation10 + $0x198] sm:$0xff] }
  0x47   : > { %596 = vmatpush.msra.mxu0 %v517_v53  ;;  %625 = vmatpush.msra.mxu1 %v518_v54  ;;  %v506_v18 = vld [vmem:[%s2712_s19 + $0x8] sm:$0xff]  ;;  %v763_v19 = vld [vmem:[#allocation10 + $0x160] sm:$0xff]  ;;  %v765_v21 = vld [vmem:[#allocation10 + $0x170] sm:$0xff] }
  0x48   : > { %654 = vmatpush.msra.mxu2 %v519_v55  ;;  %683 = vmatpush.msra.mxu3 %v520_v56  ;;  %v764_v20 = vld [vmem:[#allocation10 + $0x168] sm:$0xff]  ;;  %v766_v22 = vld [vmem:[#allocation10 + $0x178] sm:$0xff]  ;;  %v759_v23 = vld [vmem:[#allocation10 + $0x140] sm:$0xff] }
  0x49   : > { %597 = vmatpush.msra.mxu0 %v513_v57  ;;  %626 = vmatpush.msra.mxu1 %v514_v58  ;;  %v760_v24 = vld [vmem:[#allocation10 + $0x148] sm:$0xff]  ;;  %v761_v25 = vld [vmem:[#allocation10 + $0x150] sm:$0xff]  ;;  %v762_v26 = vld [vmem:[#allocation10 + $0x158] sm:$0xff] }
  0x4a   : > { %655 = vmatpush.msra.mxu2 %v515_v59  ;;  %684 = vmatpush.msra.mxu3 %v516_v60  ;;  %v755_v27 = vld [vmem:[#allocation10 + $0x120] sm:$0xff]  ;;  %v756_v28 = vld [vmem:[#allocation10 + $0x128] sm:$0xff]  ;;  %v757_v29 = vld [vmem:[#allocation10 + $0x130] sm:$0xff] }
  0x4b   : > { %598 = vmatpush.msra.mxu0 %v509_v61  ;;  %627 = vmatpush.msra.mxu1 %v510_v62  ;;  %v758_v30 = vld [vmem:[#allocation10 + $0x138] sm:$0xff]  ;;  %v751_v31 = vld [vmem:[#allocation10 + $0x100] sm:$0xff]  ;;  %v752_v32 = vld [vmem:[#allocation10 + $0x108] sm:$0xff] }
  0x4c   : > { %656 = vmatpush.msra.mxu2 %v511_v63  ;;  %685 = vmatpush.msra.mxu3 %v512_v0  ;;  %v753_v33 = vld [vmem:[#allocation10 + $0x110] sm:$0xff]  ;;  %v754_v34 = vld [vmem:[#allocation10 + $0x118] sm:$0xff]  ;;  %v747_v36 = vld [vmem:[#allocation10 + $0xe0] sm:$0xff] }
  0x4d   : > { %599 = vmatmul.f32.vlgmr.msra.gmra.mxu0 %v505_v1  ;;  %628 = vmatmul.f32.vlgmr.msra.gmra.mxu1 %v505_v1  ;;  %v507_v35 = vld [vmem:[%s2712_s19 + $0x10] sm:$0xff]  ;;  %v748_v37 = vld [vmem:[#allocation10 + $0xe8] sm:$0xff]  ;;  %v750_v39 = vld [vmem:[#allocation10 + $0xf8] sm:$0xff] }
  0x4e   : > { %657 = vmatmul.f32.vlgmr.msra.gmra.mxu2 %v505_v1  ;;  %686 = vmatmul.f32.vlgmr.msra.gmra.mxu3 %v505_v1  ;;  %v749_v38 = vld [vmem:[#allocation10 + $0xf0] sm:$0xff]  ;;  %v743_v40 = vld [vmem:[#allocation10 + $0xc0] sm:$0xff]  ;;  %v744_v41 = vld [vmem:[#allocation10 + $0xc8] sm:$0xff] }
  0x4f   : > { %793 = vmatpush.msrb.mxu0 %v779_v2  ;;  %822 = vmatpush.msrb.mxu1 %v780_v3  ;;  %v745_v42 = vld [vmem:[#allocation10 + $0xd0] sm:$0xff]  ;;  %v746_v43 = vld [vmem:[#allocation10 + $0xd8] sm:$0xff]  ;;  %v739_v44 = vld [vmem:[#allocation10 + $0xa0] sm:$0xff] }
  0x50   : > { %851 = vmatpush.msrb.mxu2 %v781_v4  ;;  %880 = vmatpush.msrb.mxu3 %v782_v5  ;;  %v740_v45 = vld [vmem:[#allocation10 + $0xa8] sm:$0xff]  ;;  %v741_v46 = vld [vmem:[#allocation10 + $0xb0] sm:$0xff]  ;;  %v742_v47 = vld [vmem:[#allocation10 + $0xb8] sm:$0xff] }
  0x51   : > { %794 = vmatpush.msrb.mxu0 %v775_v6  ;;  %823 = vmatpush.msrb.mxu1 %v776_v7  ;;  %v735_v48 = vld [vmem:[#allocation10 + $0x80] sm:$0xff]  ;;  %v736_v49 = vld [vmem:[#allocation10 + $0x88] sm:$0xff]  ;;  %v737_v50 = vld [vmem:[#allocation10 + $0x90] sm:$0xff] }
  0x52   : > { %852 = vmatpush.msrb.mxu2 %v777_v8  ;;  %881 = vmatpush.msrb.mxu3 %v778_v9  ;;  %v738_v51 = vld [vmem:[#allocation10 + $0x98] sm:$0xff]  ;;  %v731_v53 = vld [vmem:[#allocation10 + $0x60] sm:$0xff]  ;;  %v732_v54 = vld [vmem:[#allocation10 + $0x68] sm:$0xff] }
  0x53   : > { %795 = vmatpush.msrb.mxu0 %v771_v10  ;;  %824 = vmatpush.msrb.mxu1 %v772_v11  ;;  %v508_v52 = vld [vmem:[%s2712_s19 + $0x18] sm:$0xff]  ;;  %v733_v55 = vld [vmem:[#allocation10 + $0x70] sm:$0xff]  ;;  %v727_v57 = vld [vmem:[#allocation10 + $0x40] sm:$0xff]  ;;  %s1722_s19 = sadd.s32 1, %s2704_s26 }
  0x54   : > { %853 = vmatpush.msrb.mxu2 %v773_v12  ;;  %882 = vmatpush.msrb.mxu3 %v774_v13  ;;  %v734_v56 = vld [vmem:[#allocation10 + $0x78] sm:$0xff]  ;;  %v728_v58 = vld [vmem:[#allocation10 + $0x48] sm:$0xff]  ;;  %v729_v59 = vld [vmem:[#allocation10 + $0x50] sm:$0xff] }
  0x55   : > { %796 = vmatpush.msrb.mxu0 %v767_v14  ;;  %825 = vmatpush.msrb.mxu1 %v768_v15  ;;  %v730_v60 = vld [vmem:[#allocation10 + $0x58] sm:$0xff]  ;;  %v723_v61 = vld [vmem:[#allocation10 + $0x20] sm:$0xff]  ;;  %v724_v62 = vld [vmem:[#allocation10 + $0x28] sm:$0xff] }
  0x56   : > { %854 = vmatpush.msrb.mxu2 %v769_v16  ;;  %883 = vmatpush.msrb.mxu3 %v770_v17  ;;  %v725_v63 = vld [vmem:[#allocation10 + $0x30] sm:$0xff]  ;;  %v726_v0 = vld [vmem:[#allocation10 + $0x38] sm:$0xff]  ;;  %v719_v1 = vld [vmem:[#allocation10] sm:$0xff] }
  0x57   : > { %602 = vmatmul.f32.gmra.mxu0 %v506_v18  ;;  %631 = vmatmul.f32.gmra.mxu1 %v506_v18  ;;  %v720_v2 = vld [vmem:[#allocation10 + $0x8] sm:$0xff]  ;;  %v721_v3 = vld [vmem:[#allocation10 + $0x10] sm:$0xff]  ;;  %v722_v4 = vld [vmem:[#allocation10 + $0x18] sm:$0xff] }
  0x58   : > { %660 = vmatmul.f32.gmra.mxu2 %v506_v18  ;;  %689 = vmatmul.f32.gmra.mxu3 %v506_v18  ;;  %v2725_v5 = vld [vmem:[#allocation12 + $0x1e0] sm:$0xff]  ;;  %v2727_v6 = vld [vmem:[#allocation12 + $0x1e8] sm:$0xff]  ;;  %v2729_v7 = vld [vmem:[#allocation12 + $0x1f0] sm:$0xff] }
  0x59   : > { %797 = vmatpush.msrb.mxu0 %v763_v19  ;;  %826 = vmatpush.msrb.mxu1 %v764_v20  ;;  %v2731_v8 = vld [vmem:[#allocation12 + $0x1f8] sm:$0xff]  ;;  %v715_v9 = vld [vmem:[%s2717_s27] sm:$0xff]  ;;  %v2740_v11 = vld [vmem:[#allocation12 + $0x1c8] sm:$0xff] }
  0x5a   : > { %855 = vmatpush.msrb.mxu2 %v765_v21  ;;  %884 = vmatpush.msrb.mxu3 %v766_v22  ;;  %v2738_v10 = vld [vmem:[#allocation12 + $0x1c0] sm:$0xff]  ;;  %v2742_v12 = vld [vmem:[#allocation12 + $0x1d0] sm:$0xff]  ;;  %v2744_v13 = vld [vmem:[#allocation12 + $0x1d8] sm:$0xff] }
  0x5b   : > { %798 = vmatpush.msrb.mxu0 %v759_v23  ;;  %827 = vmatpush.msrb.mxu1 %v760_v24  ;;  %v2746_v14 = vld [vmem:[#allocation12 + $0x1a0] sm:$0xff]  ;;  %v2748_v15 = vld [vmem:[#allocation12 + $0x1a8] sm:$0xff]  ;;  %v2752_v16 = vld [vmem:[#allocation12 + $0x1b0] sm:$0xff] }
  0x5c   : > { %856 = vmatpush.msrb.mxu2 %v761_v25  ;;  %885 = vmatpush.msrb.mxu3 %v762_v26  ;;  %v2754_v17 = vld [vmem:[#allocation12 + $0x1b8] sm:$0xff]  ;;  %v2758_v18 = vld [vmem:[#allocation12 + $0x180] sm:$0xff]  ;;  %v2760_v19 = vld [vmem:[#allocation12 + $0x188] sm:$0xff] }
  0x5d   : > { %799 = vmatpush.msrb.mxu0 %v755_v27  ;;  %828 = vmatpush.msrb.mxu1 %v756_v28  ;;  %v2764_v20 = vld [vmem:[#allocation12 + $0x190] sm:$0xff]  ;;  %v2766_v21 = vld [vmem:[#allocation12 + $0x198] sm:$0xff]  ;;  %v2770_v22 = vld [vmem:[#allocation12 + $0x160] sm:$0xff] }
  0x5e   : > { %857 = vmatpush.msrb.mxu2 %v757_v29  ;;  %886 = vmatpush.msrb.mxu3 %v758_v30  ;;  %v2772_v23 = vld [vmem:[#allocation12 + $0x168] sm:$0xff]  ;;  %v2776_v24 = vld [vmem:[#allocation12 + $0x170] sm:$0xff]  ;;  %v2778_v25 = vld [vmem:[#allocation12 + $0x178] sm:$0xff] }
  0x5f   : > { %800 = vmatpush.msrb.mxu0 %v751_v31  ;;  %829 = vmatpush.msrb.mxu1 %v752_v32  ;;  %v716_v26 = vld [vmem:[%s2717_s27 + $0x8] sm:$0xff]  ;;  %v2787_v27 = vld [vmem:[#allocation12 + $0x140] sm:$0xff]  ;;  %v2791_v29 = vld [vmem:[#allocation12 + $0x150] sm:$0xff] }
  0x60   : > { %858 = vmatpush.msrb.mxu2 %v753_v33  ;;  %887 = vmatpush.msrb.mxu3 %v754_v34  ;;  %v2789_v28 = vld [vmem:[#allocation12 + $0x148] sm:$0xff]  ;;  %v2793_v30 = vld [vmem:[#allocation12 + $0x158] sm:$0xff]  ;;  %v2795_v31 = vld [vmem:[#allocation12 + $0x120] sm:$0xff] }
  0x61   : > { %605 = vmatmul.f32.gmra.mxu0 %v507_v35  ;;  %634 = vmatmul.f32.gmra.mxu1 %v507_v35  ;;  %v2797_v32 = vld [vmem:[#allocation12 + $0x128] sm:$0xff]  ;;  %v2801_v33 = vld [vmem:[#allocation12 + $0x130] sm:$0xff]  ;;  %v2803_v34 = vld [vmem:[#allocation12 + $0x138] sm:$0xff] }
  0x62   : > { %663 = vmatmul.f32.gmra.mxu2 %v507_v35  ;;  %692 = vmatmul.f32.gmra.mxu3 %v507_v35  ;;  %v2807_v35 = vld [vmem:[#allocation12 + $0x100] sm:$0xff] }
  0x63   : > { %801 = vmatpush.msrb.mxu0 %v747_v36  ;;  %830 = vmatpush.msrb.mxu1 %v748_v37  ;;  %v2809_v36 = vld [vmem:[#allocation12 + $0x108] sm:$0xff]  ;;  %v2813_v37 = vld [vmem:[#allocation12 + $0x110] sm:$0xff] }
  0x64   : > { %859 = vmatpush.msrb.mxu2 %v749_v38  ;;  %888 = vmatpush.msrb.mxu3 %v750_v39  ;;  %v2815_v38 = vld [vmem:[#allocation12 + $0x118] sm:$0xff]  ;;  %v2819_v39 = vld [vmem:[#allocation12 + $0xe0] sm:$0xff] }
  0x65   : > { %802 = vmatpush.msrb.mxu0 %v743_v40  ;;  %831 = vmatpush.msrb.mxu1 %v744_v41  ;;  %v2821_v40 = vld [vmem:[#allocation12 + $0xe8] sm:$0xff]  ;;  %v2825_v41 = vld [vmem:[#allocation12 + $0xf0] sm:$0xff] }
  0x66   : > { %860 = vmatpush.msrb.mxu2 %v745_v42  ;;  %889 = vmatpush.msrb.mxu3 %v746_v43  ;;  %v2827_v42 = vld [vmem:[#allocation12 + $0xf8] sm:$0xff]  ;;  %v717_v43 = vld [vmem:[%s2717_s27 + $0x10] sm:$0xff] }
  0x67   : > { %803 = vmatpush.msrb.mxu0 %v739_v44  ;;  %832 = vmatpush.msrb.mxu1 %v740_v45  ;;  %v2836_v44 = vld [vmem:[#allocation12 + $0xc0] sm:$0xff]  ;;  %v2838_v45 = vld [vmem:[#allocation12 + $0xc8] sm:$0xff] }
  0x68   : > { %861 = vmatpush.msrb.mxu2 %v741_v46  ;;  %890 = vmatpush.msrb.mxu3 %v742_v47  ;;  %v2840_v46 = vld [vmem:[#allocation12 + $0xd0] sm:$0xff]  ;;  %v2842_v47 = vld [vmem:[#allocation12 + $0xd8] sm:$0xff] }
  0x69   : > { %804 = vmatpush.msrb.mxu0 %v735_v48  ;;  %833 = vmatpush.msrb.mxu1 %v736_v49  ;;  %v2844_v48 = vld [vmem:[#allocation12 + $0xa0] sm:$0xff]  ;;  %v2846_v49 = vld [vmem:[#allocation12 + $0xa8] sm:$0xff] }
  0x6a   : > { %862 = vmatpush.msrb.mxu2 %v737_v50  ;;  %891 = vmatpush.msrb.mxu3 %v738_v51  ;;  %v2850_v50 = vld [vmem:[#allocation12 + $0xb0] sm:$0xff]  ;;  %v2852_v51 = vld [vmem:[#allocation12 + $0xb8] sm:$0xff] }
  0x6b   : > { %608 = vmatmul.f32.gmra.mxu0 %v508_v52  ;;  %637 = vmatmul.f32.gmra.mxu1 %v508_v52 }
  0x6c   : > { %666 = vmatmul.f32.gmra.mxu2 %v508_v52  ;;  %695 = vmatmul.f32.gmra.mxu3 %v508_v52  ;;  %v2856_v52 = vld [vmem:[#allocation12 + $0x80] sm:$0xff] }
  0x6d   : > { %805 = vmatpush.msrb.mxu0 %v731_v53  ;;  %834 = vmatpush.msrb.mxu1 %v732_v54  ;;  %v2858_v53 = vld [vmem:[#allocation12 + $0x88] sm:$0xff]  ;;  %v2862_v54 = vld [vmem:[#allocation12 + $0x90] sm:$0xff] }
  0x6e   : > { %863 = vmatpush.msrb.mxu2 %v733_v55  ;;  %892 = vmatpush.msrb.mxu3 %v734_v56  ;;  %v2864_v55 = vld [vmem:[#allocation12 + $0x98] sm:$0xff]  ;;  %v2868_v56 = vld [vmem:[#allocation12 + $0x60] sm:$0xff] }
  0x6f   : > { %806 = vmatpush.msrb.mxu0 %v727_v57  ;;  %835 = vmatpush.msrb.mxu1 %v728_v58  ;;  %v2870_v57 = vld [vmem:[#allocation12 + $0x68] sm:$0xff]  ;;  %v2874_v58 = vld [vmem:[#allocation12 + $0x70] sm:$0xff] }
  0x70   : > { %864 = vmatpush.msrb.mxu2 %v729_v59  ;;  %893 = vmatpush.msrb.mxu3 %v730_v60  ;;  %v2876_v59 = vld [vmem:[#allocation12 + $0x78] sm:$0xff] }
  0x71   : > { %807 = vmatpush.msrb.mxu0 %v723_v61  ;;  %836 = vmatpush.msrb.mxu1 %v724_v62  ;;  %v718_v60 = vld [vmem:[%s2717_s27 + $0x18] sm:$0xff]  ;;  %v2885_v61 = vld [vmem:[#allocation12 + $0x40] sm:$0xff]  ;;  %v2887_v62 = vld [vmem:[#allocation12 + $0x48] sm:$0xff] }
  0x72   : > { %865 = vmatpush.msrb.mxu2 %v725_v63  ;;  %894 = vmatpush.msrb.mxu3 %v726_v0  ;;  %4044 = vst [vmem:[#allocation18_spill] sm:$0xff] %v2887_v62  ;;  %v2889_v63 = vld [vmem:[#allocation12 + $0x50] sm:$0xff]  ;;  %v2891_v0 = vld [vmem:[#allocation12 + $0x58] sm:$0xff] }
  0x73   : > { %808 = vmatpush.msrb.mxu0 %v719_v1  ;;  %837 = vmatpush.msrb.mxu1 %v720_v2  ;;  %4045 = vst [vmem:[#allocation19_spill] sm:$0xff] %v2889_v63  ;;  %v2893_v1 = vld [vmem:[#allocation12 + $0x20] sm:$0xff]  ;;  %v2895_v2 = vld [vmem:[#allocation12 + $0x28] sm:$0xff] }
  0x74   : > { %866 = vmatpush.msrb.mxu2 %v721_v3  ;;  %895 = vmatpush.msrb.mxu3 %v722_v4  ;;  %4046 = vst [vmem:[#allocation20_spill] sm:$0xff] %v2891_v0  ;;  %v2899_v3 = vld [vmem:[#allocation12 + $0x30] sm:$0xff]  ;;  %v2901_v4 = vld [vmem:[#allocation12 + $0x38] sm:$0xff] }
  0x75   : > { %1007 = vmatpush.msra.mxu0 %v2725_v5  ;;  %1027 = vmatpush.msra.mxu1 %v2727_v6  ;;  %4047 = vst [vmem:[#allocation21_spill] sm:$0xff] %v2893_v1 }
  0x76   : > { %1047 = vmatpush.msra.mxu2 %v2729_v7  ;;  %1067 = vmatpush.msra.mxu3 %v2731_v8  ;;  %4048 = vst [vmem:[#allocation22_spill] sm:$0xff] %v2895_v2 }
  0x77   : > { %809 = vmatmul.f32.vlgmr.msrb.gmra.mxu0 %v715_v9  ;;  %838 = vmatmul.f32.vlgmr.msrb.gmra.mxu1 %v715_v9  ;;  %4049 = vst [vmem:[#allocation23_spill] sm:$0xff] %v2899_v3 }
  0x78   : > { %867 = vmatmul.f32.vlgmr.msrb.gmra.mxu2 %v715_v9  ;;  %896 = vmatmul.f32.vlgmr.msrb.gmra.mxu3 %v715_v9  ;;  %4050 = vst [vmem:[#allocation24_spill] sm:$0xff] %v2901_v4  ;;  %v2905_v9 = vld [vmem:[#allocation12] sm:$0xff] }
  0x79   : > { %1008 = vmatpush.msra.mxu0 %v2738_v10  ;;  %1028 = vmatpush.msra.mxu1 %v2740_v11  ;;  %4051 = vst [vmem:[#allocation25_spill] sm:$0xff] %v2905_v9 }
  0x7a   : > { %1048 = vmatpush.msra.mxu2 %v2742_v12  ;;  %1068 = vmatpush.msra.mxu3 %v2744_v13 }
  0x7b   : > { %1009 = vmatpush.msra.mxu0 %v2746_v14  ;;  %1029 = vmatpush.msra.mxu1 %v2748_v15 }
  0x7c   : > { %1049 = vmatpush.msra.mxu2 %v2752_v16  ;;  %1069 = vmatpush.msra.mxu3 %v2754_v17 }
  0x7d   : > { %1010 = vmatpush.msra.mxu0 %v2758_v18  ;;  %1030 = vmatpush.msra.mxu1 %v2760_v19 }
  0x7e   : > { %1050 = vmatpush.msra.mxu2 %v2764_v20  ;;  %1070 = vmatpush.msra.mxu3 %v2766_v21 }
  0x7f   : > { %1011 = vmatpush.msra.mxu0 %v2770_v22  ;;  %1031 = vmatpush.msra.mxu1 %v2772_v23 }
  0x80   : > { %1051 = vmatpush.msra.mxu2 %v2776_v24  ;;  %1071 = vmatpush.msra.mxu3 %v2778_v25 }
  0x81   : > { %812 = vmatmul.f32.gmra.mxu0 %v716_v26  ;;  %841 = vmatmul.f32.gmra.mxu1 %v716_v26 }
  0x82   : > { %870 = vmatmul.f32.gmra.mxu2 %v716_v26  ;;  %899 = vmatmul.f32.gmra.mxu3 %v716_v26  ;;  %v2907_v26 = vld [vmem:[#allocation12 + $0x8] sm:$0xff] }
  0x83   : > { %1012 = vmatpush.msra.mxu0 %v2787_v27  ;;  %1032 = vmatpush.msra.mxu1 %v2789_v28  ;;  %4052 = vst [vmem:[#allocation26_spill] sm:$0xff] %v2907_v26 }
  0x84   : > { %1052 = vmatpush.msra.mxu2 %v2791_v29  ;;  %1072 = vmatpush.msra.mxu3 %v2793_v30 }
  0x85   : > { %1013 = vmatpush.msra.mxu0 %v2795_v31  ;;  %1033 = vmatpush.msra.mxu1 %v2797_v32 }
  0x86   : > { %1053 = vmatpush.msra.mxu2 %v2801_v33  ;;  %1073 = vmatpush.msra.mxu3 %v2803_v34 }
  0x87   : > { %1014 = vmatpush.msra.mxu0 %v2807_v35  ;;  %1034 = vmatpush.msra.mxu1 %v2809_v36 }
  0x88   : > { %1054 = vmatpush.msra.mxu2 %v2813_v37  ;;  %1074 = vmatpush.msra.mxu3 %v2815_v38 }
  0x89   : > { %1015 = vmatpush.msra.mxu0 %v2819_v39  ;;  %1035 = vmatpush.msra.mxu1 %v2821_v40 }
  0x8a   : > { %1055 = vmatpush.msra.mxu2 %v2825_v41  ;;  %1075 = vmatpush.msra.mxu3 %v2827_v42 }
  0x8b   : > { %815 = vmatmul.f32.gmra.mxu0 %v717_v43  ;;  %844 = vmatmul.f32.gmra.mxu1 %v717_v43 }
  0x8c   : > { %873 = vmatmul.f32.gmra.mxu2 %v717_v43  ;;  %902 = vmatmul.f32.gmra.mxu3 %v717_v43  ;;  %v2911_v43 = vld [vmem:[#allocation12 + $0x10] sm:$0xff] }
  0x8d   : > { %1016 = vmatpush.msra.mxu0 %v2836_v44  ;;  %1036 = vmatpush.msra.mxu1 %v2838_v45  ;;  %4053 = vst [vmem:[#allocation27_spill] sm:$0xff] %v2911_v43 }
  0x8e   : > { %1056 = vmatpush.msra.mxu2 %v2840_v46  ;;  %1076 = vmatpush.msra.mxu3 %v2842_v47 }
  0x8f   : > { %1017 = vmatpush.msra.mxu0 %v2844_v48  ;;  %1037 = vmatpush.msra.mxu1 %v2846_v49 }
  0x90   : > { %1057 = vmatpush.msra.mxu2 %v2850_v50  ;;  %1077 = vmatpush.msra.mxu3 %v2852_v51 }
  0x91   : > { %1018 = vmatpush.msra.mxu0 %v2856_v52  ;;  %1038 = vmatpush.msra.mxu1 %v2858_v53 }
  0x92   : > { %1058 = vmatpush.msra.mxu2 %v2862_v54  ;;  %1078 = vmatpush.msra.mxu3 %v2864_v55 }
  0x93   : > { %1019 = vmatpush.msra.mxu0 %v2868_v56  ;;  %1039 = vmatpush.msra.mxu1 %v2870_v57 }
  0x94   : > { %1059 = vmatpush.msra.mxu2 %v2874_v58  ;;  %1079 = vmatpush.msra.mxu3 %v2876_v59 }
  0x95   : > { %818 = vmatmul.f32.gmra.mxu0 %v718_v60  ;;  %847 = vmatmul.f32.gmra.mxu1 %v718_v60 }
  0x96   : > { %876 = vmatmul.f32.gmra.mxu2 %v718_v60  ;;  %905 = vmatmul.f32.gmra.mxu3 %v718_v60  ;;  %v2913_v60 = vld [vmem:[#allocation12 + $0x18] sm:$0xff] }
  0x97   : > { %1020 = vmatpush.msra.mxu0 %v2885_v61  ;;  %1040 = vmatpush.msra.mxu1 %v2887_v62  ;;  %4054 = vst [vmem:[#allocation28_spill] sm:$0xff] %v2913_v60  ;;  %v2917_v62 = vld [vmem:[#allocation13 + $0x1e0] sm:$0xff] }
  0x98   : > { %1060 = vmatpush.msra.mxu2 %v2889_v63  ;;  %1080 = vmatpush.msra.mxu3 %v2891_v0  ;;  %4055 = vst [vmem:[#allocation29_spill] sm:$0xff] %v2917_v62  ;;  %v2919_v63 = vld [vmem:[#allocation13 + $0x1e8] sm:$0xff]  ;;  %v2923_v0 = vld [vmem:[#allocation13 + $0x1f0] sm:$0xff] }
  0x99   : > { %1021 = vmatpush.msra.mxu0 %v2893_v1  ;;  %1041 = vmatpush.msra.mxu1 %v2895_v2  ;;  %4056 = vst [vmem:[#allocation30_spill] sm:$0xff] %v2919_v63  ;;  %v2925_v1 = vld [vmem:[#allocation13 + $0x1f8] sm:$0xff]  ;;  %v2929_v2 = vld [vmem:[#allocation2] sm:$0xff] }
  0x9a   : > { %1061 = vmatpush.msra.mxu2 %v2899_v3  ;;  %1081 = vmatpush.msra.mxu3 %v2901_v4  ;;  %4057 = vst [vmem:[#allocation31_spill] sm:$0xff] %v2923_v0  ;;  %v2959_v4 = vld [vmem:[#allocation13 + $0x180] sm:$0xff]  ;;  %v2961_v3 = vld [vmem:[#allocation13 + $0x188] sm:$0xff] }
  0x9b   : > { %1022 = vmatpush.msra.mxu0 %v2905_v9  ;;  %1042 = vmatpush.msra.mxu1 %v2907_v26  ;;  %4058 = vst [vmem:[#allocation32_spill] sm:$0xff] %v2925_v1  ;;  %v2935_v9 = vld [vmem:[#allocation13 + $0x1c0] sm:$0xff]  ;;  %v2937_v26 = vld [vmem:[#allocation13 + $0x1c8] sm:$0xff] }
  0x9c   : > { %1062 = vmatpush.msra.mxu2 %v2911_v43  ;;  %1082 = vmatpush.msra.mxu3 %v2913_v60  ;;  %4059 = vst [vmem:[#allocation33_spill] sm:$0xff] %v2929_v2  ;;  %v2941_v43 = vld [vmem:[#allocation13 + $0x1d0] sm:$0xff]  ;;  %v2943_v60 = vld [vmem:[#allocation13 + $0x1d8] sm:$0xff] }
  0x9d   : > { %1162 = vmatpush.msrb.mxu0 %v2917_v62  ;;  %1182 = vmatpush.msrb.mxu1 %v2919_v63  ;;  %4060 = vst [vmem:[#allocation34_spill] sm:$0xff] %v2935_v9  ;;  %v2947_v63 = vld [vmem:[#allocation13 + $0x1a0] sm:$0xff]  ;;  %v2955_v62 = vld [vmem:[#allocation13 + $0x1b8] sm:$0xff] }
  0x9e   : > { %1202 = vmatpush.msrb.mxu2 %v2923_v0  ;;  %1222 = vmatpush.msrb.mxu3 %v2925_v1  ;;  %4061 = vst [vmem:[#allocation35_spill] sm:$0xff] %v2937_v26  ;;  %v2949_v0 = vld [vmem:[#allocation13 + $0x1a8] sm:$0xff]  ;;  %v2953_v1 = vld [vmem:[#allocation13 + $0x1b0] sm:$0xff] }
  0x9f   : > { %1023 = vmatmul.f32.vlgmr.msra.gmra.mxu0 %v2929_v2  ;;  %1043 = vmatmul.f32.vlgmr.msra.gmra.mxu1 %v2929_v2  ;;  %4062 = vst [vmem:[#allocation36_spill] sm:$0xff] %v2941_v43 }
  0xa0   : > { %4063 = vst [vmem:[#allocation37_spill] sm:$0xff] %v2943_v60  ;;  %1063 = vmatmul.f32.vlgmr.msra.gmra.mxu2 %v2929_v2  ;;  %1083 = vmatmul.f32.vlgmr.msra.gmra.mxu3 %v2929_v2  ;;  %v2965_v2 = vld [vmem:[#allocation13 + $0x190] sm:$0xff] }
  0xa1   : > { %4064 = vst [vmem:[#allocation38_spill] sm:$0xff] %v2947_v63  ;;  %1163 = vmatpush.msrb.mxu0 %v2935_v9  ;;  %1183 = vmatpush.msrb.mxu1 %v2937_v26  ;;  %v2967_v9 = vld [vmem:[#allocation13 + $0x198] sm:$0xff]  ;;  %v2971_v26 = vld [vmem:[#allocation13 + $0x160] sm:$0xff] }
  0xa2   : > { %4065 = vst [vmem:[#allocation39_spill] sm:$0xff] %v2949_v0  ;;  %1203 = vmatpush.msrb.mxu2 %v2941_v43  ;;  %1223 = vmatpush.msrb.mxu3 %v2943_v60  ;;  %v2973_v43 = vld [vmem:[#allocation13 + $0x168] sm:$0xff]  ;;  %v2977_v60 = vld [vmem:[#allocation13 + $0x170] sm:$0xff] }
  0xa3   : > { %4066 = vst [vmem:[#allocation40_spill] sm:$0xff] %v2953_v1  ;;  %1164 = vmatpush.msrb.mxu0 %v2947_v63  ;;  %1184 = vmatpush.msrb.mxu1 %v2949_v0  ;;  %v2979_v63 = vld [vmem:[#allocation13 + $0x178] sm:$0xff]  ;;  %v2983_v0 = vld [vmem:[#allocation13 + $0x140] sm:$0xff] }
  0xa4   : > { %4067 = vst [vmem:[#allocation41_spill] sm:$0xff] %v2955_v62  ;;  %1204 = vmatpush.msrb.mxu2 %v2953_v1  ;;  %1224 = vmatpush.msrb.mxu3 %v2955_v62  ;;  %v2985_v1 = vld [vmem:[#allocation13 + $0x148] sm:$0xff]  ;;  %v2989_v62 = vld [vmem:[#allocation13 + $0x150] sm:$0xff] }
  0xa5   : > { %4068 = vst [vmem:[#allocation42_spill] sm:$0xff] %v2959_v4  ;;  %1165 = vmatpush.msrb.mxu0 %v2959_v4  ;;  %1185 = vmatpush.msrb.mxu1 %v2961_v3  ;;  %v2991_v4 = vld [vmem:[#allocation13 + $0x158] sm:$0xff] }
  0xa6   : > { %4069 = vst [vmem:[#allocation43_spill] sm:$0xff] %v2961_v3  ;;  %1205 = vmatpush.msrb.mxu2 %v2965_v2  ;;  %1225 = vmatpush.msrb.mxu3 %v2967_v9  ;;  %v2995_v3 = vld [vmem:[#allocation13 + $0x120] sm:$0xff] }
  0xa7   : > { %4070 = vst [vmem:[#allocation44_spill] sm:$0xff] %v2965_v2  ;;  %1166 = vmatpush.msrb.mxu0 %v2971_v26  ;;  %1186 = vmatpush.msrb.mxu1 %v2973_v43  ;;  %v2997_v2 = vld [vmem:[#allocation13 + $0x128] sm:$0xff] }
  0xa8   : > { %4071 = vst [vmem:[#allocation45_spill] sm:$0xff] %v2967_v9  ;;  %1206 = vmatpush.msrb.mxu2 %v2977_v60  ;;  %1226 = vmatpush.msrb.mxu3 %v2979_v63  ;;  %v3001_v9 = vld [vmem:[#allocation13 + $0x130] sm:$0xff] }
  0xa9   : > { %4072 = vst [vmem:[#allocation46_spill] sm:$0xff] %v2971_v26  ;;  %1167 = vmatpush.msrb.mxu0 %v2983_v0  ;;  %1187 = vmatpush.msrb.mxu1 %v2985_v1  ;;  %v3003_v26 = vld [vmem:[#allocation13 + $0x138] sm:$0xff] }
  0xaa   : > { %4073 = vst [vmem:[#allocation47_spill] sm:$0xff] %v2973_v43  ;;  %1207 = vmatpush.msrb.mxu2 %v2989_v62  ;;  %1227 = vmatpush.msrb.mxu3 %v2991_v4  ;;  %v3007_v43 = vld [vmem:[#allocation13 + $0x100] sm:$0xff] }
  0xab   : > { %4074 = vst [vmem:[#allocation48_spill] sm:$0xff] %v2977_v60  ;;  %v3009_v60 = vld [vmem:[#allocation13 + $0x108] sm:$0xff]  ;;  %1168 = vmatpush.msrb.mxu0 %v2995_v3  ;;  %1188 = vmatpush.msrb.mxu1 %v2997_v2 }
  0xac   : > { %4075 = vst [vmem:[#allocation49_spill] sm:$0xff] %v2979_v63  ;;  %v3013_v63 = vld [vmem:[#allocation13 + $0x110] sm:$0xff]  ;;  %1208 = vmatpush.msrb.mxu2 %v3001_v9  ;;  %1228 = vmatpush.msrb.mxu3 %v3003_v26 }
  0xad   : > { %4076 = vst [vmem:[#allocation50_spill] sm:$0xff] %v2983_v0  ;;  %v3015_v0 = vld [vmem:[#allocation13 + $0x118] sm:$0xff]  ;;  %1169 = vmatpush.msrb.mxu0 %v3007_v43  ;;  %1189 = vmatpush.msrb.mxu1 %v3009_v60 }
  0xae   : > { %4077 = vst [vmem:[#allocation51_spill] sm:$0xff] %v2985_v1  ;;  %v3019_v1 = vld [vmem:[#allocation13 + $0xe0] sm:$0xff]  ;;  %1209 = vmatpush.msrb.mxu2 %v3013_v63  ;;  %1229 = vmatpush.msrb.mxu3 %v3015_v0 }
  0xaf   : > { %4078 = vst [vmem:[#allocation52_spill] sm:$0xff] %v2989_v62  ;;  %v3021_v62 = vld [vmem:[#allocation13 + $0xe8] sm:$0xff]  ;;  %1170 = vmatpush.msrb.mxu0 %v3019_v1 }
  0xb0   : > { %4079 = vst [vmem:[#allocation53_spill] sm:$0xff] %v2991_v4  ;;  %v3025_v4 = vld [vmem:[#allocation13 + $0xf0] sm:$0xff]  ;;  %1190 = vmatpush.msrb.mxu1 %v3021_v62 }
  0xb1   : > { %4080 = vst [vmem:[#allocation54_spill] sm:$0xff] %v2995_v3  ;;  %v3027_v3 = vld [vmem:[#allocation13 + $0xf8] sm:$0xff]  ;;  %1210 = vmatpush.msrb.mxu2 %v3025_v4 }
  0xb2   : > { %4081 = vst [vmem:[#allocation55_spill] sm:$0xff] %v2997_v2  ;;  %v3031_v2 = vld [vmem:[#allocation13 + $0xc0] sm:$0xff]  ;;  %1230 = vmatpush.msrb.mxu3 %v3027_v3 }
  0xb3   : > { %4082 = vst [vmem:[#allocation56_spill] sm:$0xff] %v3001_v9  ;;  %v3033_v9 = vld [vmem:[#allocation13 + $0xc8] sm:$0xff]  ;;  %1171 = vmatpush.msrb.mxu0 %v3031_v2 }
  0xb4   : > { %4083 = vst [vmem:[#allocation57_spill] sm:$0xff] %v3003_v26  ;;  %v3037_v26 = vld [vmem:[#allocation13 + $0xd0] sm:$0xff]  ;;  %1191 = vmatpush.msrb.mxu1 %v3033_v9 }
  0xb5   : > { %4084 = vst [vmem:[#allocation58_spill] sm:$0xff] %v3007_v43  ;;  %v3039_v43 = vld [vmem:[#allocation13 + $0xd8] sm:$0xff]  ;;  %1211 = vmatpush.msrb.mxu2 %v3037_v26 }
  0xb6   : > { %4085 = vst [vmem:[#allocation59_spill] sm:$0xff] %v3009_v60  ;;  %v3043_v60 = vld [vmem:[#allocation13 + $0xa0] sm:$0xff]  ;;  %1231 = vmatpush.msrb.mxu3 %v3039_v43 }
  0xb7   : > { %4086 = vst [vmem:[#allocation60_spill] sm:$0xff] %v3013_v63  ;;  %v3045_v63 = vld [vmem:[#allocation13 + $0xa8] sm:$0xff]  ;;  %1172 = vmatpush.msrb.mxu0 %v3043_v60 }
  0xb8   : > { %4087 = vst [vmem:[#allocation61_spill] sm:$0xff] %v3015_v0  ;;  %v3049_v0 = vld [vmem:[#allocation13 + $0xb0] sm:$0xff]  ;;  %1192 = vmatpush.msrb.mxu1 %v3045_v63 }
  0xb9   : > { %4088 = vst [vmem:[#allocation62_spill] sm:$0xff] %v3019_v1  ;;  %v3051_v1 = vld [vmem:[#allocation13 + $0xb8] sm:$0xff]  ;;  %1212 = vmatpush.msrb.mxu2 %v3049_v0 }
  0xba   : > { %4089 = vst [vmem:[#allocation63_spill] sm:$0xff] %v3021_v62  ;;  %v3055_v62 = vld [vmem:[#allocation13 + $0x80] sm:$0xff]  ;;  %1232 = vmatpush.msrb.mxu3 %v3051_v1 }
  0xbb   : > { %4090 = vst [vmem:[#allocation64_spill] sm:$0xff] %v3025_v4  ;;  %v3057_v4 = vld [vmem:[#allocation13 + $0x88] sm:$0xff]  ;;  %1173 = vmatpush.msrb.mxu0 %v3055_v62 }
  0xbc   : > { %4091 = vst [vmem:[#allocation65_spill] sm:$0xff] %v3027_v3  ;;  %v3061_v3 = vld [vmem:[#allocation13 + $0x90] sm:$0xff]  ;;  %1193 = vmatpush.msrb.mxu1 %v3057_v4 }
  0xbd   : > { %4092 = vst [vmem:[#allocation66_spill] sm:$0xff] %v3031_v2  ;;  %v3063_v2 = vld [vmem:[#allocation13 + $0x98] sm:$0xff]  ;;  %1213 = vmatpush.msrb.mxu2 %v3061_v3 }
  0xbe   : > { %4093 = vst [vmem:[#allocation67_spill] sm:$0xff] %v3033_v9  ;;  %v3067_v9 = vld [vmem:[#allocation13 + $0x60] sm:$0xff]  ;;  %1233 = vmatpush.msrb.mxu3 %v3063_v2 }
  0xbf   : > { %4094 = vst [vmem:[#allocation68_spill] sm:$0xff] %v3037_v26  ;;  %v3069_v26 = vld [vmem:[#allocation13 + $0x68] sm:$0xff]  ;;  %1174 = vmatpush.msrb.mxu0 %v3067_v9 }
  0xc0   : > { %4095 = vst [vmem:[#allocation69_spill] sm:$0xff] %v3039_v43  ;;  %v3073_v43 = vld [vmem:[#allocation13 + $0x70] sm:$0xff]  ;;  %1194 = vmatpush.msrb.mxu1 %v3069_v26 }
  0xc1   : > { %4096 = vst [vmem:[#allocation70_spill] sm:$0xff] %v3043_v60  ;;  %v3075_v60 = vld [vmem:[#allocation13 + $0x78] sm:$0xff]  ;;  %1214 = vmatpush.msrb.mxu2 %v3073_v43 }
  0xc2   : > { %4097 = vst [vmem:[#allocation71_spill] sm:$0xff] %v3045_v63  ;;  %v3079_v63 = vld [vmem:[#allocation13 + $0x40] sm:$0xff]  ;;  %1234 = vmatpush.msrb.mxu3 %v3075_v60 }
  0xc3   : > { %4098 = vst [vmem:[#allocation72_spill] sm:$0xff] %v3049_v0  ;;  %v3081_v0 = vld [vmem:[#allocation13 + $0x48] sm:$0xff]  ;;  %1175 = vmatpush.msrb.mxu0 %v3079_v63 }
  0xc4   : > { %4099 = vst [vmem:[#allocation73_spill] sm:$0xff] %v3051_v1  ;;  %v3085_v1 = vld [vmem:[#allocation13 + $0x50] sm:$0xff]  ;;  %1195 = vmatpush.msrb.mxu1 %v3081_v0 }
  0xc5   : > { %4100 = vst [vmem:[#allocation74_spill] sm:$0xff] %v3055_v62  ;;  %v3087_v62 = vld [vmem:[#allocation13 + $0x58] sm:$0xff]  ;;  %1215 = vmatpush.msrb.mxu2 %v3085_v1 }
  0xc6   : > { %4101 = vst [vmem:[#allocation75_spill] sm:$0xff] %v3057_v4  ;;  %v3091_v4 = vld [vmem:[#allocation13 + $0x20] sm:$0xff]  ;;  %1235 = vmatpush.msrb.mxu3 %v3087_v62 }
  0xc7   : > { %4102 = vst [vmem:[#allocation76_spill] sm:$0xff] %v3061_v3  ;;  %v3093_v3 = vld [vmem:[#allocation13 + $0x28] sm:$0xff]  ;;  %1176 = vmatpush.msrb.mxu0 %v3091_v4 }
  0xc8   : > { %4103 = vst [vmem:[#allocation77_spill] sm:$0xff] %v3063_v2  ;;  %v3097_v2 = vld [vmem:[#allocation13 + $0x30] sm:$0xff]  ;;  %1196 = vmatpush.msrb.mxu1 %v3093_v3 }
  0xc9   : > { %4104 = vst [vmem:[#allocation78_spill] sm:$0xff] %v3067_v9  ;;  %v3099_v9 = vld [vmem:[#allocation13 + $0x38] sm:$0xff]  ;;  %1216 = vmatpush.msrb.mxu2 %v3097_v2 }
  0xca   : > { %4105 = vst [vmem:[#allocation79_spill] sm:$0xff] %v3069_v26  ;;  %v3103_v26 = vld [vmem:[#allocation13] sm:$0xff]  ;;  %1236 = vmatpush.msrb.mxu3 %v3099_v9 }
  0xcb   : > { %4106 = vst [vmem:[#allocation80_spill] sm:$0xff] %v3073_v43  ;;  %v3109_v43 = vld [vmem:[#allocation13 + $0x10] sm:$0xff]  ;;  %1177 = vmatpush.msrb.mxu0 %v3103_v26 }
  0xcc   : > { %4107 = vst [vmem:[#allocation81_spill] sm:$0xff] %v3075_v60  ;;  %v3107_v60 = vld [vmem:[#allocation13 + $0x8] sm:$0xff]  ;;  %1217 = vmatpush.msrb.mxu2 %v3109_v43 }
  0xcd   : > { %4108 = vst [vmem:[#allocation82_spill] sm:$0xff] %v3081_v0  ;;  %v3113_v0 = vld [vmem:[#allocation13 + $0x18] sm:$0xff]  ;;  %1197 = vmatpush.msrb.mxu1 %v3107_v60  ;;  %1298 = vmatpush.msra.mxu0 %v2725_v5  ;;  %v3144_v5 = vpop.f32.mrf.mxu0 }
  0xce   : > { %4109 = vst [vmem:[#allocation83_spill] sm:$0xff] %v3085_v1  ;;  %v2575_v1 = vmov 0   ;;  %1237 = vmatpush.msrb.mxu3 %v3113_v0  ;;  %1338 = vmatpush.msra.mxu2 %v2729_v7  ;;  %v573_v7 = vld [vmem:[%s3867_s5] sm:$0xf] }
  0xcf   : > { %4110 = vst [vmem:[#allocation84_spill] sm:$0xff] %v3087_v62  ;;  %v925_v62 = vld [vmem:[%s3862_s0] sm:$0xff]  ;;  %2218 = vset.pattern.permute.xlu0 %v2575_v1  ;;  %1318 = vmatpush.msra.mxu1 %v2727_v6  ;;  %v3146_v6 = vpop.f32.mrf.mxu1 }
  0xd0   : > { %4111 = vst [vmem:[#allocation85_spill] sm:$0xff] %v3091_v4  ;;  %v3119_v4 = vld [vmem:[#allocation4] sm:$0xff]  ;;  %927 = vperm.xlu0 %2218, %v925_v62   ;;  %1358 = vmatpush.msra.mxu3 %v2731_v8 }
  0xd1   : > { %4112 = vst [vmem:[#allocation86_spill] sm:$0xff] %v3093_v3  ;;  %1178 = vmatmul.f32.vlgmr.msrb.gmra.mxu0 %v3119_v4  ;;  %1198 = vmatmul.f32.vlgmr.msrb.gmra.mxu1 %v3119_v4  ;;  %v3165_v8 = vpop.f32.mrf.mxu2 }
  0xd2   : > { %4113 = vst [vmem:[#allocation87_spill] sm:$0xff] %v3097_v2  ;;  %1218 = vmatmul.f32.vlgmr.msrb.gmra.mxu2 %v3119_v4  ;;  %1238 = vmatmul.f32.vlgmr.msrb.gmra.mxu3 %v3119_v4 }
  0xd3   : > { %4114 = vst [vmem:[#allocation88_spill] sm:$0xff] %v3099_v9  ;;  %1299 = vmatpush.msra.mxu0 %v2738_v10  ;;  %1319 = vmatpush.msra.mxu1 %v2740_v11  ;;  %v3167_v10 = vpop.f32.mrf.mxu3  ;;  %v3173_v11 = vperm.slane %v573_v7, 0 }
  0xd4   : > { %4115 = vst [vmem:[#allocation89_spill] sm:$0xff] %v3103_v26  ;;  %1339 = vmatpush.msra.mxu2 %v2742_v12  ;;  %1359 = vmatpush.msra.mxu3 %v2744_v13  ;;  %v3175_v12 = vperm.slane %v573_v7, 1 }
  0xd5   : > { %4116 = vst [vmem:[#allocation90_spill] sm:$0xff] %v3107_v60  ;;  %1300 = vmatpush.msra.mxu0 %v2746_v14  ;;  %1320 = vmatpush.msra.mxu1 %v2748_v15  ;;  %v603_v13 = vpop.f32.mrf.mxu0 }
  0xd6   : > { %4117 = vst [vmem:[#allocation91_spill] sm:$0xff] %v3109_v43  ;;  %1340 = vmatpush.msra.mxu2 %v2752_v16  ;;  %1360 = vmatpush.msra.mxu3 %v2754_v17  ;;  %v3182_v15 = vadd.f32 %v603_v13, %v3173_v11  ;;  %v3197_v17 = vperm.slane %v573_v7, 2  ;;  %v4147_v13 = vld [vmem:[#allocation39_spill] sm:$0xff] }
  0xd7   : > { %4118 = vst [vmem:[#allocation92_spill] sm:$0xff] %v3113_v0  ;;  %1301 = vmatpush.msra.mxu0 %v2758_v18  ;;  %1321 = vmatpush.msra.mxu1 %v2760_v19  ;;  %v632_v14 = vpop.f32.mrf.mxu1  ;;  %v3199_v18 = vperm.slane %v573_v7, 3  ;;  %v4146_v7 = vld [vmem:[#allocation38_spill] sm:$0xff] }
  0xd8   : > { %1341 = vmatpush.msra.mxu2 %v2764_v20  ;;  %1361 = vmatpush.msra.mxu3 %v2766_v21  ;;  %4119 = vst [vmem:[#allocation93_spill] sm:$0xff] %v3182_v15  ;;  %v3185_v16 = vadd.f32 %v632_v14, %v3175_v12  ;;  %v4148_v14 = vld [vmem:[#allocation40_spill] sm:$0xff]  ;;  %v4160_v15 = vld [vmem:[#allocation50_spill] sm:$0xff] }
  0xd9   : > { %1302 = vmatpush.msra.mxu0 %v2770_v22  ;;  %1322 = vmatpush.msra.mxu1 %v2772_v23  ;;  %v4123_v23 = vld [vmem:[#allocation18_spill] sm:$0xff] }
  0xda   : > { %1342 = vmatpush.msra.mxu2 %v2776_v24  ;;  %1362 = vmatpush.msra.mxu3 %v2778_v25  ;;  %4120 = vst [vmem:[#allocation94_spill] sm:$0xff] %v3185_v16  ;;  %v4124_v24 = vld [vmem:[#allocation19_spill] sm:$0xff]  ;;  %v4125_v25 = vld [vmem:[#allocation20_spill] sm:$0xff]  ;;  %v4159_v16 = vld [vmem:[#allocation49_spill] sm:$0xff] }
  0xdb   : > { %1303 = vmatpush.msra.mxu0 %v2787_v27  ;;  %1323 = vmatpush.msra.mxu1 %v2789_v28  ;;  %v661_v19 = vpop.f32.mrf.mxu2  ;;  %v690_v20 = vpop.f32.mrf.mxu3 }
  0xdc   : > { %1343 = vmatpush.msra.mxu2 %v2791_v29  ;;  %1363 = vmatpush.msra.mxu3 %v2793_v30  ;;  %v3206_v21 = vadd.f32 %v661_v19, %v3197_v17  ;;  %v3209_v22 = vadd.f32 %v690_v20, %v3199_v18  ;;  %v4126_v29 = vld [vmem:[#allocation21_spill] sm:$0xff]  ;;  %v4127_v30 = vld [vmem:[#allocation22_spill] sm:$0xff] }
  0xdd   : > { %1304 = vmatpush.msra.mxu0 %v2795_v31  ;;  %1324 = vmatpush.msra.mxu1 %v2797_v32  ;;  %v4149_v19 = vld [vmem:[#allocation41_spill] sm:$0xff] }
  0xde   : > { %1344 = vmatpush.msra.mxu2 %v2801_v33  ;;  %1364 = vmatpush.msra.mxu3 %v2803_v34  ;;  %4121 = vst [vmem:[#allocation95_spill] sm:$0xff] %v3206_v21  ;;  %v606_v27 = vpop.f32.mrf.mxu0  ;;  %v4130_v33 = vld [vmem:[#allocation23_spill] sm:$0xff]  ;;  %v4131_v34 = vld [vmem:[#allocation24_spill] sm:$0xff] }
  0xdf   : > { %1305 = vmatpush.msra.mxu0 %v2807_v35  ;;  %1325 = vmatpush.msra.mxu1 %v2809_v36  ;;  %4122 = vst [vmem:[#allocation96_spill] sm:$0xff] %v3209_v22  ;;  %v635_v28 = vpop.f32.mrf.mxu1  ;;  %v3218_v31 = vadd.f32 %v606_v27, %v3173_v11  ;;  %v4132_v35 = vld [vmem:[#allocation25_spill] sm:$0xff]  ;;  %v4133_v36 = vld [vmem:[#allocation26_spill] sm:$0xff]  ;;  %v4157_v22 = vld [vmem:[#allocation47_spill] sm:$0xff] }
  0xe0   : > { %1345 = vmatpush.msra.mxu2 %v2813_v37  ;;  %1365 = vmatpush.msra.mxu3 %v2815_v38  ;;  %v3221_v32 = vadd.f32 %v635_v28, %v3175_v12  ;;  %v4134_v37 = vld [vmem:[#allocation27_spill] sm:$0xff]  ;;  %v4135_v38 = vld [vmem:[#allocation28_spill] sm:$0xff]  ;;  %v4150_v28 = vld [vmem:[#allocation42_spill] sm:$0xff] }
  0xe1   : > { %1306 = vmatpush.msra.mxu0 %v2819_v39  ;;  %1326 = vmatpush.msra.mxu1 %v2821_v40  ;;  %4128 = vst [vmem:[#allocation18_spill] sm:$0xff] %v3218_v31  ;;  %v4136_v39 = vld [vmem:[#allocation29_spill] sm:$0xff]  ;;  %v4137_v40 = vld [vmem:[#allocation30_spill] sm:$0xff]  ;;  %v4158_v21 = vld [vmem:[#allocation48_spill] sm:$0xff] }
  0xe2   : > { %1346 = vmatpush.msra.mxu2 %v2825_v41  ;;  %1366 = vmatpush.msra.mxu3 %v2827_v42  ;;  %4129 = vst [vmem:[#allocation19_spill] sm:$0xff] %v3221_v32  ;;  %v4138_v41 = vld [vmem:[#allocation31_spill] sm:$0xff]  ;;  %v4139_v42 = vld [vmem:[#allocation32_spill] sm:$0xff]  ;;  %v4156_v31 = vld [vmem:[#allocation46_spill] sm:$0xff] }
  0xe3   : > { %1307 = vmatpush.msra.mxu0 %v2836_v44  ;;  %1327 = vmatpush.msra.mxu1 %v2838_v45  ;;  %v4140_v44 = vld [vmem:[#allocation34_spill] sm:$0xff]  ;;  %v4141_v45 = vld [vmem:[#allocation35_spill] sm:$0xff] }
  0xe4   : > { %1347 = vmatpush.msra.mxu2 %v2840_v46  ;;  %1367 = vmatpush.msra.mxu3 %v2842_v47  ;;  %v4151_v32 = vld [vmem:[#allocation43_spill] sm:$0xff] }
  0xe5   : > { %1308 = vmatpush.msra.mxu0 %v2844_v48  ;;  %1328 = vmatpush.msra.mxu1 %v2846_v49  ;;  %v664_v46 = vpop.f32.mrf.mxu2  ;;  %v693_v47 = vpop.f32.mrf.mxu3  ;;  %v4142_v48 = vld [vmem:[#allocation36_spill] sm:$0xff]  ;;  %v4143_v49 = vld [vmem:[#allocation37_spill] sm:$0xff] }
  0xe6   : > { %1348 = vmatpush.msra.mxu2 %v2850_v50  ;;  %1368 = vmatpush.msra.mxu3 %v2852_v51  ;;  %v3238_v62 = vadd.f32 %v664_v46, %v3197_v17  ;;  %v3241_v1 = vadd.f32 %v693_v47, %v3199_v18 }
  0xe7   : > { %1309 = vmatpush.msra.mxu0 %v2856_v52  ;;  %1329 = vmatpush.msra.mxu1 %v2858_v53 }
  0xe8   : > { %1349 = vmatpush.msra.mxu2 %v2862_v54  ;;  %1369 = vmatpush.msra.mxu3 %v2864_v55  ;;  %4144 = vst [vmem:[#allocation20_spill] sm:$0xff] %v3238_v62  ;;  %v609_v20 = vpop.f32.mrf.mxu0  ;;  %v638_v27 = vpop.f32.mrf.mxu1  ;;  %v4155_v62 = vld [vmem:[#allocation45_spill] sm:$0xff] }
  0xe9   : > { %1310 = vmatpush.msra.mxu0 %v2868_v56  ;;  %1330 = vmatpush.msra.mxu1 %v2870_v57  ;;  %4145 = vst [vmem:[#allocation21_spill] sm:$0xff] %v3241_v1  ;;  %v3250_v46 = vadd.f32 %v609_v20, %v3173_v11  ;;  %v3253_v47 = vadd.f32 %v638_v27, %v3175_v12  ;;  %v4154_v1 = vld [vmem:[#allocation44_spill] sm:$0xff]  ;;  %v4163_v27 = vld [vmem:[#allocation53_spill] sm:$0xff] }
  0xea   : > { %1350 = vmatpush.msra.mxu2 %v2874_v58  ;;  %1370 = vmatpush.msra.mxu3 %v2876_v59  ;;  %v4162_v20 = vld [vmem:[#allocation52_spill] sm:$0xff] }
  0xeb   : > { %1311 = vmatpush.msra.mxu0 %v2885_v61  ;;  %1331 = vmatpush.msra.mxu1 %v4123_v23  ;;  %4152 = vst [vmem:[#allocation22_spill] sm:$0xff] %v3250_v46  ;;  %v4164_v46 = vld [vmem:[#allocation54_spill] sm:$0xff] }
  0xec   : > { %1351 = vmatpush.msra.mxu2 %v4124_v24  ;;  %1371 = vmatpush.msra.mxu3 %v4125_v25  ;;  %4153 = vst [vmem:[#allocation23_spill] sm:$0xff] %v3253_v47  ;;  %v783_v47 = vld [vmem:[%s3868_s6] sm:$0xf] }
  0xed   : > { %1312 = vmatpush.msra.mxu0 %v4126_v29  ;;  %1332 = vmatpush.msra.mxu1 %v4127_v30 }
  0xee   : > { %1352 = vmatpush.msra.mxu2 %v4130_v33  ;;  %1372 = vmatpush.msra.mxu3 %v4131_v34 }
  0xef   : > { %1313 = vmatpush.msra.mxu0 %v4132_v35  ;;  %1333 = vmatpush.msra.mxu1 %v4133_v36 }
  0xf0   : > { %1353 = vmatpush.msra.mxu2 %v4134_v37  ;;  %1373 = vmatpush.msra.mxu3 %v4135_v38 }
  0xf1   : > { %1389 = vmatpush.msrb.mxu0 %v4136_v39  ;;  %1409 = vmatpush.msrb.mxu1 %v4137_v40 }
  0xf2   : > { %1429 = vmatpush.msrb.mxu2 %v4138_v41  ;;  %1449 = vmatpush.msrb.mxu3 %v4139_v42 }
  0xf3   : > { %1390 = vmatpush.msrb.mxu0 %v4140_v44  ;;  %1410 = vmatpush.msrb.mxu1 %v4141_v45 }
  0xf4   : > { %1430 = vmatpush.msrb.mxu2 %v4142_v48  ;;  %1450 = vmatpush.msrb.mxu3 %v4143_v49 }
  0xf5   : > { %1391 = vmatpush.msrb.mxu0 %v4146_v7  ;;  %1411 = vmatpush.msrb.mxu1 %v4147_v13  ;;  %v4201_v13 = vld [vmem:[#allocation85_spill] sm:$0xff] }
  0xf6   : > { %1431 = vmatpush.msrb.mxu2 %v4148_v14  ;;  %1451 = vmatpush.msrb.mxu3 %v4149_v19  ;;  %v4187_v14 = vld [vmem:[#allocation73_spill] sm:$0xff] }
  0xf7   : > { %1392 = vmatpush.msrb.mxu0 %v4150_v28  ;;  %1412 = vmatpush.msrb.mxu1 %v4151_v32  ;;  %v4161_v32 = vld [vmem:[#allocation51_spill] sm:$0xff]  ;;  %v4173_v28 = vld [vmem:[#allocation61_spill] sm:$0xff] }
  0xf8   : > { %1432 = vmatpush.msrb.mxu2 %v4154_v1  ;;  %1452 = vmatpush.msrb.mxu3 %v4155_v62  ;;  %v4166_v62 = vld [vmem:[#allocation56_spill] sm:$0xff]  ;;  %v3280_v1 = vperm.slane %v783_v47, 0 }
  0xf9   : > { %1393 = vmatpush.msrb.mxu0 %v4156_v31  ;;  %1413 = vmatpush.msrb.mxu1 %v4157_v22  ;;  %v4165_v31 = vld [vmem:[#allocation55_spill] sm:$0xff]  ;;  %v667_v22 = vpop.f32.mrf.mxu2 }
  0xfa   : > { %1433 = vmatpush.msrb.mxu2 %v4158_v21  ;;  %1453 = vmatpush.msrb.mxu3 %v4159_v16  ;;  %v696_v21 = vpop.f32.mrf.mxu3  ;;  %v4167_v16 = vld [vmem:[#allocation57_spill] sm:$0xff] }
  0xfb   : > { %1394 = vmatpush.msrb.mxu0 %v4160_v15  ;;  %1414 = vmatpush.msrb.mxu1 %v4161_v32  ;;  %v3273_v32 = vadd.f32 %v667_v22, %v3197_v17  ;;  %v4171_v15 = vld [vmem:[#allocation59_spill] sm:$0xff]  ;;  %v4176_v22 = vld [vmem:[#allocation64_spill] sm:$0xff] }
  0xfc   : > { %1434 = vmatpush.msrb.mxu2 %v4162_v20  ;;  %1454 = vmatpush.msrb.mxu3 %v4163_v27  ;;  %v3276_v20 = vadd.f32 %v696_v21, %v3199_v18  ;;  %v4170_v27 = vld [vmem:[#allocation58_spill] sm:$0xff]  ;;  %v4177_v21 = vld [vmem:[#allocation65_spill] sm:$0xff] }
  0xfd   : > { %1395 = vmatpush.msrb.mxu0 %v4164_v46  ;;  %1415 = vmatpush.msrb.mxu1 %v4165_v31  ;;  %4168 = vst [vmem:[#allocation24_spill] sm:$0xff] %v3273_v32  ;;  %v3282_v46 = vperm.slane %v783_v47, 1  ;;  %v4172_v31 = vld [vmem:[#allocation60_spill] sm:$0xff]  ;;  %v839_v32 = vpop.f32.mrf.mxu1 }
  0xfe   : > { %1435 = vmatpush.msrb.mxu2 %v4166_v62  ;;  %1455 = vmatpush.msrb.mxu3 %v4167_v16  ;;  %4169 = vst [vmem:[#allocation25_spill] sm:$0xff] %v3276_v20  ;;  %v4174_v62 = vld [vmem:[#allocation62_spill] sm:$0xff]  ;;  %v4175_v16 = vld [vmem:[#allocation63_spill] sm:$0xff]  ;;  %v810_v20 = vpop.f32.mrf.mxu0 }
  0xff   : > { %1396 = vmatpush.msrb.mxu0 %v4170_v27  ;;  %1416 = vmatpush.msrb.mxu1 %v4171_v15  ;;  %v4178_v27 = vld [vmem:[#allocation66_spill] sm:$0xff]  ;;  %v4179_v15 = vld [vmem:[#allocation67_spill] sm:$0xff]  ;;  %v3293_v19 = vadd.f32 %v810_v20, %v3280_v1 }
 0x100   : > { %1436 = vmatpush.msrb.mxu2 %v4172_v31  ;;  %1456 = vmatpush.msrb.mxu3 %v4173_v28  ;;  %v3296_v31 = vadd.f32 %v839_v32, %v3282_v46  ;;  %v4182_v28 = vld [vmem:[#allocation68_spill] sm:$0xff]  ;;  %v4188_v20 = vld [vmem:[#allocation74_spill] sm:$0xff]  ;;  %v4189_v32 = vld [vmem:[#allocation75_spill] sm:$0xff] }
 0x101   : > { %1397 = vmatpush.msrb.mxu0 %v4174_v62  ;;  %1417 = vmatpush.msrb.mxu1 %v4175_v16  ;;  %4180 = vst [vmem:[#allocation26_spill] sm:$0xff] %v3293_v19  ;;  %v4183_v62 = vld [vmem:[#allocation69_spill] sm:$0xff]  ;;  %v4184_v16 = vld [vmem:[#allocation70_spill] sm:$0xff] }
 0x102   : > { %1437 = vmatpush.msrb.mxu2 %v4176_v22  ;;  %1457 = vmatpush.msrb.mxu3 %v4177_v21  ;;  %4181 = vst [vmem:[#allocation27_spill] sm:$0xff] %v3296_v31  ;;  %v4185_v22 = vld [vmem:[#allocation71_spill] sm:$0xff]  ;;  %v4186_v21 = vld [vmem:[#allocation72_spill] sm:$0xff]  ;;  %v4191_v19 = vld [vmem:[#allocation77_spill] sm:$0xff] }
 0x103   : > { %1398 = vmatpush.msrb.mxu0 %v4178_v27  ;;  %1418 = vmatpush.msrb.mxu1 %v4179_v15  ;;  %v3304_v27 = vperm.slane %v783_v47, 2  ;;  %v3306_v15 = vperm.slane %v783_v47, 3  ;;  %v4190_v31 = vld [vmem:[#allocation76_spill] sm:$0xff] }
 0x104   : > { %1438 = vmatpush.msrb.mxu2 %v4182_v28  ;;  %1458 = vmatpush.msrb.mxu3 %v4183_v62  ;;  %v4192_v62 = vld [vmem:[#allocation78_spill] sm:$0xff]  ;;  %v4194_v28 = vld [vmem:[#allocation80_spill] sm:$0xff] }
 0x105   : > { %1399 = vmatpush.msrb.mxu0 %v4184_v16  ;;  %1419 = vmatpush.msrb.mxu1 %v4185_v22  ;;  %v4193_v16 = vld [vmem:[#allocation79_spill] sm:$0xff]  ;;  %v868_v22 = vpop.f32.mrf.mxu2 }
 0x106   : > { %1439 = vmatpush.msrb.mxu2 %v4186_v21  ;;  %1459 = vmatpush.msrb.mxu3 %v4187_v14  ;;  %v897_v21 = vpop.f32.mrf.mxu3  ;;  %v4195_v14 = vld [vmem:[#allocation81_spill] sm:$0xff]  ;;  %v3317_v47 = vadd.f32 %v868_v22, %v3304_v27 }
 0x107   : > { %1400 = vmatpush.msrb.mxu0 %v4188_v20  ;;  %1420 = vmatpush.msrb.mxu1 %v4189_v32  ;;  %v3320_v20 = vadd.f32 %v897_v21, %v3306_v15  ;;  %v842_v32 = vpop.f32.mrf.mxu1 }
 0x108   : > { %1440 = vmatpush.msrb.mxu2 %v4190_v31  ;;  %1460 = vmatpush.msrb.mxu3 %v4191_v19  ;;  %4196 = vst [vmem:[#allocation28_spill] sm:$0xff] %v3317_v47  ;;  %v4198_v31 = vld [vmem:[#allocation82_spill] sm:$0xff]  ;;  %v4199_v19 = vld [vmem:[#allocation83_spill] sm:$0xff]  ;;  %v3332_v21 = vadd.f32 %v842_v32, %v3282_v46 }
 0x109   : > { %1401 = vmatpush.msrb.mxu0 %v4192_v62  ;;  %1421 = vmatpush.msrb.mxu1 %v4193_v16  ;;  %4197 = vst [vmem:[#allocation29_spill] sm:$0xff] %v3320_v20  ;;  %v4200_v62 = vld [vmem:[#allocation84_spill] sm:$0xff]  ;;  %v813_v16 = vpop.f32.mrf.mxu0 }
 0x10a   : > { %1441 = vmatpush.msrb.mxu2 %v4194_v28  ;;  %1461 = vmatpush.msrb.mxu3 %v4195_v14  ;;  %v3329_v22 = vadd.f32 %v813_v16, %v3280_v1  ;;  %4203 = vst [vmem:[#allocation31_spill] sm:$0xff] %v3332_v21 }
 0x10b   : > { %1402 = vmatpush.msrb.mxu0 %v3079_v63  ;;  %1422 = vmatpush.msrb.mxu1 %v4198_v31 }
 0x10c   : > { %1442 = vmatpush.msrb.mxu2 %v4199_v19  ;;  %1462 = vmatpush.msrb.mxu3 %v4200_v62  ;;  %4202 = vst [vmem:[#allocation30_spill] sm:$0xff] %v3329_v22 }
 0x10d   : > { %1403 = vmatpush.msrb.mxu0 %v4201_v13  ;;  %1423 = vmatpush.msrb.mxu1 %v3093_v3  ;;  %v871_v20 = vpop.f32.mrf.mxu2 }
 0x10e   : > { %1443 = vmatpush.msrb.mxu2 %v3097_v2  ;;  %1463 = vmatpush.msrb.mxu3 %v3099_v9  ;;  %v900_v47 = vpop.f32.mrf.mxu3  ;;  %v3341_v16 = vadd.f32 %v871_v20, %v3304_v27 }
 0x10f   : > { %1404 = vmatpush.msrb.mxu0 %v3103_v26  ;;  %1424 = vmatpush.msrb.mxu1 %v3107_v60  ;;  %v3344_v32 = vadd.f32 %v900_v47, %v3306_v15  ;;  %v845_v22 = vpop.f32.mrf.mxu1 }
 0x110   : > { %1444 = vmatpush.msrb.mxu2 %v3109_v43  ;;  %1464 = vmatpush.msrb.mxu3 %v3113_v0  ;;  %4204 = vst [vmem:[#allocation32_spill] sm:$0xff] %v3341_v16  ;;  %v3350_v26 = vadd.f32 %v845_v22, %v3282_v46  ;;  %v630_v22 = vadd.f32 %v3146_v6, %v3175_v12 }
 0x111   : > { %4205 = vst [vmem:[#allocation34_spill] sm:$0xff] %v3344_v32  ;;  %v816_v21 = vpop.f32.mrf.mxu0 }
 0x112   : > { %v3347_v9 = vadd.f32 %v816_v21, %v3280_v1  ;;  %4207 = vst [vmem:[#allocation36_spill] sm:$0xff] %v3350_v26  ;;  %v601_v21 = vadd.f32 %v3144_v5, %v3173_v11 }
 0x114   : > { %4206 = vst [vmem:[#allocation35_spill] sm:$0xff] %v3347_v9 }
 0x115   : > { %v874_v60 = vpop.f32.mrf.mxu2 }
 0x116   : > { %v903_v43 = vpop.f32.mrf.mxu3  ;;  %v3353_v0 = vadd.f32 %v874_v60, %v3304_v27 }
 0x117   : > { %v3356_v2 = vadd.f32 %v903_v43, %v3306_v15  ;;  %v848_v16 = vpop.f32.mrf.mxu1  ;;  %v659_v43 = vadd.f32 %v3165_v8, %v3197_v17 }
 0x118   : > { %4208 = vst [vmem:[#allocation37_spill] sm:$0xff] %v3353_v0 }
 0x119   : > { %4209 = vst [vmem:[#allocation38_spill] sm:$0xff] %v3356_v2  ;;  %v819_v20 = vpop.f32.mrf.mxu0  ;;  %v688_v2 = vadd.f32 %v3167_v10, %v3199_v18 }
 0x11d   : > { %v3358_v47 = vpop.f32.mrf.mxu2 }
 0x11e   : > { %v3360_v32 = vpop.f32.mrf.mxu3 }
 0x11f   : > { %v1044_v9 = vpop.f32.mrf.mxu1 }
 0x120   : > { %v1088_v60 = vadd.f32 %v1044_v9, %v630_v22 }
 0x121   : > { %v1024_v26 = vpop.f32.mrf.mxu0 }
 0x122   : > { %v1087_v3 = vadd.f32 %v1024_v26, %v601_v21  ;;  %v1252_v13 = vmul.f32 0.5, %v1088_v60  ;;  %v933_v21 = vld [vmem:[#allocation3] sm:$0xff] }
 0x124   : > { %v1248_v0 = vmul.f32 0.5, %v1087_v3 }
 0x125   : > { %v1064_v62 = vpop.f32.mrf.mxu2 }
 0x126   : > { %2219 = vtanh.f32 %v1248_v0  ;;  %v1084_v19 = vpop.f32.mrf.mxu3  ;;  %v1089_v5 = vadd.f32 %v1064_v62, %v659_v43 }
 0x127   : > { %2221 = vtanh.f32 %v1252_v13  ;;  %v1090_v11 = vadd.f32 %v1084_v19, %v688_v2  ;;  %v1246_v13 = vstv %s2700_s3 }
 0x128   : > { %2223 = vtanh.f32 %v1089_v5 }
 0x129   : > { %v1257_v6 = vmul.f32 0.5, %v1090_v11 }
 0x12b   : > { %2225 = vtanh.f32 %v1257_v6  ;;  %v4210_v6 = vld [vmem:[#allocation33_spill] sm:$0xff] }
 0x12c   : > { %v2220_v12 = vpop.eup %2219 }
 0x12d   : > { %v2222_v26 = vpop.eup %2221  ;;  %v1250_v9 = vadd.f32 1.0, %v2220_v12 }
 0x12e   : > { %v1254_v3 = vadd.f32 1.0, %v2222_v26  ;;  %v2224_v8 = vpop.eup %2223  ;;  %v820_v26 = vadd.f32 %v819_v20, %v3280_v1  ;;  %v3394_v1 = vld [vmem:[#allocation12 + $0x1f8] sm:$0xff] }
 0x12f   : > { %v1251_v0 = vmul.f32 0.5, %v1250_v9  ;;  %v849_v9 = vadd.f32 %v848_v16, %v3282_v46  ;;  %v3397_v46 = vld [vmem:[#allocation12 + $0x1c0] sm:$0xff]  ;;  %v3400_v16 = vld [vmem:[#allocation12 + $0x1c8] sm:$0xff] }
 0x130   : > { %v1255_v22 = vmul.f32 0.5, %v1254_v3 }
 0x131   : > { %v1262_v60 = vmul.f32 %v2224_v8, %v1251_v0  ;;  %v2226_v10 = vpop.eup %2225 }
 0x132   : > { %v1261_v17 = vmul.f32 %v1255_v22, %v933_v21  ;;  %v1259_v2 = vadd.f32 1.0, %v2226_v10  ;;  %v3388_v22 = vld [vmem:[#allocation12 + $0x1e8] sm:$0xff] }
 0x134   : > { %v1263_v18 = vadd.f32 %v1262_v60, %v1261_v17  ;;  %v1260_v43 = vmul.f32 0.5, %v1259_v2  ;;  %v3391_v60 = vld [vmem:[#allocation12 + $0x1f0] sm:$0xff]  ;;  %v3409_v2 = vld [vmem:[#allocation12 + $0x1a0] sm:$0xff] }
 0x136   : > { %2227 = vtanh.f32 %v1263_v18 }
 0x13c   : > { %v2228_v5 = vpop.eup %2227 }
 0x13d   : > { %v1265_v11 = vmul.f32 %v2228_v5, %v1260_v43  ;;  %v3412_v43 = vld [vmem:[#allocation12 + $0x1a8] sm:$0xff]  ;;  %v3415_v5 = vld [vmem:[#allocation12 + $0x1b0] sm:$0xff] }
 0x142   : > { %v3371_v62 = vpop.permute.xlu0 %927 }
 0x143   : > { %vm1247_vm0 = vcmp.lt.s32.totalorder %v1246_v13, %v3371_v62  ;;  %v3406_v13 = vld [vmem:[#allocation12 + $0x1d8] sm:$0xff] }
 0x144   : > { %v3374_v19 = vsel %vm1247_vm0, %v1263_v18, %v933_v21  ;;  %v3377_v12 = vsel %vm1247_vm0, %v1265_v11, %v4210_v6  ;;  %v3385_v21 = vld [vmem:[#allocation12 + $0x1e0] sm:$0xff]  ;;  %v3403_v18 = vld [vmem:[#allocation12 + $0x1d0] sm:$0xff]  ;;  %v3418_v11 = vld [vmem:[#allocation12 + $0x1b8] sm:$0xff]  ;;  %v878_v6 = vadd.f32 %v3358_v47, %v3304_v27 }
 0x145   : > { %1314 = vmatmul.f32.vlgmr.msra.gmra.mxu0 %v3377_v12  ;;  %1334 = vmatmul.f32.vlgmr.msra.gmra.mxu1 %v3377_v12  ;;  %v3440_v47 = vld [vmem:[#allocation12 + $0x168] sm:$0xff] }
 0x146   : > { %1354 = vmatmul.f32.vlgmr.msra.gmra.mxu2 %v3377_v12  ;;  %1374 = vmatmul.f32.vlgmr.msra.gmra.mxu3 %v3377_v12  ;;  %4215 = vst [vmem:[#allocation97_spill] sm:$0xff] %v3440_v47 }
 0x147   : > { %1525 = vmatpush.msra.mxu0 %v3385_v21  ;;  %1545 = vmatpush.msra.mxu1 %v3388_v22 }
 0x148   : > { %1565 = vmatpush.msra.mxu2 %v3391_v60  ;;  %1585 = vmatpush.msra.mxu3 %v3394_v1 }
 0x149   : > { %1526 = vmatpush.msra.mxu0 %v3397_v46  ;;  %1546 = vmatpush.msra.mxu1 %v3400_v16 }
 0x14a   : > { %1566 = vmatpush.msra.mxu2 %v3403_v18  ;;  %1586 = vmatpush.msra.mxu3 %v3406_v13 }
 0x14b   : > { %1527 = vmatpush.msra.mxu0 %v3409_v2  ;;  %1547 = vmatpush.msra.mxu1 %v3412_v43 }
 0x14c   : > { %1567 = vmatpush.msra.mxu2 %v3415_v5  ;;  %1587 = vmatpush.msra.mxu3 %v3418_v11 }
 0x14e   : > { %v1179_v3 = vpop.f32.mrf.mxu0  ;;  %v1199_v0 = vpop.f32.mrf.mxu1 }
 0x14f   : > { %v1242_v8 = vadd.f32 %v1179_v3, %v820_v26  ;;  %v1243_v17 = vadd.f32 %v1199_v0, %v849_v9  ;;  %v907_v26 = vadd.f32 %v3360_v32, %v3306_v15  ;;  %v3425_v9 = vld [vmem:[#allocation12 + $0x180] sm:$0xff]  ;;  %v3428_v3 = vld [vmem:[#allocation12 + $0x188] sm:$0xff] }
 0x150   : > { %1528 = vmatpush.msra.mxu0 %v3425_v9  ;;  %4211 = vst [vmem:[#allocation80_spill] sm:$0xff] %v3428_v3  ;;  %1548 = vmatpush.msra.mxu1 %v3428_v3  ;;  %v3437_v32 = vld [vmem:[#allocation12 + $0x160] sm:$0xff]  ;;  %v3492_v3 = vld [vmem:[#allocation12 + $0xf0] sm:$0xff] }
 0x151   : > { %v1271_v20 = vmul.f32 0.5, %v1242_v8  ;;  %v1275_v10 = vmul.f32 0.5, %v1243_v17  ;;  %v3431_v17 = vld [vmem:[#allocation12 + $0x190] sm:$0xff]  ;;  %4214 = vst [vmem:[#allocation33_spill] sm:$0xff] %v3437_v32 }
 0x152   : > { %4212 = vst [vmem:[#allocation81_spill] sm:$0xff] %v3431_v17  ;;  %1568 = vmatpush.msra.mxu2 %v3431_v17  ;;  %1529 = vmatpush.msra.mxu0 %v3437_v32  ;;  %v3446_v17 = vld [vmem:[#allocation12 + $0x178] sm:$0xff]  ;;  %v3468_v32 = vld [vmem:[#allocation12 + $0x130] sm:$0xff] }
 0x153   : > { %2229 = vtanh.f32 %v1271_v20  ;;  %v3434_v20 = vld [vmem:[#allocation12 + $0x198] sm:$0xff]  ;;  %1549 = vmatpush.msra.mxu1 %v3440_v47  ;;  %4217 = vst [vmem:[#allocation99_spill] sm:$0xff] %v3446_v17  ;;  %v3455_v47 = vld [vmem:[#allocation12 + $0x150] sm:$0xff] }
 0x154   : > { %2231 = vtanh.f32 %v1275_v10  ;;  %4213 = vst [vmem:[#allocation82_spill] sm:$0xff] %v3434_v20  ;;  %1588 = vmatpush.msra.mxu3 %v3434_v20  ;;  %v3443_v10 = vld [vmem:[#allocation12 + $0x170] sm:$0xff]  ;;  %v3474_v20 = vld [vmem:[#allocation12 + $0x100] sm:$0xff] }
 0x155   : > { %v1219_v0 = vpop.f32.mrf.mxu2  ;;  %v1239_v8 = vpop.f32.mrf.mxu3  ;;  %4216 = vst [vmem:[#allocation98_spill] sm:$0xff] %v3443_v10  ;;  %1569 = vmatpush.msra.mxu2 %v3443_v10  ;;  %v3458_v10 = vld [vmem:[#allocation12 + $0x158] sm:$0xff] }
 0x156   : > { %v1244_v15 = vadd.f32 %v1219_v0, %v878_v6  ;;  %v1245_v27 = vadd.f32 %v1239_v8, %v907_v26  ;;  %1589 = vmatpush.msra.mxu3 %v3446_v17  ;;  %v3449_v26 = vld [vmem:[#allocation12 + $0x140] sm:$0xff]  ;;  %v3452_v0 = vld [vmem:[#allocation12 + $0x148] sm:$0xff]  ;;  %4220 = vst [vmem:[#allocation102_spill] sm:$0xff] %v3455_v47 }
 0x157   : > { %4218 = vst [vmem:[#allocation100_spill] sm:$0xff] %v3449_v26  ;;  %1530 = vmatpush.msra.mxu0 %v3449_v26  ;;  %1550 = vmatpush.msra.mxu1 %v3452_v0  ;;  %v3465_v26 = vld [vmem:[#allocation12 + $0x128] sm:$0xff] }
 0x158   : > { %2233 = vtanh.f32 %v1244_v15  ;;  %v1280_v6 = vmul.f32 0.5, %v1245_v27  ;;  %4219 = vst [vmem:[#allocation101_spill] sm:$0xff] %v3452_v0  ;;  %1570 = vmatpush.msra.mxu2 %v3455_v47  ;;  %1590 = vmatpush.msra.mxu3 %v3458_v10  ;;  %v3462_v27 = vld [vmem:[#allocation12 + $0x120] sm:$0xff]  ;;  %v3471_v47 = vld [vmem:[#allocation12 + $0x138] sm:$0xff] }
 0x159   : > { %v2230_v8 = vpop.eup %2229  ;;  %4221 = vst [vmem:[#allocation103_spill] sm:$0xff] %v3458_v10  ;;  %1531 = vmatpush.msra.mxu0 %v3462_v27  ;;  %1551 = vmatpush.msra.mxu1 %v3465_v26  ;;  %v935_v10 = vld [vmem:[#allocation5] sm:$0xff] }
 0x15a   : > { %v2232_v17 = vpop.eup %2231  ;;  %v1273_v15 = vadd.f32 1.0, %v2230_v8  ;;  %4222 = vst [vmem:[#allocation104_spill] sm:$0xff] %v3462_v27  ;;  %2235 = vtanh.f32 %v1280_v6  ;;  %1571 = vmatpush.msra.mxu2 %v3468_v32  ;;  %1591 = vmatpush.msra.mxu3 %v3471_v47  ;;  %v3477_v27 = vld [vmem:[#allocation12 + $0x108] sm:$0xff]  ;;  %v1269_v6 = vstv %s1268_s13 }
 0x15b   : > { %4223 = vst [vmem:[#allocation105_spill] sm:$0xff] %v3465_v26  ;;  %v1277_v0 = vadd.f32 1.0, %v2232_v17  ;;  %1532 = vmatpush.msra.mxu0 %v3474_v20  ;;  %1552 = vmatpush.msra.mxu1 %v3477_v27  ;;  %v3480_v26 = vld [vmem:[#allocation12 + $0x110] sm:$0xff]  ;;  %vm1270_vm1 = vcmp.lt.s32.totalorder %v1269_v6, %v3371_v62 }
 0x15c   : > { %4224 = vst [vmem:[#allocation106_spill] sm:$0xff] %v3468_v32  ;;  %v1274_v8 = vmul.f32 0.5, %v1273_v15  ;;  %1572 = vmatpush.msra.mxu2 %v3480_v26  ;;  %v3483_v32 = vld [vmem:[#allocation12 + $0x118] sm:$0xff]  ;;  %v4263_v6 = vld [vmem:[#allocation68_spill] sm:$0xff] }
 0x15d   : > { %4225 = vst [vmem:[#allocation107_spill] sm:$0xff] %v3471_v47  ;;  %v1278_v17 = vmul.f32 0.5, %v1277_v0  ;;  %1592 = vmatpush.msra.mxu3 %v3483_v32  ;;  %v3486_v47 = vld [vmem:[#allocation12 + $0xe0] sm:$0xff] }
 0x15e   : > { %4226 = vst [vmem:[#allocation108_spill] sm:$0xff] %v3474_v20  ;;  %v2234_v15 = vpop.eup %2233  ;;  %1533 = vmatpush.msra.mxu0 %v3486_v47  ;;  %v3489_v20 = vld [vmem:[#allocation12 + $0xe8] sm:$0xff]  ;;  %1573 = vmatpush.msra.mxu2 %v3492_v3 }
 0x15f   : > { %4227 = vst [vmem:[#allocation109_spill] sm:$0xff] %v3477_v27  ;;  %1553 = vmatpush.msra.mxu1 %v3489_v20  ;;  %v1284_v27 = vmul.f32 %v1278_v17, %v935_v10  ;;  %v1285_v0 = vmul.f32 %v2234_v15, %v1274_v8  ;;  %v3505_v15 = vld [vmem:[#allocation12 + $0xd0] sm:$0xff] }
 0x160   : > { %4228 = vst [vmem:[#allocation110_spill] sm:$0xff] %v3480_v26  ;;  %v3495_v26 = vld [vmem:[#allocation12 + $0xf8] sm:$0xff]  ;;  %v2236_v17 = vpop.eup %2235  ;;  %1574 = vmatpush.msra.mxu2 %v3505_v15 }
 0x161   : > { %4229 = vst [vmem:[#allocation111_spill] sm:$0xff] %v3483_v32  ;;  %1593 = vmatpush.msra.mxu3 %v3495_v26  ;;  %v3499_v32 = vld [vmem:[#allocation12 + $0xc0] sm:$0xff]  ;;  %v1286_v8 = vadd.f32 %v1285_v0, %v1284_v27  ;;  %v1282_v0 = vadd.f32 1.0, %v2236_v17  ;;  %v4264_v17 = vld [vmem:[#allocation69_spill] sm:$0xff] }
 0x162   : > { %4230 = vst [vmem:[#allocation112_spill] sm:$0xff] %v3486_v47  ;;  %1534 = vmatpush.msra.mxu0 %v3499_v32  ;;  %v3502_v47 = vld [vmem:[#allocation12 + $0xc8] sm:$0xff]  ;;  %1575 = vmatpush.msra.mxu2 %v2850_v50 }
 0x163   : > { %4231 = vst [vmem:[#allocation113_spill] sm:$0xff] %v3489_v20  ;;  %1554 = vmatpush.msra.mxu1 %v3502_v47  ;;  %v3514_v20 = vld [vmem:[#allocation12 + $0xa8] sm:$0xff]  ;;  %2237 = vtanh.f32 %v1286_v8  ;;  %v3521_v27 = vsel %vm1270_vm1, %v1286_v8, %v935_v10  ;;  %v1283_v50 = vmul.f32 0.5, %v1282_v0  ;;  %v4265_v8 = vld [vmem:[#allocation70_spill] sm:$0xff] }
 0x164   : > { %4232 = vst [vmem:[#allocation114_spill] sm:$0xff] %v3492_v3  ;;  %v3508_v3 = vld [vmem:[#allocation12 + $0xd8] sm:$0xff]  ;;  %1576 = vmatpush.msra.mxu2 %v2862_v54  ;;  %v4234_v54 = vld [vmem:[#allocation39_spill] sm:$0xff] }
 0x165   : > { %4233 = vst [vmem:[#allocation115_spill] sm:$0xff] %v3495_v26  ;;  %1594 = vmatpush.msra.mxu3 %v3508_v3  ;;  %v3511_v26 = vld [vmem:[#allocation12 + $0xa0] sm:$0xff]  ;;  %1555 = vmatpush.msra.mxu1 %v3514_v20  ;;  %v4262_v10 = vld [vmem:[#allocation67_spill] sm:$0xff] }
 0x166   : > { %1535 = vmatpush.msra.mxu0 %v3511_v26  ;;  %1577 = vmatpush.msra.mxu2 %v2874_v58  ;;  %v4238_v58 = vld [vmem:[#allocation43_spill] sm:$0xff] }
 0x167   : > { %1595 = vmatpush.msra.mxu3 %v2852_v51  ;;  %1556 = vmatpush.msra.mxu1 %v2858_v53  ;;  %v4266_v0 = vld [vmem:[#allocation71_spill] sm:$0xff] }
 0x168   : > { %1536 = vmatpush.msra.mxu0 %v2856_v52  ;;  %1578 = vmatpush.msra.mxu2 %v4124_v24  ;;  %v4243_v24 = vld [vmem:[#allocation48_spill] sm:$0xff] }
 0x169   : > { %1596 = vmatpush.msra.mxu3 %v2864_v55  ;;  %1557 = vmatpush.msra.mxu1 %v2870_v57  ;;  %v2238_v51 = vpop.eup %2237  ;;  %v4235_v55 = vld [vmem:[#allocation40_spill] sm:$0xff]  ;;  %v4237_v57 = vld [vmem:[#allocation42_spill] sm:$0xff] }
 0x16a   : > { %1537 = vmatpush.msra.mxu0 %v2868_v56  ;;  %v1288_v52 = vmul.f32 %v2238_v51, %v1283_v50  ;;  %1579 = vmatpush.msra.mxu2 %v4130_v33  ;;  %v4236_v56 = vld [vmem:[#allocation41_spill] sm:$0xff]  ;;  %v4247_v33 = vld [vmem:[#allocation52_spill] sm:$0xff] }
 0x16b   : > { %1597 = vmatpush.msra.mxu3 %v2876_v59  ;;  %1558 = vmatpush.msra.mxu1 %v4123_v23  ;;  %v4239_v59 = vld [vmem:[#allocation44_spill] sm:$0xff]  ;;  %v4242_v23 = vld [vmem:[#allocation47_spill] sm:$0xff]  ;;  %v4268_v51 = vld [vmem:[#allocation73_spill] sm:$0xff] }
 0x16c   : > { %1538 = vmatpush.msra.mxu0 %v2885_v61  ;;  %v3542_v53 = vsel %vm1270_vm1, %v1288_v52, %v3119_v4  ;;  %1580 = vmatpush.msra.mxu2 %v4134_v37  ;;  %v4240_v61 = vld [vmem:[#allocation45_spill] sm:$0xff]  ;;  %v4241_v4 = vld [vmem:[#allocation46_spill] sm:$0xff]  ;;  %v4251_v37 = vld [vmem:[#allocation56_spill] sm:$0xff] }
 0x16d   : > { %1598 = vmatpush.msra.mxu3 %v4125_v25  ;;  %1559 = vmatpush.msra.mxu1 %v4127_v30  ;;  %v4244_v25 = vld [vmem:[#allocation49_spill] sm:$0xff]  ;;  %v4246_v30 = vld [vmem:[#allocation51_spill] sm:$0xff]  ;;  %v4267_v50 = vld [vmem:[#allocation72_spill] sm:$0xff] }
 0x16e   : > { %1539 = vmatpush.msra.mxu0 %v4126_v29  ;;  %1425 = vmatmul.f32.vlgmr.msrb.gmra.mxu1 %v3542_v53  ;;  %v4245_v29 = vld [vmem:[#allocation50_spill] sm:$0xff] }
 0x16f   : > { %1599 = vmatpush.msra.mxu3 %v4131_v34  ;;  %1560 = vmatpush.msra.mxu1 %v4133_v36  ;;  %v4248_v34 = vld [vmem:[#allocation53_spill] sm:$0xff]  ;;  %v4250_v36 = vld [vmem:[#allocation55_spill] sm:$0xff]  ;;  %v4269_v52 = vld [vmem:[#allocation74_spill] sm:$0xff] }
 0x170   : > { %1540 = vmatpush.msra.mxu0 %v4132_v35  ;;  %1445 = vmatmul.f32.vlgmr.msrb.gmra.mxu2 %v3542_v53  ;;  %v4249_v35 = vld [vmem:[#allocation54_spill] sm:$0xff] }
 0x171   : > { %1405 = vmatmul.f32.vlgmr.msrb.gmra.mxu0 %v3542_v53  ;;  %1465 = vmatmul.f32.vlgmr.msrb.gmra.mxu3 %v3542_v53 }
 0x172   : > { %1600 = vmatpush.msra.mxu3 %v4135_v38  ;;  %1615 = vmatpush.msrb.mxu0 %v4136_v39  ;;  %v4252_v38 = vld [vmem:[#allocation57_spill] sm:$0xff]  ;;  %v4253_v39 = vld [vmem:[#allocation58_spill] sm:$0xff] }
 0x173   : > { %1635 = vmatpush.msrb.mxu1 %v4137_v40  ;;  %1655 = vmatpush.msrb.mxu2 %v4138_v41  ;;  %v4254_v40 = vld [vmem:[#allocation59_spill] sm:$0xff]  ;;  %v4255_v41 = vld [vmem:[#allocation60_spill] sm:$0xff] }
 0x174   : > { %1675 = vmatpush.msrb.mxu3 %v4139_v42  ;;  %1616 = vmatpush.msrb.mxu0 %v4140_v44  ;;  %v4256_v42 = vld [vmem:[#allocation61_spill] sm:$0xff]  ;;  %v4257_v44 = vld [vmem:[#allocation62_spill] sm:$0xff] }
 0x175   : > { %1636 = vmatpush.msrb.mxu1 %v4141_v45  ;;  %1656 = vmatpush.msrb.mxu2 %v4142_v48  ;;  %v4258_v45 = vld [vmem:[#allocation63_spill] sm:$0xff]  ;;  %v4259_v48 = vld [vmem:[#allocation64_spill] sm:$0xff] }
 0x176   : > { %1676 = vmatpush.msrb.mxu3 %v4143_v49  ;;  %1617 = vmatpush.msrb.mxu0 %v4146_v7  ;;  %v4260_v49 = vld [vmem:[#allocation65_spill] sm:$0xff]  ;;  %v4261_v7 = vld [vmem:[#allocation66_spill] sm:$0xff] }
 0x177   : > { %1637 = vmatpush.msrb.mxu1 %v4234_v54  ;;  %1657 = vmatpush.msrb.mxu2 %v4235_v55  ;;  %v4270_v54 = vld [vmem:[#allocation75_spill] sm:$0xff]  ;;  %v4271_v55 = vld [vmem:[#allocation76_spill] sm:$0xff] }
 0x178   : > { %1677 = vmatpush.msrb.mxu3 %v4236_v56  ;;  %1618 = vmatpush.msrb.mxu0 %v4237_v57  ;;  %v4272_v56 = vld [vmem:[#allocation77_spill] sm:$0xff]  ;;  %v4273_v57 = vld [vmem:[#allocation78_spill] sm:$0xff] }
 0x179   : > { %1638 = vmatpush.msrb.mxu1 %v4238_v58  ;;  %1658 = vmatpush.msrb.mxu2 %v4239_v59  ;;  %v4274_v58 = vld [vmem:[#allocation79_spill] sm:$0xff] }
 0x17a   : > { %1678 = vmatpush.msrb.mxu3 %v4240_v61  ;;  %1619 = vmatpush.msrb.mxu0 %v4241_v4  ;;  %v4275_v59 = vld [vmem:[#allocation83_spill] sm:$0xff]  ;;  %v4276_v61 = vld [vmem:[#allocation84_spill] sm:$0xff]  ;;  %v4277_v4 = vld [vmem:[#allocation85_spill] sm:$0xff] }
 0x17b   : > { %1639 = vmatpush.msrb.mxu1 %v4242_v23  ;;  %1659 = vmatpush.msrb.mxu2 %v4243_v24  ;;  %v4278_v23 = vld [vmem:[#allocation86_spill] sm:$0xff]  ;;  %v4279_v24 = vld [vmem:[#allocation87_spill] sm:$0xff] }
 0x17c   : > { %1679 = vmatpush.msrb.mxu3 %v4244_v25  ;;  %1620 = vmatpush.msrb.mxu0 %v4245_v29  ;;  %v4280_v25 = vld [vmem:[#allocation88_spill] sm:$0xff]  ;;  %v4281_v29 = vld [vmem:[#allocation89_spill] sm:$0xff] }
 0x17d   : > { %1640 = vmatpush.msrb.mxu1 %v4246_v30  ;;  %1660 = vmatpush.msrb.mxu2 %v4247_v33  ;;  %v4285_v33 = vld [vmem:[#allocation93_spill] sm:$0xff] }
 0x17e   : > { %1680 = vmatpush.msrb.mxu3 %v4248_v34  ;;  %1621 = vmatpush.msrb.mxu0 %v4249_v35  ;;  %v4286_v35 = vld [vmem:[#allocation94_spill] sm:$0xff] }
 0x17f   : > { %1641 = vmatpush.msrb.mxu1 %v4250_v36  ;;  %1661 = vmatpush.msrb.mxu2 %v4251_v37 }
 0x180   : > { %1681 = vmatpush.msrb.mxu3 %v4252_v38  ;;  %1622 = vmatpush.msrb.mxu0 %v4253_v39 }
 0x181   : > { %1642 = vmatpush.msrb.mxu1 %v4254_v40  ;;  %1662 = vmatpush.msrb.mxu2 %v4255_v41  ;;  %v4287_v41 = vld [vmem:[#allocation95_spill] sm:$0xff] }
 0x182   : > { %1682 = vmatpush.msrb.mxu3 %v4256_v42  ;;  %1623 = vmatpush.msrb.mxu0 %v4257_v44  ;;  %v4288_v44 = vld [vmem:[#allocation96_spill] sm:$0xff] }
 0x183   : > { %1643 = vmatpush.msrb.mxu1 %v4258_v45  ;;  %1663 = vmatpush.msrb.mxu2 %v4259_v48 }
 0x184   : > { %1683 = vmatpush.msrb.mxu3 %v4260_v49  ;;  %1624 = vmatpush.msrb.mxu0 %v4261_v7 }
 0x185   : > { %1644 = vmatpush.msrb.mxu1 %v4262_v10  ;;  %1664 = vmatpush.msrb.mxu2 %v4263_v6 }
 0x186   : > { %1684 = vmatpush.msrb.mxu3 %v4264_v17  ;;  %1625 = vmatpush.msrb.mxu0 %v4265_v8 }
 0x187   : > { %1645 = vmatpush.msrb.mxu1 %v4266_v0  ;;  %1665 = vmatpush.msrb.mxu2 %v4267_v50 }
 0x188   : > { %1685 = vmatpush.msrb.mxu3 %v4268_v51  ;;  %1626 = vmatpush.msrb.mxu0 %v4269_v52  ;;  %v1474_v52 = vstv %s1473_s14 }
 0x189   : > { %1646 = vmatpush.msrb.mxu1 %v4270_v54  ;;  %1666 = vmatpush.msrb.mxu2 %v4271_v55  ;;  %vm1475_vm2 = vcmp.lt.s32.totalorder %v1474_v52, %v3371_v62  ;;  %v4314_v52 = vld [vmem:[#allocation114_spill] sm:$0xff] }
 0x18a   : > { %1686 = vmatpush.msrb.mxu3 %v4272_v56  ;;  %1627 = vmatpush.msrb.mxu0 %v4273_v57 }
 0x18b   : > { %1647 = vmatpush.msrb.mxu1 %v4274_v58  ;;  %1667 = vmatpush.msrb.mxu2 %v4194_v28  ;;  %v4282_v28 = vld [vmem:[#allocation90_spill] sm:$0xff] }
 0x18c   : > { %1687 = vmatpush.msrb.mxu3 %v4195_v14  ;;  %1628 = vmatpush.msrb.mxu0 %v3079_v63  ;;  %v4283_v14 = vld [vmem:[#allocation91_spill] sm:$0xff]  ;;  %v4284_v63 = vld [vmem:[#allocation92_spill] sm:$0xff] }
 0x18d   : > { %1648 = vmatpush.msrb.mxu1 %v4198_v31  ;;  %1668 = vmatpush.msrb.mxu2 %v4275_v59 }
 0x18e   : > { %1688 = vmatpush.msrb.mxu3 %v4276_v61  ;;  %1629 = vmatpush.msrb.mxu0 %v4277_v4 }
 0x18f   : > { %1649 = vmatpush.msrb.mxu1 %v4278_v23  ;;  %1669 = vmatpush.msrb.mxu2 %v4279_v24 }
 0x190   : > { %1689 = vmatpush.msrb.mxu3 %v4280_v25  ;;  %1630 = vmatpush.msrb.mxu0 %v4281_v29  ;;  %v4290_v29 = vld [vmem:[#allocation36_spill] sm:$0xff] }
 0x191   : > { %1650 = vmatpush.msrb.mxu1 %v4282_v28  ;;  %1670 = vmatpush.msrb.mxu2 %v4283_v14 }
 0x192   : > { %1690 = vmatpush.msrb.mxu3 %v4284_v63  ;;  %v4299_v63 = vld [vmem:[#allocation99_spill] sm:$0xff] }
 0x1c2   : > { %v1315_v31 = vpop.f32.mrf.mxu0  ;;  %v1335_v30 = vpop.f32.mrf.mxu1 }
 0x1c3   : > { %v1378_v34 = vadd.f32 %v1315_v31, %v4285_v33  ;;  %v1379_v36 = vadd.f32 %v1335_v30, %v4286_v35  ;;  %v4300_v31 = vld [vmem:[#allocation100_spill] sm:$0xff]  ;;  %v4301_v30 = vld [vmem:[#allocation101_spill] sm:$0xff]  ;;  %v4303_v35 = vld [vmem:[#allocation103_spill] sm:$0xff] }
 0x1c5   : > { %v1476_v37 = vmul.f32 0.5, %v1378_v34  ;;  %v1480_v38 = vmul.f32 0.5, %v1379_v36  ;;  %v4302_v34 = vld [vmem:[#allocation102_spill] sm:$0xff] }
 0x1c7   : > { %2239 = vtanh.f32 %v1476_v37 }
 0x1c8   : > { %2241 = vtanh.f32 %v1480_v38  ;;  %v4304_v38 = vld [vmem:[#allocation104_spill] sm:$0xff] }
 0x1c9   : > { %v1355_v39 = vpop.f32.mrf.mxu2  ;;  %v1375_v40 = vpop.f32.mrf.mxu3 }
 0x1ca   : > { %v1380_v42 = vadd.f32 %v1355_v39, %v4287_v41  ;;  %v1381_v45 = vadd.f32 %v1375_v40, %v4288_v44  ;;  %v4305_v39 = vld [vmem:[#allocation105_spill] sm:$0xff]  ;;  %v4306_v41 = vld [vmem:[#allocation106_spill] sm:$0xff] }
 0x1cc   : > { %2243 = vtanh.f32 %v1380_v42  ;;  %v1485_v48 = vmul.f32 0.5, %v1381_v45  ;;  %v4307_v42 = vld [vmem:[#allocation107_spill] sm:$0xff]  ;;  %v4308_v45 = vld [vmem:[#allocation108_spill] sm:$0xff] }
 0x1cd   : > { %v2240_v49 = vpop.eup %2239 }
 0x1ce   : > { %v2242_v7 = vpop.eup %2241  ;;  %v1478_v10 = vadd.f32 1.0, %v2240_v49  ;;  %2245 = vtanh.f32 %v1485_v48  ;;  %v4309_v48 = vld [vmem:[#allocation109_spill] sm:$0xff] }
 0x1cf   : > { %v1482_v6 = vadd.f32 1.0, %v2242_v7  ;;  %v4310_v7 = vld [vmem:[#allocation110_spill] sm:$0xff] }
 0x1d0   : > { %v1479_v17 = vmul.f32 0.5, %v1478_v10  ;;  %v4311_v10 = vld [vmem:[#allocation111_spill] sm:$0xff] }
 0x1d1   : > { %v1483_v8 = vmul.f32 0.5, %v1482_v6 }
 0x1d2   : > { %v2244_v0 = vpop.eup %2243 }
 0x1d3   : > { %v1489_v50 = vmul.f32 %v1483_v8, %v3374_v19  ;;  %v1490_v51 = vmul.f32 %v2244_v0, %v1479_v17  ;;  %v4312_v17 = vld [vmem:[#allocation112_spill] sm:$0xff]  ;;  %v4313_v8 = vld [vmem:[#allocation113_spill] sm:$0xff] }
 0x1d4   : > { %v2246_v54 = vpop.eup %2245 }
 0x1d5   : > { %v1491_v55 = vadd.f32 %v1490_v51, %v1489_v50  ;;  %v1487_v57 = vadd.f32 1.0, %v2246_v54  ;;  %v1497_v51 = vstv %s1496_s16  ;;  %v4315_v54 = vld [vmem:[#allocation115_spill] sm:$0xff] }
 0x1d6   : > { %vm1498_vm3 = vcmp.lt.s32.totalorder %v1497_v51, %v3371_v62  ;;  %v2391_v51 = vld [vmem:[#allocation13 + $0x100] sm:$0xff] }
 0x1d7   : > { %2247 = vtanh.f32 %v1491_v55  ;;  %v3624_v56 = vsel %vm1475_vm2, %v1491_v55, %v3374_v19  ;;  %v1488_v58 = vmul.f32 0.5, %v1487_v57  ;;  %v4289_v19 = vld [vmem:[#allocation35_spill] sm:$0xff] }
 0x1dd   : > { %v2248_v59 = vpop.eup %2247 }
 0x1de   : > { %v1493_v61 = vmul.f32 %v2248_v59, %v1488_v58  ;;  %v2341_v58 = vld [vmem:[#allocation12 + $0xb0] sm:$0xff]  ;;  %v2342_v59 = vld [vmem:[#allocation12 + $0xb8] sm:$0xff] }
 0x1e0   : > { %v3627_v4 = vsel %vm1475_vm2, %v1493_v61, %v3377_v12  ;;  %v2345_v61 = vld [vmem:[#allocation12 + $0x90] sm:$0xff] }
 0x1e1   : > { %1541 = vmatmul.f32.vlgmr.msra.gmra.mxu0 %v3627_v4  ;;  %1561 = vmatmul.f32.vlgmr.msra.gmra.mxu1 %v3627_v4 }
 0x1e2   : > { %1581 = vmatmul.f32.vlgmr.msra.gmra.mxu2 %v3627_v4  ;;  %1601 = vmatmul.f32.vlgmr.msra.gmra.mxu3 %v3627_v4 }
 0x1e3   : > { %1751 = vmatpush.msra.mxu0 %v3385_v21  ;;  %1771 = vmatpush.msra.mxu1 %v3388_v22  ;;  %v4291_v21 = vld [vmem:[#allocation80_spill] sm:$0xff] }
 0x1e4   : > { %1791 = vmatpush.msra.mxu2 %v3391_v60  ;;  %1811 = vmatpush.msra.mxu3 %v3394_v1  ;;  %v4292_v1 = vld [vmem:[#allocation81_spill] sm:$0xff] }
 0x1e5   : > { %1752 = vmatpush.msra.mxu0 %v3397_v46  ;;  %1772 = vmatpush.msra.mxu1 %v3400_v16  ;;  %v4293_v46 = vld [vmem:[#allocation82_spill] sm:$0xff]  ;;  %v4294_v16 = vld [vmem:[#allocation37_spill] sm:$0xff] }
 0x1e6   : > { %1792 = vmatpush.msra.mxu2 %v3403_v18  ;;  %1812 = vmatpush.msra.mxu3 %v3406_v13  ;;  %v4295_v13 = vld [vmem:[#allocation38_spill] sm:$0xff] }
 0x1e7   : > { %1753 = vmatpush.msra.mxu0 %v3409_v2  ;;  %1773 = vmatpush.msra.mxu1 %v3412_v43  ;;  %v4296_v43 = vld [vmem:[#allocation33_spill] sm:$0xff] }
 0x1e8   : > { %1793 = vmatpush.msra.mxu2 %v3415_v5  ;;  %1813 = vmatpush.msra.mxu3 %v3418_v11  ;;  %v4297_v5 = vld [vmem:[#allocation97_spill] sm:$0xff]  ;;  %v4298_v11 = vld [vmem:[#allocation98_spill] sm:$0xff] }
 0x1e9   : > { %1754 = vmatpush.msra.mxu0 %v3425_v9  ;;  %1774 = vmatpush.msra.mxu1 %v4291_v21 }
 0x1ea   : > { %1794 = vmatpush.msra.mxu2 %v4292_v1  ;;  %1814 = vmatpush.msra.mxu3 %v4293_v46  ;;  %v2357_v1 = vld [vmem:[#allocation12 + $0x30] sm:$0xff]  ;;  %v2358_v46 = vld [vmem:[#allocation12 + $0x38] sm:$0xff] }
 0x1eb   : > { %v1426_v24 = vpop.f32.mrf.mxu1  ;;  %1755 = vmatpush.msra.mxu0 %v4296_v43  ;;  %1775 = vmatpush.msra.mxu1 %v4297_v5  ;;  %v2362_v43 = vld [vmem:[#allocation12 + $0x18] sm:$0xff]  ;;  %v2363_v5 = vld [vmem:[#allocation13 + $0x1e0] sm:$0xff] }
 0x1ec   : > { %v1470_v28 = vadd.f32 %v1426_v24, %v4290_v29  ;;  %1795 = vmatpush.msra.mxu2 %v4298_v11  ;;  %1815 = vmatpush.msra.mxu3 %v4299_v63  ;;  %v2349_v24 = vld [vmem:[#allocation12 + $0x70] sm:$0xff]  ;;  %v2352_v29 = vld [vmem:[#allocation12 + $0x48] sm:$0xff]  ;;  %v2366_v63 = vld [vmem:[#allocation13 + $0x1f8] sm:$0xff] }
 0x1ed   : > { %1756 = vmatpush.msra.mxu0 %v4300_v31  ;;  %1776 = vmatpush.msra.mxu1 %v4301_v30  ;;  %v2365_v11 = vld [vmem:[#allocation13 + $0x1f0] sm:$0xff]  ;;  %v2368_v31 = vld [vmem:[#allocation13 + $0x1c8] sm:$0xff] }
 0x1ee   : > { %v1406_v23 = vpop.f32.mrf.mxu0  ;;  %v1503_v14 = vmul.f32 0.5, %v1470_v28  ;;  %1796 = vmatpush.msra.mxu2 %v4302_v34  ;;  %1816 = vmatpush.msra.mxu3 %v4303_v35  ;;  %v2369_v30 = vld [vmem:[#allocation13 + $0x1d0] sm:$0xff]  ;;  %v2371_v34 = vld [vmem:[#allocation13 + $0x1a0] sm:$0xff]  ;;  %v2372_v35 = vld [vmem:[#allocation13 + $0x1a8] sm:$0xff] }
 0x1ef   : > { %v1469_v25 = vadd.f32 %v1406_v23, %v4289_v19  ;;  %1757 = vmatpush.msra.mxu0 %v4304_v38  ;;  %1777 = vmatpush.msra.mxu1 %v4305_v39  ;;  %v2348_v23 = vld [vmem:[#allocation12 + $0x68] sm:$0xff]  ;;  %v2350_v19 = vld [vmem:[#allocation12 + $0x78] sm:$0xff]  ;;  %v2375_v38 = vld [vmem:[#allocation13 + $0x180] sm:$0xff] }
 0x1f0   : > { %1797 = vmatpush.msra.mxu2 %v4306_v41  ;;  %1817 = vmatpush.msra.mxu3 %v4307_v42  ;;  %v2376_v39 = vld [vmem:[#allocation13 + $0x188] sm:$0xff]  ;;  %v2378_v41 = vld [vmem:[#allocation13 + $0x198] sm:$0xff]  ;;  %v2379_v42 = vld [vmem:[#allocation13 + $0x160] sm:$0xff] }
 0x1f1   : > { %v1499_v12 = vmul.f32 0.5, %v1469_v25  ;;  %1758 = vmatpush.msra.mxu0 %v4308_v45  ;;  %1778 = vmatpush.msra.mxu1 %v4309_v48  ;;  %v2381_v45 = vld [vmem:[#allocation13 + $0x170] sm:$0xff]  ;;  %v2382_v48 = vld [vmem:[#allocation13 + $0x178] sm:$0xff] }
 0x1f2   : > { %1798 = vmatpush.msra.mxu2 %v4310_v7  ;;  %1818 = vmatpush.msra.mxu3 %v4311_v10  ;;  %v2384_v7 = vld [vmem:[#allocation13 + $0x148] sm:$0xff]  ;;  %v2385_v10 = vld [vmem:[#allocation13 + $0x150] sm:$0xff] }
 0x1f3   : > { %2249 = vtanh.f32 %v1499_v12  ;;  %v1446_v22 = vpop.f32.mrf.mxu2  ;;  %1759 = vmatpush.msra.mxu0 %v4312_v17  ;;  %1779 = vmatpush.msra.mxu1 %v4313_v8  ;;  %v2353_v12 = vld [vmem:[#allocation12 + $0x50] sm:$0xff]  ;;  %v2387_v17 = vld [vmem:[#allocation13 + $0x120] sm:$0xff]  ;;  %v2388_v8 = vld [vmem:[#allocation13 + $0x128] sm:$0xff] }
 0x1f4   : > { %2251 = vtanh.f32 %v1503_v14  ;;  %v1466_v60 = vpop.f32.mrf.mxu3  ;;  %v1471_v18 = vadd.f32 %v1446_v22, %v4294_v16  ;;  %1799 = vmatpush.msra.mxu2 %v4314_v52  ;;  %1819 = vmatpush.msra.mxu3 %v4315_v54  ;;  %v2354_v14 = vld [vmem:[#allocation12 + $0x58] sm:$0xff]  ;;  %v2355_v22 = vld [vmem:[#allocation12 + $0x20] sm:$0xff]  ;;  %v2392_v52 = vld [vmem:[#allocation13 + $0x108] sm:$0xff] }
 0x1f5   : > { %v1472_v2 = vadd.f32 %v1466_v60, %v4295_v13  ;;  %1760 = vmatpush.msra.mxu0 %v3499_v32  ;;  %1780 = vmatpush.msra.mxu1 %v3502_v47  ;;  %v2356_v60 = vld [vmem:[#allocation12 + $0x28] sm:$0xff]  ;;  %v2393_v54 = vld [vmem:[#allocation13 + $0x110] sm:$0xff] }
 0x1f6   : > { %2253 = vtanh.f32 %v1471_v18  ;;  %1800 = vmatpush.msra.mxu2 %v3505_v15  ;;  %1820 = vmatpush.msra.mxu3 %v3508_v3  ;;  %v2343_v15 = vld [vmem:[#allocation12 + $0x80] sm:$0xff]  ;;  %v2344_v3 = vld [vmem:[#allocation12 + $0x88] sm:$0xff] }
 0x1f7   : > { %v1508_v9 = vmul.f32 0.5, %v1472_v2  ;;  %1761 = vmatpush.msra.mxu0 %v3511_v26  ;;  %1781 = vmatpush.msra.mxu1 %v3514_v20  ;;  %v2346_v26 = vld [vmem:[#allocation12 + $0x98] sm:$0xff]  ;;  %v2347_v20 = vld [vmem:[#allocation12 + $0x60] sm:$0xff]  ;;  %v2360_v13 = vld [vmem:[#allocation12 + $0x8] sm:$0xff] }
 0x1f8   : > { %1801 = vmatpush.msra.mxu2 %v2341_v58  ;;  %1821 = vmatpush.msra.mxu3 %v2342_v59  ;;  %v2359_v18 = vld [vmem:[#allocation12] sm:$0xff]  ;;  %v2361_v2 = vld [vmem:[#allocation12 + $0x10] sm:$0xff]  ;;  %v2396_v58 = vld [vmem:[#allocation13 + $0xe8] sm:$0xff] }
 0x1f9   : > { %v2250_v33 = vpop.eup %2249  ;;  %2255 = vtanh.f32 %v1508_v9  ;;  %1762 = vmatpush.msra.mxu0 %v2343_v15  ;;  %1782 = vmatpush.msra.mxu1 %v2344_v3  ;;  %v2367_v9 = vld [vmem:[#allocation13 + $0x1c0] sm:$0xff]  ;;  %v2397_v59 = vld [vmem:[#allocation13 + $0xf0] sm:$0xff]  ;;  %v2400_v3 = vld [vmem:[#allocation13 + $0xc8] sm:$0xff] }
 0x1fa   : > { %v2252_v36 = vpop.eup %2251  ;;  %v1501_v37 = vadd.f32 1.0, %v2250_v33  ;;  %1802 = vmatpush.msra.mxu2 %v2345_v61  ;;  %1822 = vmatpush.msra.mxu3 %v2346_v26  ;;  %v2370_v33 = vld [vmem:[#allocation13 + $0x1d8] sm:$0xff]  ;;  %v2399_v15 = vld [vmem:[#allocation13 + $0xc0] sm:$0xff]  ;;  %v2401_v61 = vld [vmem:[#allocation13 + $0xd0] sm:$0xff] }
 0x1fb   : > { %v1505_v40 = vadd.f32 1.0, %v2252_v36  ;;  %1763 = vmatpush.msra.mxu0 %v2347_v20  ;;  %1783 = vmatpush.msra.mxu1 %v2348_v23  ;;  %v2373_v36 = vld [vmem:[#allocation13 + $0x1b0] sm:$0xff]  ;;  %v2402_v26 = vld [vmem:[#allocation13 + $0xd8] sm:$0xff]  ;;  %v2403_v20 = vld [vmem:[#allocation13 + $0xa0] sm:$0xff] }
 0x1fc   : > { %v1502_v44 = vmul.f32 0.5, %v1501_v37  ;;  %v2254_v6 = vpop.eup %2253  ;;  %1803 = vmatpush.msra.mxu2 %v2349_v24  ;;  %1823 = vmatpush.msra.mxu3 %v2350_v19  ;;  %v2374_v37 = vld [vmem:[#allocation13 + $0x1b8] sm:$0xff]  ;;  %v2404_v23 = vld [vmem:[#allocation13 + $0xa8] sm:$0xff]  ;;  %v2405_v24 = vld [vmem:[#allocation13 + $0xb0] sm:$0xff] }
 0x1fd   : > { %v1506_v49 = vmul.f32 0.5, %v1505_v40  ;;  %1784 = vmatpush.msra.mxu1 %v2352_v29  ;;  %v2377_v40 = vld [vmem:[#allocation13 + $0x190] sm:$0xff]  ;;  %v2406_v19 = vld [vmem:[#allocation13 + $0xb8] sm:$0xff] }
 0x1fe   : > { %v1513_v50 = vmul.f32 %v2254_v6, %v1502_v44  ;;  %1804 = vmatpush.msra.mxu2 %v2353_v12  ;;  %1824 = vmatpush.msra.mxu3 %v2354_v14  ;;  %v2380_v44 = vld [vmem:[#allocation13 + $0x168] sm:$0xff]  ;;  %v2386_v6 = vld [vmem:[#allocation13 + $0x158] sm:$0xff]  ;;  %v2409_v29 = vld [vmem:[#allocation13 + $0x90] sm:$0xff] }
 0x1ff   : > { %v1512_v0 = vmul.f32 %v1506_v49, %v3521_v27  ;;  %v2256_v55 = vpop.eup %2255  ;;  %1785 = vmatpush.msra.mxu1 %v2356_v60  ;;  %v2383_v49 = vld [vmem:[#allocation13 + $0x140] sm:$0xff]  ;;  %v2412_v14 = vld [vmem:[#allocation13 + $0x68] sm:$0xff] }
 0x200   : > { %v1510_v47 = vadd.f32 1.0, %v2256_v55  ;;  %1805 = vmatpush.msra.mxu2 %v2357_v1  ;;  %1825 = vmatpush.msra.mxu3 %v2358_v46  ;;  %v2394_v55 = vld [vmem:[#allocation13 + $0x118] sm:$0xff]  ;;  %v2411_v12 = vld [vmem:[#allocation13 + $0x60] sm:$0xff]  ;;  %v2416_v1 = vld [vmem:[#allocation13 + $0x48] sm:$0xff] }
 0x201   : > { %v1514_v57 = vadd.f32 %v1513_v50, %v1512_v0  ;;  %1786 = vmatpush.msra.mxu1 %v2360_v13  ;;  %v2389_v0 = vld [vmem:[#allocation13 + $0x130] sm:$0xff]  ;;  %v2390_v50 = vld [vmem:[#allocation13 + $0x138] sm:$0xff]  ;;  %v2415_v60 = vld [vmem:[#allocation13 + $0x40] sm:$0xff] }
 0x202   : > { %v1511_v25 = vmul.f32 0.5, %v1510_v47  ;;  %1806 = vmatpush.msra.mxu2 %v2361_v2  ;;  %1826 = vmatpush.msra.mxu3 %v2362_v43  ;;  %v2398_v47 = vld [vmem:[#allocation13 + $0xf8] sm:$0xff]  ;;  %v2417_v46 = vld [vmem:[#allocation13 + $0x50] sm:$0xff]  ;;  %v2419_v13 = vld [vmem:[#allocation13 + $0x20] sm:$0xff] }
 0x203   : > { %2257 = vtanh.f32 %v1514_v57  ;;  %v3685_v32 = vsel %vm1498_vm3, %v1514_v57, %v3521_v27  ;;  %v2351_v27 = vld [vmem:[#allocation12 + $0x40] sm:$0xff]  ;;  %v2420_v2 = vld [vmem:[#allocation13 + $0x28] sm:$0xff]  ;;  %v2421_v43 = vld [vmem:[#allocation13 + $0x30] sm:$0xff] }
 0x204   : > { %1764 = vmatpush.msra.mxu0 %v2351_v27  ;;  %v2395_v57 = vld [vmem:[#allocation13 + $0xe0] sm:$0xff]  ;;  %v2408_v27 = vld [vmem:[#allocation13 + $0x88] sm:$0xff] }
 0x206   : > { %1765 = vmatpush.msra.mxu0 %v2355_v22  ;;  %v2414_v22 = vld [vmem:[#allocation13 + $0x78] sm:$0xff] }
 0x208   : > { %1766 = vmatpush.msra.mxu0 %v2359_v18  ;;  %v2418_v18 = vld [vmem:[#allocation13 + $0x58] sm:$0xff] }
 0x209   : > { %v2258_v28 = vpop.eup %2257 }
 0x20a   : > { %v1516_v21 = vmul.f32 %v2258_v28, %v1511_v25  ;;  %v2407_v25 = vld [vmem:[#allocation13 + $0x80] sm:$0xff]  ;;  %v2410_v28 = vld [vmem:[#allocation13 + $0x98] sm:$0xff] }
 0x20c   : > { %v3690_v16 = vsel %vm1498_vm3, %v1516_v21, %v3542_v53  ;;  %v2364_v53 = vld [vmem:[#allocation13 + $0x1e8] sm:$0xff]  ;;  %v2413_v21 = vld [vmem:[#allocation13 + $0x70] sm:$0xff] }
 0x20d   : > { %1631 = vmatmul.f32.vlgmr.msrb.gmra.mxu0 %v3690_v16  ;;  %1651 = vmatmul.f32.vlgmr.msrb.gmra.mxu1 %v3690_v16 }
 0x20e   : > { %1671 = vmatmul.f32.vlgmr.msrb.gmra.mxu2 %v3690_v16  ;;  %1691 = vmatmul.f32.vlgmr.msrb.gmra.mxu3 %v3690_v16 }
 0x20f   : > { %1841 = vmatpush.msrb.mxu0 %v2363_v5  ;;  %1861 = vmatpush.msrb.mxu1 %v2364_v53  ;;  %v2422_v5 = vld [vmem:[#allocation13 + $0x38] sm:$0xff]  ;;  %v2423_v53 = vld [vmem:[#allocation13] sm:$0xff] }
 0x210   : > { %1881 = vmatpush.msrb.mxu2 %v2365_v11  ;;  %1901 = vmatpush.msrb.mxu3 %v2366_v63  ;;  %v2424_v11 = vld [vmem:[#allocation13 + $0x8] sm:$0xff]  ;;  %v2425_v63 = vld [vmem:[#allocation13 + $0x10] sm:$0xff] }
 0x211   : > { %1842 = vmatpush.msrb.mxu0 %v2367_v9  ;;  %1862 = vmatpush.msrb.mxu1 %v2368_v31  ;;  %v2426_v9 = vld [vmem:[#allocation13 + $0x18] sm:$0xff] }
 0x212   : > { %1882 = vmatpush.msrb.mxu2 %v2369_v30  ;;  %1902 = vmatpush.msrb.mxu3 %v2370_v33  ;;  %v4316_v33 = vld [vmem:[#allocation18_spill] sm:$0xff] }
 0x213   : > { %1843 = vmatpush.msrb.mxu0 %v2371_v34  ;;  %1863 = vmatpush.msrb.mxu1 %v2372_v35  ;;  %v4317_v35 = vld [vmem:[#allocation19_spill] sm:$0xff] }
 0x214   : > { %1883 = vmatpush.msrb.mxu2 %v2373_v36  ;;  %1903 = vmatpush.msrb.mxu3 %v2374_v37 }
 0x215   : > { %1844 = vmatpush.msrb.mxu0 %v2375_v38  ;;  %1864 = vmatpush.msrb.mxu1 %v2376_v39 }
 0x216   : > { %1884 = vmatpush.msrb.mxu2 %v2377_v40  ;;  %1904 = vmatpush.msrb.mxu3 %v2378_v41  ;;  %v4318_v41 = vld [vmem:[#allocation20_spill] sm:$0xff] }
 0x217   : > { %1845 = vmatpush.msrb.mxu0 %v2379_v42  ;;  %1865 = vmatpush.msrb.mxu1 %v2380_v44  ;;  %v4319_v44 = vld [vmem:[#allocation21_spill] sm:$0xff] }
 0x218   : > { %1885 = vmatpush.msrb.mxu2 %v2381_v45  ;;  %1905 = vmatpush.msrb.mxu3 %v2382_v48 }
 0x219   : > { %1846 = vmatpush.msrb.mxu0 %v2383_v49  ;;  %1866 = vmatpush.msrb.mxu1 %v2384_v7 }
 0x21a   : > { %1886 = vmatpush.msrb.mxu2 %v2385_v10  ;;  %1906 = vmatpush.msrb.mxu3 %v2386_v6 }
 0x21b   : > { %1847 = vmatpush.msrb.mxu0 %v2387_v17  ;;  %1867 = vmatpush.msrb.mxu1 %v2388_v8 }
 0x21c   : > { %1887 = vmatpush.msrb.mxu2 %v2389_v0  ;;  %1907 = vmatpush.msrb.mxu3 %v2390_v50 }
 0x21d   : > { %1848 = vmatpush.msrb.mxu0 %v2391_v51  ;;  %1868 = vmatpush.msrb.mxu1 %v2392_v52  ;;  %v1700_v52 = vstv %s1699_s18 }
 0x21e   : > { %1888 = vmatpush.msrb.mxu2 %v2393_v54  ;;  %1908 = vmatpush.msrb.mxu3 %v2394_v55  ;;  %vm1701_vm4 = vcmp.lt.s32.totalorder %v1700_v52, %v3371_v62 }
 0x21f   : > { %1849 = vmatpush.msrb.mxu0 %v2395_v57  ;;  %1869 = vmatpush.msrb.mxu1 %v2396_v58 }
 0x220   : > { %1889 = vmatpush.msrb.mxu2 %v2397_v59  ;;  %1909 = vmatpush.msrb.mxu3 %v2398_v47 }
 0x221   : > { %1850 = vmatpush.msrb.mxu0 %v2399_v15  ;;  %1870 = vmatpush.msrb.mxu1 %v2400_v3 }
 0x222   : > { %1890 = vmatpush.msrb.mxu2 %v2401_v61  ;;  %1910 = vmatpush.msrb.mxu3 %v2402_v26 }
 0x223   : > { %1851 = vmatpush.msrb.mxu0 %v2403_v20  ;;  %1871 = vmatpush.msrb.mxu1 %v2404_v23  ;;  %v4320_v20 = vld [vmem:[#allocation30_spill] sm:$0xff]  ;;  %v4321_v23 = vld [vmem:[#allocation31_spill] sm:$0xff] }
 0x224   : > { %1891 = vmatpush.msrb.mxu2 %v2405_v24  ;;  %1911 = vmatpush.msrb.mxu3 %v2406_v19 }
 0x225   : > { %1852 = vmatpush.msrb.mxu0 %v2407_v25  ;;  %1872 = vmatpush.msrb.mxu1 %v2408_v27 }
 0x226   : > { %1892 = vmatpush.msrb.mxu2 %v2409_v29  ;;  %1912 = vmatpush.msrb.mxu3 %v2410_v28  ;;  %v4322_v29 = vld [vmem:[#allocation32_spill] sm:$0xff] }
 0x227   : > { %1853 = vmatpush.msrb.mxu0 %v2411_v12  ;;  %1873 = vmatpush.msrb.mxu1 %v2412_v14  ;;  %v4323_v12 = vld [vmem:[#allocation34_spill] sm:$0xff] }
 0x228   : > { %1893 = vmatpush.msrb.mxu2 %v2413_v21  ;;  %1913 = vmatpush.msrb.mxu3 %v2414_v22 }
 0x229   : > { %1854 = vmatpush.msrb.mxu0 %v2415_v60  ;;  %1874 = vmatpush.msrb.mxu1 %v2416_v1 }
 0x22a   : > { %1894 = vmatpush.msrb.mxu2 %v2417_v46  ;;  %1914 = vmatpush.msrb.mxu3 %v2418_v18 }
 0x22b   : > { %1855 = vmatpush.msrb.mxu0 %v2419_v13  ;;  %1875 = vmatpush.msrb.mxu1 %v2420_v2 }
 0x22c   : > { %1895 = vmatpush.msrb.mxu2 %v2421_v43  ;;  %1915 = vmatpush.msrb.mxu3 %v2422_v5 }
 0x22d   : > { %1856 = vmatpush.msrb.mxu0 %v2423_v53  ;;  %1876 = vmatpush.msrb.mxu1 %v2424_v11  ;;  %v1723_v53 = vstv %s1722_s19 }
 0x22e   : > { %1896 = vmatpush.msrb.mxu2 %v2425_v63  ;;  %1916 = vmatpush.msrb.mxu3 %v2426_v9  ;;  %vm1724_vm5 = vcmp.lt.s32.totalorder %v1723_v53, %v3371_v62 }
 0x25e   : > { %v1542_v31 = vpop.f32.mrf.mxu0  ;;  %v1562_v30 = vpop.f32.mrf.mxu1 }
 0x25f   : > { %v1605_v34 = vadd.f32 %v1542_v31, %v4316_v33  ;;  %v1606_v36 = vadd.f32 %v1562_v30, %v4317_v35 }
 0x261   : > { %v1702_v37 = vmul.f32 0.5, %v1605_v34  ;;  %v1706_v38 = vmul.f32 0.5, %v1606_v36 }
 0x263   : > { %2259 = vtanh.f32 %v1702_v37 }
 0x264   : > { %2261 = vtanh.f32 %v1706_v38  ;;  %v4324_v38 = vld [vmem:[#allocation22_spill] sm:$0xff] }
 0x265   : > { %v1582_v39 = vpop.f32.mrf.mxu2  ;;  %v1602_v40 = vpop.f32.mrf.mxu3 }
 0x266   : > { %v1607_v42 = vadd.f32 %v1582_v39, %v4318_v41  ;;  %v1608_v45 = vadd.f32 %v1602_v40, %v4319_v44  ;;  %v4325_v39 = vld [vmem:[#allocation23_spill] sm:$0xff] }
 0x268   : > { %2263 = vtanh.f32 %v1607_v42  ;;  %v1711_v48 = vmul.f32 0.5, %v1608_v45  ;;  %v4326_v45 = vld [vmem:[#allocation24_spill] sm:$0xff] }
 0x269   : > { %v2260_v49 = vpop.eup %2259 }
 0x26a   : > { %v2262_v7 = vpop.eup %2261  ;;  %v1704_v10 = vadd.f32 1.0, %v2260_v49  ;;  %2265 = vtanh.f32 %v1711_v48  ;;  %v4327_v49 = vld [vmem:[#allocation25_spill] sm:$0xff] }
 0x26b   : > { %v1708_v6 = vadd.f32 1.0, %v2262_v7 }
 0x26c   : > { %v1705_v17 = vmul.f32 0.5, %v1704_v10 }
 0x26d   : > { %v1709_v8 = vmul.f32 0.5, %v1708_v6 }
 0x26e   : > { %v2264_v0 = vpop.eup %2263 }
 0x26f   : > { %v1715_v50 = vmul.f32 %v1709_v8, %v3624_v56  ;;  %v1716_v51 = vmul.f32 %v2264_v0, %v1705_v17 }
 0x270   : > { %v2266_v54 = vpop.eup %2265 }
 0x271   : > { %v1717_v55 = vadd.f32 %v1716_v51, %v1715_v50  ;;  %v1713_v58 = vadd.f32 1.0, %v2266_v54 }
 0x273   : > { %2267 = vtanh.f32 %v1717_v55  ;;  %v3704_v57 = vsel %vm1701_vm4, %v1717_v55, %v3624_v56  ;;  %v1714_v59 = vmul.f32 0.5, %v1713_v58  ;;  %v1926_v58 = vstv %s1925_s20 }
 0x274   : > { %vm1927_vm6 = vcmp.lt.s32.totalorder %v1926_v58, %v3371_v62 }
 0x279   : > { %v2268_v47 = vpop.eup %2267 }
 0x27a   : > { %v1719_v15 = vmul.f32 %v2268_v47, %v1714_v59 }
 0x27c   : > { %v3707_v3 = vsel %vm1701_vm4, %v1719_v15, %v3627_v4 }
 0x27d   : > { %1767 = vmatmul.f32.vlgmr.msra.gmra.mxu0 %v3707_v3  ;;  %1787 = vmatmul.f32.vlgmr.msra.gmra.mxu1 %v3707_v3 }
 0x27e   : > { %1807 = vmatmul.f32.vlgmr.msra.gmra.mxu2 %v3707_v3  ;;  %1827 = vmatmul.f32.vlgmr.msra.gmra.mxu3 %v3707_v3 }
 0x28a   : > { %v1632_v61 = vpop.f32.mrf.mxu0  ;;  %v1652_v26 = vpop.f32.mrf.mxu1 }
 0x28b   : > { %v1695_v56 = vadd.f32 %v1632_v61, %v4320_v20  ;;  %v1696_v24 = vadd.f32 %v1652_v26, %v4321_v23 }
 0x28d   : > { %v1725_v19 = vmul.f32 0.5, %v1695_v56  ;;  %v1729_v25 = vmul.f32 0.5, %v1696_v24 }
 0x28f   : > { %2269 = vtanh.f32 %v1725_v19 }
 0x290   : > { %2271 = vtanh.f32 %v1729_v25  ;;  %v4328_v25 = vld [vmem:[#allocation26_spill] sm:$0xff] }
 0x291   : > { %v1672_v4 = vpop.f32.mrf.mxu2  ;;  %v1692_v27 = vpop.f32.mrf.mxu3 }
 0x292   : > { %v1697_v28 = vadd.f32 %v1672_v4, %v4322_v29  ;;  %v1698_v14 = vadd.f32 %v1692_v27, %v4323_v12  ;;  %v4329_v27 = vld [vmem:[#allocation27_spill] sm:$0xff] }
 0x294   : > { %2273 = vtanh.f32 %v1697_v28  ;;  %v1734_v21 = vmul.f32 0.5, %v1698_v14 }
 0x295   : > { %v2270_v22 = vpop.eup %2269 }
 0x296   : > { %v2272_v60 = vpop.eup %2271  ;;  %v1727_v1 = vadd.f32 1.0, %v2270_v22  ;;  %2275 = vtanh.f32 %v1734_v21  ;;  %v4330_v21 = vld [vmem:[#allocation28_spill] sm:$0xff] }
 0x297   : > { %v1731_v46 = vadd.f32 1.0, %v2272_v60  ;;  %v4331_v60 = vld [vmem:[#allocation29_spill] sm:$0xff] }
 0x298   : > { %v1728_v18 = vmul.f32 0.5, %v1727_v1 }
 0x299   : > { %v1732_v13 = vmul.f32 0.5, %v1731_v46 }
 0x29a   : > { %v2274_v2 = vpop.eup %2273 }
 0x29b   : > { %v1738_v43 = vmul.f32 %v1732_v13, %v3685_v32  ;;  %v1739_v5 = vmul.f32 %v2274_v2, %v1728_v18 }
 0x29c   : > { %v2276_v11 = vpop.eup %2275 }
 0x29d   : > { %v1740_v63 = vadd.f32 %v1739_v5, %v1738_v43  ;;  %v1736_v31 = vadd.f32 1.0, %v2276_v11 }
 0x29f   : > { %2277 = vtanh.f32 %v1740_v63  ;;  %v3721_v9 = vsel %vm1724_vm5, %v1740_v63, %v3685_v32  ;;  %v1737_v30 = vmul.f32 0.5, %v1736_v31  ;;  %v1948_v31 = vstv %s2704_s26 }
 0x2a0   : > { %vm1949_vm7 = vcmp.lt.s32.totalorder %v1948_v31, %v3371_v62 }
 0x2a5   : > { %v2278_v33 = vpop.eup %2277 }
 0x2a6   : > { %v1742_v34 = vmul.f32 %v2278_v33, %v1737_v30 }
 0x2a8   : > { %v3724_v35 = vsel %vm1724_vm5, %v1742_v34, %v3690_v16 }
 0x2a9   : > { %1857 = vmatmul.f32.vlgmr.msrb.gmra.mxu0 %v3724_v35  ;;  %1877 = vmatmul.f32.vlgmr.msrb.gmra.mxu1 %v3724_v35 }
 0x2aa   : > { %1897 = vmatmul.f32.vlgmr.msrb.gmra.mxu2 %v3724_v35  ;;  %1917 = vmatmul.f32.vlgmr.msrb.gmra.mxu3 %v3724_v35 }
 0x2fa   : > { %v1768_v36 = vpop.f32.mrf.mxu0  ;;  %v1788_v37 = vpop.f32.mrf.mxu1 }
 0x2fb   : > { %v1831_v32 = vadd.f32 %v1768_v36, %v4324_v38  ;;  %v1832_v40 = vadd.f32 %v1788_v37, %v4325_v39 }
 0x2fd   : > { %v1928_v41 = vmul.f32 0.5, %v1831_v32  ;;  %v1932_v42 = vmul.f32 0.5, %v1832_v40 }
 0x2ff   : > { %2279 = vtanh.f32 %v1928_v41 }
 0x300   : > { %2281 = vtanh.f32 %v1932_v42 }
 0x301   : > { %v1808_v16 = vpop.f32.mrf.mxu2  ;;  %v1828_v44 = vpop.f32.mrf.mxu3 }
 0x302   : > { %v1833_v48 = vadd.f32 %v1808_v16, %v4326_v45  ;;  %v1834_v7 = vadd.f32 %v1828_v44, %v4327_v49 }
 0x304   : > { %2283 = vtanh.f32 %v1833_v48  ;;  %v1937_v10 = vmul.f32 0.5, %v1834_v7 }
 0x305   : > { %v2280_v6 = vpop.eup %2279 }
 0x306   : > { %v2282_v17 = vpop.eup %2281  ;;  %v1930_v8 = vadd.f32 1.0, %v2280_v6  ;;  %2285 = vtanh.f32 %v1937_v10 }
 0x307   : > { %v1934_v0 = vadd.f32 1.0, %v2282_v17 }
 0x308   : > { %v1931_v50 = vmul.f32 0.5, %v1930_v8 }
 0x309   : > { %v1935_v51 = vmul.f32 0.5, %v1934_v0 }
 0x30a   : > { %v2284_v52 = vpop.eup %2283 }
 0x30b   : > { %v1941_v54 = vmul.f32 %v1935_v51, %v3704_v57  ;;  %v1942_v55 = vmul.f32 %v2284_v52, %v1931_v50 }
 0x30c   : > { %v2286_v59 = vpop.eup %2285 }
 0x30d   : > { %v1943_v47 = vadd.f32 %v1942_v55, %v1941_v54  ;;  %v1939_v61 = vadd.f32 1.0, %v2286_v59 }
 0x30f   : > { %2287 = vtanh.f32 %v1943_v47  ;;  %v1947_v15 = vsel %vm1927_vm6, %v1943_v47, %v3704_v57  ;;  %v1940_v26 = vmul.f32 0.5, %v1939_v61 }
 0x310   : > { %1971 = vst [vmem:[#allocation3] sm:$0xff] %v1947_v15 }
 0x315   : > { %v2288_v20 = vpop.eup %2287 }
 0x316   : > { %v1945_v56 = vmul.f32 %v2288_v20, %v1940_v26 }
 0x318   : > { %v3739_v23 = vsel %vm1927_vm6, %v1945_v56, %v3707_v3 }
 0x319   : > { %1970 = vst [vmem:[#allocation2] sm:$0xff] %v3739_v23 }
 0x326   : > { %v1858_v24 = vpop.f32.mrf.mxu0  ;;  %v1878_v19 = vpop.f32.mrf.mxu1 }
 0x327   : > { %v1921_v4 = vadd.f32 %v1858_v24, %v4328_v25  ;;  %v1922_v29 = vadd.f32 %v1878_v19, %v4329_v27 }
 0x329   : > { %v1950_v28 = vmul.f32 0.5, %v1921_v4  ;;  %v1954_v12 = vmul.f32 0.5, %v1922_v29 }
 0x32b   : > { %2289 = vtanh.f32 %v1950_v28 }
 0x32c   : > { %2291 = vtanh.f32 %v1954_v12 }
 0x32d   : > { %v1898_v57 = vpop.f32.mrf.mxu2  ;;  %v1918_v14 = vpop.f32.mrf.mxu3 }
 0x32e   : > { %v1923_v22 = vadd.f32 %v1898_v57, %v4330_v21  ;;  %v1924_v3 = vadd.f32 %v1918_v14, %v4331_v60 }
 0x330   : > { %2293 = vtanh.f32 %v1923_v22  ;;  %v1959_v1 = vmul.f32 0.5, %v1924_v3 }
 0x331   : > { %v2290_v46 = vpop.eup %2289 }
 0x332   : > { %v2292_v18 = vpop.eup %2291  ;;  %v1952_v13 = vadd.f32 1.0, %v2290_v46  ;;  %2295 = vtanh.f32 %v1959_v1 }
 0x333   : > { %v1956_v2 = vadd.f32 1.0, %v2292_v18 }
 0x334   : > { %v1953_v43 = vmul.f32 0.5, %v1952_v13 }
 0x335   : > { %v1957_v5 = vmul.f32 0.5, %v1956_v2 }
 0x336   : > { %v2294_v53 = vpop.eup %2293 }
 0x337   : > { %v1963_v11 = vmul.f32 %v1957_v5, %v3721_v9  ;;  %v1964_v63 = vmul.f32 %v2294_v53, %v1953_v43 }
 0x338   : > { %v2296_v30 = vpop.eup %2295 }
 0x339   : > { %v1965_v33 = vadd.f32 %v1964_v63, %v1963_v11  ;;  %v1961_v36 = vadd.f32 1.0, %v2296_v30 }
 0x33b   : > { %2297 = vtanh.f32 %v1965_v33  ;;  %v1969_v34 = vsel %vm1949_vm7, %v1965_v33, %v3721_v9  ;;  %v1962_v37 = vmul.f32 0.5, %v1961_v36 }
 0x33c   : > { %1973 = vst [vmem:[#allocation5] sm:$0xff] %v1969_v34 }
 0x341   : > { %v2298_v38 = vpop.eup %2297  ;;  %1977 = sbr.rel (%p2162_p9) target bundleno = 1002 (0x3ea), region = 92 }
 0x342   : > { %v1967_v32 = vmul.f32 %v2298_v38, %v1962_v37 }
 0x344   : > { %v3751_v39 = vsel %vm1949_vm7, %v1967_v32, %v3724_v35 }
 0x345   : > { %1972 = vst [vmem:[#allocation4] sm:$0xff] %v3751_v39 }
 0x346   : > { %v2009_v62 = vld [vmem:[%s3872_s10 + $0x78] sm:$0xff]  ;;  %v2008_v40 = vld [vmem:[%s3872_s10 + $0x70] sm:$0xff]  ;;  %v2007_v41 = vld [vmem:[%s3872_s10 + $0x68] sm:$0xff] }
 0x347   : > { %v1993_v9 = vld [vmem:[%s3871_s9 + $0x78] sm:$0xff]  ;;  %2010 = vmatpush.msra.mxu0 %v2009_v62  ;;  %v1992_v35 = vld [vmem:[%s3871_s9 + $0x70] sm:$0xff]  ;;  %v1991_v42 = vld [vmem:[%s3871_s9 + $0x68] sm:$0xff] }
 0x348   : > { %2030 = vmatpush.msra.mxu1 %v1993_v9  ;;  %v2006_v16 = vld [vmem:[%s3872_s10 + $0x60] sm:$0xff]  ;;  %v2005_v45 = vld [vmem:[%s3872_s10 + $0x58] sm:$0xff]  ;;  %v2004_v49 = vld [vmem:[%s3872_s10 + $0x50] sm:$0xff] }
 0x349   : > { %2011 = vmatpush.msra.mxu0 %v2008_v40  ;;  %v1990_v44 = vld [vmem:[%s3871_s9 + $0x60] sm:$0xff]  ;;  %v1989_v48 = vld [vmem:[%s3871_s9 + $0x58] sm:$0xff]  ;;  %v1988_v7 = vld [vmem:[%s3871_s9 + $0x50] sm:$0xff] }
 0x34a   : > { %2031 = vmatpush.msra.mxu1 %v1992_v35  ;;  %v2003_v10 = vld [vmem:[%s3872_s10 + $0x48] sm:$0xff]  ;;  %v2002_v17 = vld [vmem:[%s3872_s10 + $0x40] sm:$0xff]  ;;  %v2001_v0 = vld [vmem:[%s3872_s10 + $0x38] sm:$0xff] }
 0x34b   : > { %2012 = vmatpush.msra.mxu0 %v2007_v41  ;;  %v1987_v6 = vld [vmem:[%s3871_s9 + $0x48] sm:$0xff]  ;;  %v1986_v8 = vld [vmem:[%s3871_s9 + $0x40] sm:$0xff]  ;;  %v1985_v50 = vld [vmem:[%s3871_s9 + $0x38] sm:$0xff] }
 0x34c   : > { %2032 = vmatpush.msra.mxu1 %v1991_v42  ;;  %v2000_v51 = vld [vmem:[%s3872_s10 + $0x30] sm:$0xff]  ;;  %v1999_v54 = vld [vmem:[%s3872_s10 + $0x28] sm:$0xff]  ;;  %v1998_v58 = vld [vmem:[%s3872_s10 + $0x20] sm:$0xff] }
 0x34d   : > { %2013 = vmatpush.msra.mxu0 %v2006_v16  ;;  %v1984_v52 = vld [vmem:[%s3871_s9 + $0x30] sm:$0xff]  ;;  %v1983_v55 = vld [vmem:[%s3871_s9 + $0x28] sm:$0xff]  ;;  %v1982_v59 = vld [vmem:[%s3871_s9 + $0x20] sm:$0xff] }
 0x34e   : > { %2033 = vmatpush.msra.mxu1 %v1990_v44  ;;  %v1997_v47 = vld [vmem:[%s3872_s10 + $0x18] sm:$0xff]  ;;  %v1996_v61 = vld [vmem:[%s3872_s10 + $0x10] sm:$0xff]  ;;  %v1995_v20 = vld [vmem:[%s3872_s10 + $0x8] sm:$0xff] }
 0x34f   : > { %2014 = vmatpush.msra.mxu0 %v2005_v45  ;;  %v1981_v15 = vld [vmem:[%s3871_s9 + $0x18] sm:$0xff]  ;;  %v1980_v26 = vld [vmem:[%s3871_s9 + $0x10] sm:$0xff]  ;;  %v1979_v56 = vld [vmem:[%s3871_s9 + $0x8] sm:$0xff] }
 0x350   : > { %2034 = vmatpush.msra.mxu1 %v1989_v48  ;;  %v1994_v24 = vld [vmem:[%s3872_s10] sm:$0xff] }
 0x351   : > { %2015 = vmatpush.msra.mxu0 %v2004_v49  ;;  %v1978_v19 = vld [vmem:[%s3871_s9] sm:$0xff] }
 0x352   : > { %2035 = vmatpush.msra.mxu1 %v1988_v7  ;;  %v2427_v25 = vld [vmem:[%s3873_s11] ss:$0 sm:$0xff] }
 0x353   : > { %2016 = vmatpush.msra.mxu0 %v2003_v10 }
 0x354   : > { %2036 = vmatpush.msra.mxu1 %v1987_v6 }
 0x355   : > { %2017 = vmatpush.msra.mxu0 %v2002_v17 }
 0x356   : > { %2037 = vmatpush.msra.mxu1 %v1986_v8 }
 0x357   : > { %2018 = vmatpush.msra.mxu0 %v2001_v0 }
 0x358   : > { %2038 = vmatpush.msra.mxu1 %v1985_v50 }
 0x359   : > { %2019 = vmatpush.msra.mxu0 %v2000_v51 }
 0x35a   : > { %2039 = vmatpush.msra.mxu1 %v1984_v52 }
 0x35b   : > { %2020 = vmatpush.msra.mxu0 %v1999_v54 }
 0x35c   : > { %2040 = vmatpush.msra.mxu1 %v1983_v55 }
 0x35d   : > { %2021 = vmatpush.msra.mxu0 %v1998_v58 }
 0x35e   : > { %2041 = vmatpush.msra.mxu1 %v1982_v59 }
 0x35f   : > { %2022 = vmatpush.msra.mxu0 %v1997_v47 }
 0x360   : > { %2042 = vmatpush.msra.mxu1 %v1981_v15 }
 0x361   : > { %2023 = vmatpush.msra.mxu0 %v1996_v61 }
 0x362   : > { %2043 = vmatpush.msra.mxu1 %v1980_v26 }
 0x363   : > { %2024 = vmatpush.msra.mxu0 %v1995_v20 }
 0x364   : > { %2044 = vmatpush.msra.mxu1 %v1979_v56 }
 0x365   : > { %2025 = vmatpush.msra.mxu0 %v1994_v24 }
 0x366   : > { %2045 = vmatpush.msra.mxu1 %v1978_v19  ;;  %2026 = vmatmul.f32.vlgmr.msra.gmra.mxu0 %v3751_v39 }
 0x367   : > { %2046 = vmatmul.f32.vlgmr.msra.gmra.mxu1 %v3739_v23 }
 0x3e3   : > { %v2027_v4 = vpop.f32.mrf.mxu0 }
 0x3e4   : > { %v2047_v27 = vpop.f32.mrf.mxu1 }
 0x3e5   : > { %v2048_v29 = vadd.f32 %v2047_v27, %v2027_v4 }
 0x3e7   : > { %v2054_v28 = vadd.f32 %v2427_v25, %v2048_v29 }
 0x3e9   : > { %2055 = vst [vmem:[%s3874_s12] sm:$0xff] %v2054_v28 }
 0x3ea PF: > { %s25_s21 = sadd.s32 1, %s2566_s21  }
 0x3eb   : > { %p22_p10 = scmp.ge.s32.totalorder %s25_s21, 4  }
 0x3ed   :  { %24 = sbr.rel (!%p22_p10) target bundleno = 5 (0x5), region = 130 }
 0x3f2   :  { %2067 = vsyncpa [#allocation9], 1 }
 0x3f3   :  { %2069 = vsyncpa [#allocation9 + $0x1], 1 }
 0x3f4   :  { %2070 = vsyncpa [#allocation11], 1 }
 0x3f5   :  { %2071 = vsyncpa [#allocation14], 1 }

</bundles_post_ra>
